<compile_context>
chip_gen: v6e
topology: v6e:2x2x1
jax: 0.10.0
libtpu: 0.0.40
codegen_flags: <defaults>
</compile_context>

<pallas_src>
import math

import numpy as np
import jax
import jax.numpy as jnp
from jax import lax
from jax.experimental import pallas as pl
from jax.experimental.pallas import tpu as pltpu

F32 = jnp.float32
BN_EPS = 1e-5

# static geometry implied by the module
L1, D1 = 4, 101                      # attention-1: seq len 4, feature dim 101
D1P = 128                            # attention-1 feature dim zero-padded to full lane width
KH, KW, C1 = 4, 16, 128              # conv1: kernel (4,16), 128 output channels
W_IN = 101
W_CONV = W_IN - KW + 1               # 86 valid conv1 width positions
W_A1 = 112                           # lane width of the conv1 im2col matrix (covers w<=85+15)
W_M = 83                             # pre-stride pooled rows needed (pool windows start 0..82)
W_POOL = (W_CONV - 4) // 2 + 1       # 42 (MaxPool2d (1,4) stride (1,2))
D2 = 42                              # attention-2 feature dim (= pooled width)
L2 = 128                             # attention-2 sequence length (= channels)
KW2 = 3
W2_OUT = W_POOL - KW2 + 1            # 40 conv2 output width per branch
W_STK = 2 * W_POOL - KW2 + 1         # 82 rows of the stacked two-branch conv2 matmul


def _elu(x):
    # ELU(alpha=1): x if x > 0 else exp(x) - 1 (clamp arg so exp only sees <= 0)
    return jnp.where(x > 0, x, jnp.exp(jnp.minimum(x, 0.0)) - 1.0)


# --------------------------------------------------------------------------------------
# Fused per-batch kernel
# --------------------------------------------------------------------------------------
def _fused_kernel(x_ref, wq1_ref, wk1_ref, wv1_ref,
                  w1_ref, b1_ref, s1_ref, t1_ref,
                  wq2_ref, wk2_ref, wv2_ref,
                  w2_ref, b2_ref, s2_ref, t2_ref,
                  wl_ref, bl_ref,
                  oa_ref, oc_ref,
                  a1_ref, m_ref, xh_ref):
    # ---------------- attention 1 (L=4, D padded to 128 lanes; padding is exact) ----------------
    x = x_ref[0]                                                         # (4, 128)
    q = jnp.dot(x, wq1_ref[...], preferred_element_type=F32)            # 1/sqrt(101) folded in wq1
    k = jnp.dot(x, wk1_ref[...], preferred_element_type=F32)
    v = jnp.dot(x, wv1_ref[...], preferred_element_type=F32)
    s = lax.dot_general(q, k, (((1,), (1,)), ((), ())),
                        preferred_element_type=F32)                      # (4, 4)
    s = s - jnp.max(s, axis=-1, keepdims=True)
    p = jnp.exp(s)
    p = p * pl.reciprocal(jnp.sum(p, axis=-1, keepdims=True), approx=True)
    att1 = jnp.dot(p, v, preferred_element_type=F32)                     # (4, 128)  [kh, width]
    # TODO(synk): Att.SelfAttention internals unavailable; modelled as plain scaled-dot-product
    #             attention, its dropout (0.2) is identity in eval mode.

    # ---------------- conv1 (4,16) as one im2col matmul ----------------
    # A1[kw*4 + kh, w] = att1[kh, w + kw]; only w <= 85 is consumed downstream.
    for kw in range(KW):                                                 # static unroll: 16 stores
        a1_ref[4 * kw:4 * kw + KH, :] = att1[:, kw:kw + W_A1]
    conv_wc = lax.dot_general(a1_ref[...], w1_ref[...],
                              (((0,), (0,)), ((), ())),
                              preferred_element_type=F32)                # (112, 128) [w, co]
    y = _elu(conv_wc + b1_ref[...]) * s1_ref[...] + t1_ref[...]          # bias + ELU + BN(eval)
    # MaxPool2d (1,4) stride (1,2): 4-way max of shifted rows, then one stride-2 row selection.
    m = jnp.maximum(jnp.maximum(y[0:W_M, :], y[1:W_M + 1, :]),
                    jnp.maximum(y[2:W_M + 2, :], y[3:W_M + 3, :]))       # (83, 128)
    m_ref[...] = m
    pool1 = m_ref[pl.ds(0, W_POOL, stride=2), :]                         # (42, 128)  [w, ch]
    # TODO(synk): nn.Dropout(0.5) after the pool is identity in eval mode.

    # ---------------- attention 2 (sequence = 128 channels, feature = 42 widths) ----------------
    # pool1 already holds x2^T (feature on sublanes, channels dense on lanes).
    q2t = jnp.dot(wq2_ref[...], pool1, preferred_element_type=F32)       # (42, 128), scale folded
    k2t = jnp.dot(wk2_ref[...], pool1, preferred_element_type=F32)
    v2t = jnp.dot(wv2_ref[...], pool1, preferred_element_type=F32)
    s2 = lax.dot_general(q2t, k2t, (((0,), (0,)), ((), ())),
                         preferred_element_type=F32)                     # (128, 128), lane-dense
    s2 = s2 - jnp.max(s2, axis=-1, keepdims=True)
    p2 = jnp.exp(s2)
    p2 = p2 * pl.reciprocal(jnp.sum(p2, axis=-1, keepdims=True), approx=True)
    att2 = lax.dot_general(v2t, p2, (((1,), (1,)), ((), ())),
                           preferred_element_type=F32)                   # (42, 128)  [w, ch]

    # ---------------- convolution2 + output head, both branches stacked ----------------
    # convolution2 = BN(eval) -> ELU -> Conv2d(128->128,(1,3)); applied to both branches at once.
    xh_ref[0:W_POOL, :] = _elu(att2 * s2_ref[...] + t2_ref[...])         # branch A: attention path
    xh_ref[W_POOL:2 * W_POOL, :] = _elu(pool1 * s2_ref[...] + t2_ref[...])  # branch B: conv path
    # 3-tap conv as one im2col matmul; rows 40,41 straddle the branch boundary and are never read.
    patches = jnp.concatenate([xh_ref[0:W_STK, :],
                               xh_ref[1:W_STK + 1, :],
                               xh_ref[2:W_STK + 2, :]], axis=1)          # (82, 384)
    c2 = jnp.dot(patches, w2_ref[...], preferred_element_type=F32) + b2_ref[...]   # (82, 128)
    pooled_a = jnp.max(c2[0:W2_OUT, :], axis=0, keepdims=True)           # AdaptiveMaxPool2d((1,1))
    pooled_b = jnp.max(c2[W_POOL:W_POOL + W2_OUT, :], axis=0, keepdims=True)
    logit_a = jnp.sum(pooled_a * wl_ref[...], axis=1, keepdims=True) + bl_ref[...]
    logit_b = jnp.sum(pooled_b * wl_ref[...], axis=1, keepdims=True) + bl_ref[...]
    oa_ref[0] = 1.0 / (1.0 + jnp.exp(-logit_a))                          # Sigmoid, attention branch
    oc_ref[0] = 1.0 / (1.0 + jnp.exp(-logit_b))                          # Sigmoid, conv branch


# --------------------------------------------------------------------------------------
# Full forward: one fused pallas_call over the batch
# --------------------------------------------------------------------------------------
def dsac_forward(seq, params):
    x = jnp.squeeze(seq.astype(F32), axis=1)                   # (B, 4, 101)
    x = jnp.pad(x, ((0, 0), (0, 0), (0, D1P - D1)))            # (B, 4, 128): exact zero-pad of D
    B = x.shape[0]

    out_att, out_conv = pl.pallas_call(
        _fused_kernel,
        out_shape=(jax.ShapeDtypeStruct((B, 1, 1), F32),
                   jax.ShapeDtypeStruct((B, 1, 1), F32)),
        grid=(B,),
        in_specs=[
            pl.BlockSpec((1, L1, D1P), lambda b: (b, 0, 0)),    # x (per batch element)
            pl.BlockSpec((D1P, D1P), lambda b: (0, 0)),         # wq1 (padded, scale folded)
            pl.BlockSpec((D1P, D1P), lambda b: (0, 0)),         # wk1 (padded)
            pl.BlockSpec((D1P, D1P), lambda b: (0, 0)),         # wv1 (padded)
            pl.BlockSpec((KW * KH, C1), lambda b: (0, 0)),      # conv1 weight (64, 128)
            pl.BlockSpec((1, C1), lambda b: (0, 0)),            # conv1 bias
            pl.BlockSpec((1, C1), lambda b: (0, 0)),            # bn1 scale (folded)
            pl.BlockSpec((1, C1), lambda b: (0, 0)),            # bn1 shift (folded)
            pl.BlockSpec((D2, D2), lambda b: (0, 0)),           # wq2^T (scale folded)
            pl.BlockSpec((D2, D2), lambda b: (0, 0)),           # wk2^T
            pl.BlockSpec((D2, D2), lambda b: (0, 0)),           # wv2^T
            pl.BlockSpec((KW2 * C1, C1), lambda b: (0, 0)),     # conv2 weight (384, 128)
            pl.BlockSpec((1, C1), lambda b: (0, 0)),            # conv2 bias
            pl.BlockSpec((1, C1), lambda b: (0, 0)),            # bn2 scale (folded)
            pl.BlockSpec((1, C1), lambda b: (0, 0)),            # bn2 shift (folded)
            pl.BlockSpec((1, C1), lambda b: (0, 0)),            # linear weight
            pl.BlockSpec((1, 1), lambda b: (0, 0)),             # linear bias
        ],
        out_specs=(pl.BlockSpec((1, 1, 1), lambda b: (b, 0, 0)),
                   pl.BlockSpec((1, 1, 1), lambda b: (b, 0, 0))),
        scratch_shapes=[
            pltpu.VMEM((KW * KH, W_A1), F32),    # conv1 im2col staging
            pltpu.VMEM((W_M, C1), F32),          # pre-stride pooled rows
            pltpu.VMEM((2 * W_POOL, C1), F32),   # stacked two-branch conv2 input
        ],
        compiler_params=pltpu.CompilerParams(dimension_semantics=("parallel",)),
    )(x,
      params["wq1p"], params["wk1p"], params["wv1p"],
      params["w1flat"], params["b1"], params["bn1_scale"], params["bn1_shift"],
      params["wq2t"], params["wk2t"], params["wv2t"],
      params["w2flat"], params["b2"], params["bn2_scale"], params["bn2_shift"],
      params["lin_w"], params["lin_b11"])

    return out_att[:, 0, :], out_conv[:, 0, :]                  # (output(att_seq_2), output(conv_seq_2))


# --------------------------------------------------------------------------------------
# Deterministic parameter initialization (shapes from the module __init__)
# --------------------------------------------------------------------------------------
def init_params(key):
    ks = jax.random.split(key, 20)

    def n(i, shape, s=0.1):
        return (s * jax.random.normal(ks[i], shape)).astype(F32)

    conv1_w = n(0, (C1, 1, KH, KW))
    conv1_b = n(1, (C1,))
    bn1_gamma = 1.0 + n(2, (C1,))
    bn1_beta = n(3, (C1,))
    bn1_mean = n(4, (C1,))
    bn1_var = 0.5 + jnp.abs(n(5, (C1,), 0.5))
    conv2_w = n(6, (C1, C1, 1, KW2), 0.05)
    conv2_b = n(7, (C1,))
    bn2_gamma = 1.0 + n(8, (C1,))
    bn2_beta = n(9, (C1,))
    bn2_mean = n(10, (C1,))
    bn2_var = 0.5 + jnp.abs(n(11, (C1,), 0.5))
    wq1, wk1, wv1 = n(12, (D1, D1)), n(13, (D1, D1)), n(14, (D1, D1))
    wq2, wk2, wv2 = n(15, (D2, D2)), n(16, (D2, D2)), n(17, (D2, D2))
    lin_w = n(18, (1, C1))
    lin_b = n(19, (1,))

    bn1_scale = bn1_gamma / jnp.sqrt(bn1_var + BN_EPS)
    bn1_shift = bn1_beta - bn1_mean * bn1_scale
    bn2_scale = bn2_gamma / jnp.sqrt(bn2_var + BN_EPS)
    bn2_shift = bn2_beta - bn2_mean * bn2_scale

    pad1 = D1P - D1
    params = dict(
        # attention-1 weights: zero-padded to 128x128 lanes, softmax 1/sqrt(D) folded into wq
        wq1p=jnp.pad(wq1 / math.sqrt(D1), ((0, pad1), (0, pad1))),
        wk1p=jnp.pad(wk1, ((0, pad1), (0, pad1))),
        wv1p=jnp.pad(wv1, ((0, pad1), (0, pad1))),
        # conv1 weight flattened for the im2col matmul: row index = kw*4 + kh
        w1flat=jnp.transpose(conv1_w[:, 0, :, :], (2, 1, 0)).reshape(KW * KH, C1),
        b1=conv1_b.reshape(1, C1),
        bn1_scale=bn1_scale.reshape(1, C1),
        bn1_shift=bn1_shift.reshape(1, C1),
        # attention-2 weights: pre-transposed so q2^T = wq2t @ x2^T, scale folded into wq
        wq2t=jnp.transpose(wq2) / math.sqrt(D2),
        wk2t=jnp.transpose(wk2),
        wv2t=jnp.transpose(wv2),
        # conv2 weight flattened for the 3-tap im2col matmul: row index = k*128 + ci
        w2flat=jnp.transpose(conv2_w[:, :, 0, :], (2, 1, 0)).reshape(KW2 * C1, C1),
        b2=conv2_b.reshape(1, C1),
        bn2_scale=bn2_scale.reshape(1, C1),
        bn2_shift=bn2_shift.reshape(1, C1),
        lin_w=lin_w,
        lin_b11=lin_b.reshape(1, 1),
    )
    raw = dict(conv1_w=conv1_w, conv1_b=conv1_b,
               bn1=(bn1_gamma, bn1_beta, bn1_mean, bn1_var),
               conv2_w=conv2_w, conv2_b=conv2_b,
               bn2=(bn2_gamma, bn2_beta, bn2_mean, bn2_var),
               wq1=wq1, wk1=wk1, wv1=wv1, wq2=wq2, wk2=wk2, wv2=wv2,
               lin_w=lin_w, lin_b=lin_b)
    return params, raw


# --------------------------------------------------------------------------------------
# Pure-JAX reference (same eval-mode semantics) for a correctness sanity check
# --------------------------------------------------------------------------------------
def reference_forward(seq, raw):
    HI = lax.Precision.HIGHEST
    x = jnp.squeeze(seq.astype(F32), axis=1)

    def attn(z, wq, wk, wv):
        d = z.shape[-1]
        q = jnp.einsum("bld,de->ble", z, wq, precision=HI)
        k = jnp.einsum("bld,de->ble", z, wk, precision=HI)
        v = jnp.einsum("bld,de->ble", z, wv, precision=HI)
        s = jnp.einsum("ble,bme->blm", q, k, precision=HI) * (1.0 / math.sqrt(d))
        return jnp.einsum("blm,bme->ble", jax.nn.softmax(s, axis=-1), v, precision=HI)

    def bn(z4, p):
        g, b, m, v = p
        return ((z4 - m[None, :, None, None]) / jnp.sqrt(v + BN_EPS)[None, :, None, None]
                * g[None, :, None, None] + b[None, :, None, None])

    a1 = attn(x, raw["wq1"], raw["wk1"], raw["wv1"])[:, None, :, :]      # (B,1,4,101)
    c1 = lax.conv_general_dilated(a1, raw["conv1_w"], (1, 1), "VALID",
                                  dimension_numbers=("NCHW", "OIHW", "NCHW"), precision=HI)
    c1 = jax.nn.elu(c1 + raw["conv1_b"][None, :, None, None])
    c1 = bn(c1, raw["bn1"])
    pool = lax.reduce_window(c1, -jnp.inf, lax.max, (1, 1, 1, 4), (1, 1, 1, 2), "VALID")
    a2 = attn(jnp.squeeze(pool, axis=2), raw["wq2"], raw["wk2"], raw["wv2"])

    def branch(z4):
        zn = jax.nn.elu(bn(z4, raw["bn2"]))
        c2 = lax.conv_general_dilated(zn, raw["conv2_w"], (1, 1), "VALID",
                                      dimension_numbers=("NCHW", "OIHW", "NCHW"), precision=HI)
        c2 = c2 + raw["conv2_b"][None, :, None, None]
        pooled = jnp.max(c2, axis=(2, 3))
        return jax.nn.sigmoid(pooled @ raw["lin_w"].T + raw["lin_b"])

    return branch(a2[:, :, None, :]), branch(pool)


if __name__ == "__main__":
    key = jax.random.PRNGKey(0)
    pkey, xkey = jax.random.split(key)
    params, raw = init_params(pkey)

    # input consistent with the module: (B=2, C=1, H=4, W=101)
    seq = jax.random.normal(xkey, (2, 1, 4, 101), dtype=F32)

    fwd = jax.jit(dsac_forward)
    out_att, out_conv = jax.block_until_ready(fwd(seq, params))

    assert out_att.shape == (2, 1) and out_conv.shape == (2, 1)

    ref_att, ref_conv = reference_forward(seq, raw)
    np.testing.assert_allclose(np.asarray(out_att), np.asarray(ref_att), rtol=2e-2, atol=2e-2)
    np.testing.assert_allclose(np.asarray(out_conv), np.asarray(ref_conv), rtol=2e-2, atol=2e-2)

    print("KERNEL_OK")
</pallas_src>

<mosaic_0001>
module attributes {stable_mosaic.version = 11 : i64} {
  func.func @_fused_kernel(%arg0: i32, %arg1: memref<1x4x128xf32, #tpu.memory_space<vmem>>, %arg2: memref<128x128xf32, #tpu.memory_space<vmem>>, %arg3: memref<128x128xf32, #tpu.memory_space<vmem>>, %arg4: memref<128x128xf32, #tpu.memory_space<vmem>>, %arg5: memref<64x128xf32, #tpu.memory_space<vmem>>, %arg6: memref<1x128xf32, #tpu.memory_space<vmem>>, %arg7: memref<1x128xf32, #tpu.memory_space<vmem>>, %arg8: memref<1x128xf32, #tpu.memory_space<vmem>>, %arg9: memref<42x42xf32, #tpu.memory_space<vmem>>, %arg10: memref<42x42xf32, #tpu.memory_space<vmem>>, %arg11: memref<42x42xf32, #tpu.memory_space<vmem>>, %arg12: memref<384x128xf32, #tpu.memory_space<vmem>>, %arg13: memref<1x128xf32, #tpu.memory_space<vmem>>, %arg14: memref<1x128xf32, #tpu.memory_space<vmem>>, %arg15: memref<1x128xf32, #tpu.memory_space<vmem>>, %arg16: memref<1x128xf32, #tpu.memory_space<vmem>>, %arg17: memref<1x1xf32, #tpu.memory_space<vmem>>, %arg18: memref<1x1x1xf32, #tpu.memory_space<vmem>>, %arg19: memref<1x1x1xf32, #tpu.memory_space<vmem>>, %arg20: memref<64x112xf32, #tpu.memory_space<vmem>>, %arg21: memref<83x128xf32, #tpu.memory_space<vmem>>, %arg22: memref<84x128xf32, #tpu.memory_space<vmem>>) attributes {dimension_semantics = [#tpu.dimension_semantics<parallel>], iteration_bounds = array<i64: 2>, scalar_prefetch = 0 : i64, scratch_operands = 3 : i64, tpu.core_type = #tpu.core_type<tc>, window_params = [{transform_indices = @transform_0, window_bounds = array<i64: 1, 4, 128>}, {pipeline_mode = #tpu.pipeline_mode<synchronous>, transform_indices = @transform_1, window_bounds = array<i64: 128, 128>}, {pipeline_mode = #tpu.pipeline_mode<synchronous>, transform_indices = @transform_2, window_bounds = array<i64: 128, 128>}, {pipeline_mode = #tpu.pipeline_mode<synchronous>, transform_indices = @transform_3, window_bounds = array<i64: 128, 128>}, {pipeline_mode = #tpu.pipeline_mode<synchronous>, transform_indices = @transform_4, window_bounds = array<i64: 64, 128>}, {pipeline_mode = #tpu.pipeline_mode<synchronous>, transform_indices = @transform_5, window_bounds = array<i64: 1, 128>}, {pipeline_mode = #tpu.pipeline_mode<synchronous>, transform_indices = @transform_6, window_bounds = array<i64: 1, 128>}, {pipeline_mode = #tpu.pipeline_mode<synchronous>, transform_indices = @transform_7, window_bounds = array<i64: 1, 128>}, {pipeline_mode = #tpu.pipeline_mode<synchronous>, transform_indices = @transform_8, window_bounds = array<i64: 42, 42>}, {pipeline_mode = #tpu.pipeline_mode<synchronous>, transform_indices = @transform_9, window_bounds = array<i64: 42, 42>}, {pipeline_mode = #tpu.pipeline_mode<synchronous>, transform_indices = @transform_10, window_bounds = array<i64: 42, 42>}, {pipeline_mode = #tpu.pipeline_mode<synchronous>, transform_indices = @transform_11, window_bounds = array<i64: 384, 128>}, {pipeline_mode = #tpu.pipeline_mode<synchronous>, transform_indices = @transform_12, window_bounds = array<i64: 1, 128>}, {pipeline_mode = #tpu.pipeline_mode<synchronous>, transform_indices = @transform_13, window_bounds = array<i64: 1, 128>}, {pipeline_mode = #tpu.pipeline_mode<synchronous>, transform_indices = @transform_14, window_bounds = array<i64: 1, 128>}, {pipeline_mode = #tpu.pipeline_mode<synchronous>, transform_indices = @transform_15, window_bounds = array<i64: 1, 128>}, {pipeline_mode = #tpu.pipeline_mode<synchronous>, transform_indices = @transform_16, window_bounds = array<i64: 1, 1>}, {transform_indices = @transform_17, window_bounds = array<i64: 1, 1, 1>}, {transform_indices = @transform_18, window_bounds = array<i64: 1, 1, 1>}]} {
    %c0 = arith.constant 0 : index
    %c0_0 = arith.constant 0 : index
    %c0_1 = arith.constant 0 : index
    %0 = vector.load %arg1[%c0, %c0_0, %c0_1] : memref<1x4x128xf32, #tpu.memory_space<vmem>>, vector<1x4x128xf32>
    %1 = vector.shape_cast %0 : vector<1x4x128xf32> to vector<4x128xf32>
    %c0_2 = arith.constant 0 : index
    %c0_3 = arith.constant 0 : index
    %2 = vector.load %arg2[%c0_2, %c0_3] : memref<128x128xf32, #tpu.memory_space<vmem>>, vector<128x128xf32>
    %cst = arith.constant dense<0.000000e+00> : vector<4x128xf32>
    %3 = tpu.matmul %1, %2, %cst {dimension_numbers = #tpu.dot_dimension_numbers<[1], [0], [0], [1], [0, 0, 1, 1], [], []>} : vector<4x128xf32>, vector<128x128xf32>, vector<4x128xf32> -> vector<4x128xf32>
    %c0_4 = arith.constant 0 : index
    %c0_5 = arith.constant 0 : index
    %4 = vector.load %arg3[%c0_4, %c0_5] : memref<128x128xf32, #tpu.memory_space<vmem>>, vector<128x128xf32>
    %cst_6 = arith.constant dense<0.000000e+00> : vector<4x128xf32>
    %5 = tpu.matmul %1, %4, %cst_6 {dimension_numbers = #tpu.dot_dimension_numbers<[1], [0], [0], [1], [0, 0, 1, 1], [], []>} : vector<4x128xf32>, vector<128x128xf32>, vector<4x128xf32> -> vector<4x128xf32>
    %c0_7 = arith.constant 0 : index
    %c0_8 = arith.constant 0 : index
    %6 = vector.load %arg4[%c0_7, %c0_8] : memref<128x128xf32, #tpu.memory_space<vmem>>, vector<128x128xf32>
    %cst_9 = arith.constant dense<0.000000e+00> : vector<4x128xf32>
    %7 = tpu.matmul %1, %6, %cst_9 {dimension_numbers = #tpu.dot_dimension_numbers<[1], [0], [0], [1], [0, 0, 1, 1], [], []>} : vector<4x128xf32>, vector<128x128xf32>, vector<4x128xf32> -> vector<4x128xf32>
    %cst_10 = arith.constant dense<0.000000e+00> : vector<4x4xf32>
    %8 = tpu.matmul %3, %5, %cst_10 {dimension_numbers = #tpu.dot_dimension_numbers<[1], [1], [0], [0], [0, 0, 1, 0], [], []>} : vector<4x128xf32>, vector<4x128xf32>, vector<4x4xf32> -> vector<4x4xf32>
    %cst_11 = arith.constant dense<0xFF800000> : vector<4xf32>
    %9 = vector.multi_reduction <maximumf>, %8, %cst_11 [1] : vector<4x4xf32> to vector<4xf32>
    %10 = vector.shape_cast %9 : vector<4xf32> to vector<4x1xf32>
    %11 = vector.broadcast %10 : vector<4x1xf32> to vector<4x4xf32>
    %12 = arith.subf %8, %11 : vector<4x4xf32>
    %13 = math.exp %12 : vector<4x4xf32>
    %cst_12 = arith.constant dense<0.000000e+00> : vector<4xf32>
    %14 = vector.multi_reduction <add>, %13, %cst_12 [1] : vector<4x4xf32> to vector<4xf32>
    %15 = vector.shape_cast %14 : vector<4xf32> to vector<4x1xf32>
    %16 = tpu.reciprocal %15 {approx = true} : vector<4x1xf32> -> vector<4x1xf32>
    %17 = vector.broadcast %16 : vector<4x1xf32> to vector<4x4xf32>
    %18 = arith.mulf %13, %17 : vector<4x4xf32>
    %cst_13 = arith.constant dense<0.000000e+00> : vector<4x128xf32>
    %19 = tpu.matmul %18, %7, %cst_13 {dimension_numbers = #tpu.dot_dimension_numbers<[1], [0], [0], [1], [0, 0, 1, 1], [], []>} : vector<4x4xf32>, vector<4x128xf32>, vector<4x128xf32> -> vector<4x128xf32>
    %20 = vector.extract_strided_slice %19 {offsets = [0, 0], sizes = [4, 112], strides = [1, 1]} : vector<4x128xf32> to vector<4x112xf32>
    %c0_14 = arith.constant 0 : index
    %c0_15 = arith.constant 0 : index
    %21 = vector.load %arg20[%c0_14, %c0_15] : memref<64x112xf32, #tpu.memory_space<vmem>>, vector<4x112xf32>
    tpu.vector_store %arg20[%c0_14, %c0_15], %20 {strides = array<i32>} : memref<64x112xf32, #tpu.memory_space<vmem>>, vector<4x112xf32>,
    %22 = vector.extract_strided_slice %19 {offsets = [0, 1], sizes = [4, 112], strides = [1, 1]} : vector<4x128xf32> to vector<4x112xf32>
    %c4 = arith.constant 4 : index
    %c0_16 = arith.constant 0 : index
    %23 = vector.load %arg20[%c4, %c0_16] : memref<64x112xf32, #tpu.memory_space<vmem>>, vector<4x112xf32>
    tpu.vector_store %arg20[%c4, %c0_16], %22 {strides = array<i32>} : memref<64x112xf32, #tpu.memory_space<vmem>>, vector<4x112xf32>,
    %24 = vector.extract_strided_slice %19 {offsets = [0, 2], sizes = [4, 112], strides = [1, 1]} : vector<4x128xf32> to vector<4x112xf32>
    %c8 = arith.constant 8 : index
    %c0_17 = arith.constant 0 : index
    %25 = vector.load %arg20[%c8, %c0_17] : memref<64x112xf32, #tpu.memory_space<vmem>>, vector<4x112xf32>
    tpu.vector_store %arg20[%c8, %c0_17], %24 {strides = array<i32>} : memref<64x112xf32, #tpu.memory_space<vmem>>, vector<4x112xf32>,
    %26 = vector.extract_strided_slice %19 {offsets = [0, 3], sizes = [4, 112], strides = [1, 1]} : vector<4x128xf32> to vector<4x112xf32>
    %c12 = arith.constant 12 : index
    %c0_18 = arith.constant 0 : index
    %27 = vector.load %arg20[%c12, %c0_18] : memref<64x112xf32, #tpu.memory_space<vmem>>, vector<4x112xf32>
    tpu.vector_store %arg20[%c12, %c0_18], %26 {strides = array<i32>} : memref<64x112xf32, #tpu.memory_space<vmem>>, vector<4x112xf32>,
    %28 = vector.extract_strided_slice %19 {offsets = [0, 4], sizes = [4, 112], strides = [1, 1]} : vector<4x128xf32> to vector<4x112xf32>
    %c16 = arith.constant 16 : index
    %c0_19 = arith.constant 0 : index
    %29 = vector.load %arg20[%c16, %c0_19] : memref<64x112xf32, #tpu.memory_space<vmem>>, vector<4x112xf32>
    tpu.vector_store %arg20[%c16, %c0_19], %28 {strides = array<i32>} : memref<64x112xf32, #tpu.memory_space<vmem>>, vector<4x112xf32>,
    %30 = vector.extract_strided_slice %19 {offsets = [0, 5], sizes = [4, 112], strides = [1, 1]} : vector<4x128xf32> to vector<4x112xf32>
    %c20 = arith.constant 20 : index
    %c0_20 = arith.constant 0 : index
    %31 = vector.load %arg20[%c20, %c0_20] : memref<64x112xf32, #tpu.memory_space<vmem>>, vector<4x112xf32>
    tpu.vector_store %arg20[%c20, %c0_20], %30 {strides = array<i32>} : memref<64x112xf32, #tpu.memory_space<vmem>>, vector<4x112xf32>,
    %32 = vector.extract_strided_slice %19 {offsets = [0, 6], sizes = [4, 112], strides = [1, 1]} : vector<4x128xf32> to vector<4x112xf32>
    %c24 = arith.constant 24 : index
    %c0_21 = arith.constant 0 : index
    %33 = vector.load %arg20[%c24, %c0_21] : memref<64x112xf32, #tpu.memory_space<vmem>>, vector<4x112xf32>
    tpu.vector_store %arg20[%c24, %c0_21], %32 {strides = array<i32>} : memref<64x112xf32, #tpu.memory_space<vmem>>, vector<4x112xf32>,
    %34 = vector.extract_strided_slice %19 {offsets = [0, 7], sizes = [4, 112], strides = [1, 1]} : vector<4x128xf32> to vector<4x112xf32>
    %c28 = arith.constant 28 : index
    %c0_22 = arith.constant 0 : index
    %35 = vector.load %arg20[%c28, %c0_22] : memref<64x112xf32, #tpu.memory_space<vmem>>, vector<4x112xf32>
    tpu.vector_store %arg20[%c28, %c0_22], %34 {strides = array<i32>} : memref<64x112xf32, #tpu.memory_space<vmem>>, vector<4x112xf32>,
    %36 = vector.extract_strided_slice %19 {offsets = [0, 8], sizes = [4, 112], strides = [1, 1]} : vector<4x128xf32> to vector<4x112xf32>
    %c32 = arith.constant 32 : index
    %c0_23 = arith.constant 0 : index
    %37 = vector.load %arg20[%c32, %c0_23] : memref<64x112xf32, #tpu.memory_space<vmem>>, vector<4x112xf32>
    tpu.vector_store %arg20[%c32, %c0_23], %36 {strides = array<i32>} : memref<64x112xf32, #tpu.memory_space<vmem>>, vector<4x112xf32>,
    %38 = vector.extract_strided_slice %19 {offsets = [0, 9], sizes = [4, 112], strides = [1, 1]} : vector<4x128xf32> to vector<4x112xf32>
    %c36 = arith.constant 36 : index
    %c0_24 = arith.constant 0 : index
    %39 = vector.load %arg20[%c36, %c0_24] : memref<64x112xf32, #tpu.memory_space<vmem>>, vector<4x112xf32>
    tpu.vector_store %arg20[%c36, %c0_24], %38 {strides = array<i32>} : memref<64x112xf32, #tpu.memory_space<vmem>>, vector<4x112xf32>,
    %40 = vector.extract_strided_slice %19 {offsets = [0, 10], sizes = [4, 112], strides = [1, 1]} : vector<4x128xf32> to vector<4x112xf32>
    %c40 = arith.constant 40 : index
    %c0_25 = arith.constant 0 : index
    %41 = vector.load %arg20[%c40, %c0_25] : memref<64x112xf32, #tpu.memory_space<vmem>>, vector<4x112xf32>
    tpu.vector_store %arg20[%c40, %c0_25], %40 {strides = array<i32>} : memref<64x112xf32, #tpu.memory_space<vmem>>, vector<4x112xf32>,
    %42 = vector.extract_strided_slice %19 {offsets = [0, 11], sizes = [4, 112], strides = [1, 1]} : vector<4x128xf32> to vector<4x112xf32>
    %c44 = arith.constant 44 : index
    %c0_26 = arith.constant 0 : index
    %43 = vector.load %arg20[%c44, %c0_26] : memref<64x112xf32, #tpu.memory_space<vmem>>, vector<4x112xf32>
    tpu.vector_store %arg20[%c44, %c0_26], %42 {strides = array<i32>} : memref<64x112xf32, #tpu.memory_space<vmem>>, vector<4x112xf32>,
    %44 = vector.extract_strided_slice %19 {offsets = [0, 12], sizes = [4, 112], strides = [1, 1]} : vector<4x128xf32> to vector<4x112xf32>
    %c48 = arith.constant 48 : index
    %c0_27 = arith.constant 0 : index
    %45 = vector.load %arg20[%c48, %c0_27] : memref<64x112xf32, #tpu.memory_space<vmem>>, vector<4x112xf32>
    tpu.vector_store %arg20[%c48, %c0_27], %44 {strides = array<i32>} : memref<64x112xf32, #tpu.memory_space<vmem>>, vector<4x112xf32>,
    %46 = vector.extract_strided_slice %19 {offsets = [0, 13], sizes = [4, 112], strides = [1, 1]} : vector<4x128xf32> to vector<4x112xf32>
    %c52 = arith.constant 52 : index
    %c0_28 = arith.constant 0 : index
    %47 = vector.load %arg20[%c52, %c0_28] : memref<64x112xf32, #tpu.memory_space<vmem>>, vector<4x112xf32>
    tpu.vector_store %arg20[%c52, %c0_28], %46 {strides = array<i32>} : memref<64x112xf32, #tpu.memory_space<vmem>>, vector<4x112xf32>,
    %48 = vector.extract_strided_slice %19 {offsets = [0, 14], sizes = [4, 112], strides = [1, 1]} : vector<4x128xf32> to vector<4x112xf32>
    %c56 = arith.constant 56 : index
    %c0_29 = arith.constant 0 : index
    %49 = vector.load %arg20[%c56, %c0_29] : memref<64x112xf32, #tpu.memory_space<vmem>>, vector<4x112xf32>
    tpu.vector_store %arg20[%c56, %c0_29], %48 {strides = array<i32>} : memref<64x112xf32, #tpu.memory_space<vmem>>, vector<4x112xf32>,
    %50 = vector.extract_strided_slice %19 {offsets = [0, 15], sizes = [4, 112], strides = [1, 1]} : vector<4x128xf32> to vector<4x112xf32>
    %c60 = arith.constant 60 : index
    %c0_30 = arith.constant 0 : index
    %51 = vector.load %arg20[%c60, %c0_30] : memref<64x112xf32, #tpu.memory_space<vmem>>, vector<4x112xf32>
    tpu.vector_store %arg20[%c60, %c0_30], %50 {strides = array<i32>} : memref<64x112xf32, #tpu.memory_space<vmem>>, vector<4x112xf32>,
    %c0_31 = arith.constant 0 : index
    %c0_32 = arith.constant 0 : index
    %52 = vector.load %arg20[%c0_31, %c0_32] : memref<64x112xf32, #tpu.memory_space<vmem>>, vector<64x112xf32>
    %c0_33 = arith.constant 0 : index
    %c0_34 = arith.constant 0 : index
    %53 = vector.load %arg5[%c0_33, %c0_34] : memref<64x128xf32, #tpu.memory_space<vmem>>, vector<64x128xf32>
    %cst_35 = arith.constant dense<0.000000e+00> : vector<112x128xf32>
    %54 = tpu.matmul %52, %53, %cst_35 {dimension_numbers = #tpu.dot_dimension_numbers<[0], [0], [1], [1], [0, 1, 1, 1], [], []>} : vector<64x112xf32>, vector<64x128xf32>, vector<112x128xf32> -> vector<112x128xf32>
    %c0_36 = arith.constant 0 : index
    %c0_37 = arith.constant 0 : index
    %55 = vector.load %arg6[%c0_36, %c0_37] : memref<1x128xf32, #tpu.memory_space<vmem>>, vector<1x128xf32>
    %56 = vector.broadcast %55 : vector<1x128xf32> to vector<112x128xf32>
    %57 = arith.addf %54, %56 : vector<112x128xf32>
    %cst_38 = arith.constant 0.000000e+00 : f32
    %58 = vector.broadcast %cst_38 : f32 to vector<112x128xf32>
    %59 = arith.cmpf ogt, %57, %58 : vector<112x128xf32>
    %cst_39 = arith.constant 0.000000e+00 : f32
    %60 = vector.broadcast %cst_39 : f32 to vector<112x128xf32>
    %61 = arith.minimumf %57, %60 : vector<112x128xf32>
    %62 = math.exp %61 : vector<112x128xf32>
    %cst_40 = arith.constant 1.000000e+00 : f32
    %63 = vector.broadcast %cst_40 : f32 to vector<112x128xf32>
    %64 = arith.subf %62, %63 : vector<112x128xf32>
    %65 = arith.select %59, %57, %64 : vector<112x128xi1>, vector<112x128xf32>
    %c0_41 = arith.constant 0 : index
    %c0_42 = arith.constant 0 : index
    %66 = vector.load %arg7[%c0_41, %c0_42] : memref<1x128xf32, #tpu.memory_space<vmem>>, vector<1x128xf32>
    %67 = vector.broadcast %66 : vector<1x128xf32> to vector<112x128xf32>
    %68 = arith.mulf %65, %67 : vector<112x128xf32>
    %c0_43 = arith.constant 0 : index
    %c0_44 = arith.constant 0 : index
    %69 = vector.load %arg8[%c0_43, %c0_44] : memref<1x128xf32, #tpu.memory_space<vmem>>, vector<1x128xf32>
    %70 = vector.broadcast %69 : vector<1x128xf32> to vector<112x128xf32>
    %71 = arith.addf %68, %70 : vector<112x128xf32>
    %72 = vector.extract_strided_slice %71 {offsets = [0, 0], sizes = [83, 128], strides = [1, 1]} : vector<112x128xf32> to vector<83x128xf32>
    %73 = vector.extract_strided_slice %71 {offsets = [1, 0], sizes = [83, 128], strides = [1, 1]} : vector<112x128xf32> to vector<83x128xf32>
    %74 = arith.maximumf %72, %73 : vector<83x128xf32>
    %75 = vector.extract_strided_slice %71 {offsets = [2, 0], sizes = [83, 128], strides = [1, 1]} : vector<112x128xf32> to vector<83x128xf32>
    %76 = vector.extract_strided_slice %71 {offsets = [3, 0], sizes = [83, 128], strides = [1, 1]} : vector<112x128xf32> to vector<83x128xf32>
    %77 = arith.maximumf %75, %76 : vector<83x128xf32>
    %78 = arith.maximumf %74, %77 : vector<83x128xf32>
    %c0_45 = arith.constant 0 : index
    %c0_46 = arith.constant 0 : index
    %79 = vector.load %arg21[%c0_45, %c0_46] : memref<83x128xf32, #tpu.memory_space<vmem>>, vector<83x128xf32>
    tpu.vector_store %arg21[%c0_45, %c0_46], %78 {strides = array<i32>} : memref<83x128xf32, #tpu.memory_space<vmem>>, vector<83x128xf32>,
    %c0_47 = arith.constant 0 : index
    %c0_48 = arith.constant 0 : index
    %80 = tpu.strided_load %arg21[%c0_47, %c0_48] {strides = array<i32: 2, 1>} : memref<83x128xf32, #tpu.memory_space<vmem>>, vector<42x128xf32>
    %c0_49 = arith.constant 0 : index
    %c0_50 = arith.constant 0 : index
    %81 = vector.load %arg9[%c0_49, %c0_50] : memref<42x42xf32, #tpu.memory_space<vmem>>, vector<42x42xf32>
    %cst_51 = arith.constant dense<0.000000e+00> : vector<42x128xf32>
    %82 = tpu.matmul %81, %80, %cst_51 {dimension_numbers = #tpu.dot_dimension_numbers<[1], [0], [0], [1], [0, 0, 1, 1], [], []>} : vector<42x42xf32>, vector<42x128xf32>, vector<42x128xf32> -> vector<42x128xf32>
    %c0_52 = arith.constant 0 : index
    %c0_53 = arith.constant 0 : index
    %83 = vector.load %arg10[%c0_52, %c0_53] : memref<42x42xf32, #tpu.memory_space<vmem>>, vector<42x42xf32>
    %cst_54 = arith.constant dense<0.000000e+00> : vector<42x128xf32>
    %84 = tpu.matmul %83, %80, %cst_54 {dimension_numbers = #tpu.dot_dimension_numbers<[1], [0], [0], [1], [0, 0, 1, 1], [], []>} : vector<42x42xf32>, vector<42x128xf32>, vector<42x128xf32> -> vector<42x128xf32>
    %c0_55 = arith.constant 0 : index
    %c0_56 = arith.constant 0 : index
    %85 = vector.load %arg11[%c0_55, %c0_56] : memref<42x42xf32, #tpu.memory_space<vmem>>, vector<42x42xf32>
    %cst_57 = arith.constant dense<0.000000e+00> : vector<42x128xf32>
    %86 = tpu.matmul %85, %80, %cst_57 {dimension_numbers = #tpu.dot_dimension_numbers<[1], [0], [0], [1], [0, 0, 1, 1], [], []>} : vector<42x42xf32>, vector<42x128xf32>, vector<42x128xf32> -> vector<42x128xf32>
    %cst_58 = arith.constant dense<0.000000e+00> : vector<128x128xf32>
    %87 = tpu.matmul %82, %84, %cst_58 {dimension_numbers = #tpu.dot_dimension_numbers<[0], [0], [1], [1], [0, 1, 1, 1], [], []>} : vector<42x128xf32>, vector<42x128xf32>, vector<128x128xf32> -> vector<128x128xf32>
    %cst_59 = arith.constant dense<0xFF800000> : vector<128xf32>
    %88 = vector.multi_reduction <maximumf>, %87, %cst_59 [1] : vector<128x128xf32> to vector<128xf32>
    %89 = vector.shape_cast %88 : vector<128xf32> to vector<128x1xf32>
    %90 = vector.broadcast %89 : vector<128x1xf32> to vector<128x128xf32>
    %91 = arith.subf %87, %90 : vector<128x128xf32>
    %92 = math.exp %91 : vector<128x128xf32>
    %cst_60 = arith.constant dense<0.000000e+00> : vector<128xf32>
    %93 = vector.multi_reduction <add>, %92, %cst_60 [1] : vector<128x128xf32> to vector<128xf32>
    %94 = vector.shape_cast %93 : vector<128xf32> to vector<128x1xf32>
    %95 = tpu.reciprocal %94 {approx = true} : vector<128x1xf32> -> vector<128x1xf32>
    %96 = vector.broadcast %95 : vector<128x1xf32> to vector<128x128xf32>
    %97 = arith.mulf %92, %96 : vector<128x128xf32>
    %cst_61 = arith.constant dense<0.000000e+00> : vector<42x128xf32>
    %98 = tpu.matmul %86, %97, %cst_61 {dimension_numbers = #tpu.dot_dimension_numbers<[1], [1], [0], [0], [0, 0, 1, 0], [], []>} : vector<42x128xf32>, vector<128x128xf32>, vector<42x128xf32> -> vector<42x128xf32>
    %c0_62 = arith.constant 0 : index
    %c0_63 = arith.constant 0 : index
    %99 = vector.load %arg14[%c0_62, %c0_63] : memref<1x128xf32, #tpu.memory_space<vmem>>, vector<1x128xf32>
    %100 = vector.broadcast %99 : vector<1x128xf32> to vector<42x128xf32>
    %101 = arith.mulf %98, %100 : vector<42x128xf32>
    %c0_64 = arith.constant 0 : index
    %c0_65 = arith.constant 0 : index
    %102 = vector.load %arg15[%c0_64, %c0_65] : memref<1x128xf32, #tpu.memory_space<vmem>>, vector<1x128xf32>
    %103 = vector.broadcast %102 : vector<1x128xf32> to vector<42x128xf32>
    %104 = arith.addf %101, %103 : vector<42x128xf32>
    %cst_66 = arith.constant 0.000000e+00 : f32
    %105 = vector.broadcast %cst_66 : f32 to vector<42x128xf32>
    %106 = arith.cmpf ogt, %104, %105 : vector<42x128xf32>
    %cst_67 = arith.constant 0.000000e+00 : f32
    %107 = vector.broadcast %cst_67 : f32 to vector<42x128xf32>
    %108 = arith.minimumf %104, %107 : vector<42x128xf32>
    %109 = math.exp %108 : vector<42x128xf32>
    %cst_68 = arith.constant 1.000000e+00 : f32
    %110 = vector.broadcast %cst_68 : f32 to vector<42x128xf32>
    %111 = arith.subf %109, %110 : vector<42x128xf32>
    %112 = arith.select %106, %104, %111 : vector<42x128xi1>, vector<42x128xf32>
    %c0_69 = arith.constant 0 : index
    %c0_70 = arith.constant 0 : index
    %113 = vector.load %arg22[%c0_69, %c0_70] : memref<84x128xf32, #tpu.memory_space<vmem>>, vector<42x128xf32>
    tpu.vector_store %arg22[%c0_69, %c0_70], %112 {strides = array<i32>} : memref<84x128xf32, #tpu.memory_space<vmem>>, vector<42x128xf32>,
    %c0_71 = arith.constant 0 : index
    %c0_72 = arith.constant 0 : index
    %114 = vector.load %arg14[%c0_71, %c0_72] : memref<1x128xf32, #tpu.memory_space<vmem>>, vector<1x128xf32>
    %115 = vector.broadcast %114 : vector<1x128xf32> to vector<42x128xf32>
    %116 = arith.mulf %80, %115 : vector<42x128xf32>
    %c0_73 = arith.constant 0 : index
    %c0_74 = arith.constant 0 : index
    %117 = vector.load %arg15[%c0_73, %c0_74] : memref<1x128xf32, #tpu.memory_space<vmem>>, vector<1x128xf32>
    %118 = vector.broadcast %117 : vector<1x128xf32> to vector<42x128xf32>
    %119 = arith.addf %116, %118 : vector<42x128xf32>
    %cst_75 = arith.constant 0.000000e+00 : f32
    %120 = vector.broadcast %cst_75 : f32 to vector<42x128xf32>
    %121 = arith.cmpf ogt, %119, %120 : vector<42x128xf32>
    %cst_76 = arith.constant 0.000000e+00 : f32
    %122 = vector.broadcast %cst_76 : f32 to vector<42x128xf32>
    %123 = arith.minimumf %119, %122 : vector<42x128xf32>
    %124 = math.exp %123 : vector<42x128xf32>
    %cst_77 = arith.constant 1.000000e+00 : f32
    %125 = vector.broadcast %cst_77 : f32 to vector<42x128xf32>
    %126 = arith.subf %124, %125 : vector<42x128xf32>
    %127 = arith.select %121, %119, %126 : vector<42x128xi1>, vector<42x128xf32>
    %c42 = arith.constant 42 : index
    %c0_78 = arith.constant 0 : index
    %128 = vector.load %arg22[%c42, %c0_78] : memref<84x128xf32, #tpu.memory_space<vmem>>, vector<42x128xf32>
    tpu.vector_store %arg22[%c42, %c0_78], %127 {strides = array<i32>} : memref<84x128xf32, #tpu.memory_space<vmem>>, vector<42x128xf32>,
    %c0_79 = arith.constant 0 : index
    %c0_80 = arith.constant 0 : index
    %129 = vector.load %arg22[%c0_79, %c0_80] : memref<84x128xf32, #tpu.memory_space<vmem>>, vector<82x128xf32>
    %c1 = arith.constant 1 : index
    %c0_81 = arith.constant 0 : index
    %130 = vector.load %arg22[%c1, %c0_81] : memref<84x128xf32, #tpu.memory_space<vmem>>, vector<82x128xf32>
    %c2 = arith.constant 2 : index
    %c0_82 = arith.constant 0 : index
    %131 = vector.load %arg22[%c2, %c0_82] : memref<84x128xf32, #tpu.memory_space<vmem>>, vector<82x128xf32>
    %132 = tpu.concatenate %129, %130, %131 in 1 : vector<82x128xf32>, vector<82x128xf32>, vector<82x128xf32> -> vector<82x384xf32>
    %c0_83 = arith.constant 0 : index
    %c0_84 = arith.constant 0 : index
    %133 = vector.load %arg12[%c0_83, %c0_84] : memref<384x128xf32, #tpu.memory_space<vmem>>, vector<384x128xf32>
    %cst_85 = arith.constant dense<0.000000e+00> : vector<82x128xf32>
    %134 = tpu.matmul %132, %133, %cst_85 {dimension_numbers = #tpu.dot_dimension_numbers<[1], [0], [0], [1], [0, 0, 1, 1], [], []>} : vector<82x384xf32>, vector<384x128xf32>, vector<82x128xf32> -> vector<82x128xf32>
    %c0_86 = arith.constant 0 : index
    %c0_87 = arith.constant 0 : index
    %135 = vector.load %arg13[%c0_86, %c0_87] : memref<1x128xf32, #tpu.memory_space<vmem>>, vector<1x128xf32>
    %136 = vector.broadcast %135 : vector<1x128xf32> to vector<82x128xf32>
    %137 = arith.addf %134, %136 : vector<82x128xf32>
    %138 = vector.extract_strided_slice %137 {offsets = [0, 0], sizes = [40, 128], strides = [1, 1]} : vector<82x128xf32> to vector<40x128xf32>
    %cst_88 = arith.constant dense<0xFF800000> : vector<128xf32>
    %139 = vector.multi_reduction <maximumf>, %138, %cst_88 [0] : vector<40x128xf32> to vector<128xf32>
    %140 = vector.shape_cast %139 : vector<128xf32> to vector<1x128xf32>
    %141 = vector.extract_strided_slice %137 {offsets = [42, 0], sizes = [40, 128], strides = [1, 1]} : vector<82x128xf32> to vector<40x128xf32>
    %cst_89 = arith.constant dense<0xFF800000> : vector<128xf32>
    %142 = vector.multi_reduction <maximumf>, %141, %cst_89 [0] : vector<40x128xf32> to vector<128xf32>
    %143 = vector.shape_cast %142 : vector<128xf32> to vector<1x128xf32>
    %c0_90 = arith.constant 0 : index
    %c0_91 = arith.constant 0 : index
    %144 = vector.load %arg16[%c0_90, %c0_91] : memref<1x128xf32, #tpu.memory_space<vmem>>, vector<1x128xf32>
    %145 = arith.mulf %140, %144 : vector<1x128xf32>
    %cst_92 = arith.constant dense<0.000000e+00> : vector<1xf32>
    %146 = vector.multi_reduction <add>, %145, %cst_92 [1] : vector<1x128xf32> to vector<1xf32>
    %147 = vector.shape_cast %146 : vector<1xf32> to vector<1x1xf32>
    %c0_93 = arith.constant 0 : index
    %c0_94 = arith.constant 0 : index
    %148 = vector.load %arg17[%c0_93, %c0_94] : memref<1x1xf32, #tpu.memory_space<vmem>>, vector<1x1xf32>
    %149 = arith.addf %147, %148 : vector<1x1xf32>
    %c0_95 = arith.constant 0 : index
    %c0_96 = arith.constant 0 : index
    %150 = vector.load %arg16[%c0_95, %c0_96] : memref<1x128xf32, #tpu.memory_space<vmem>>, vector<1x128xf32>
    %151 = arith.mulf %143, %150 : vector<1x128xf32>
    %cst_97 = arith.constant dense<0.000000e+00> : vector<1xf32>
    %152 = vector.multi_reduction <add>, %151, %cst_97 [1] : vector<1x128xf32> to vector<1xf32>
    %153 = vector.shape_cast %152 : vector<1xf32> to vector<1x1xf32>
    %c0_98 = arith.constant 0 : index
    %c0_99 = arith.constant 0 : index
    %154 = vector.load %arg17[%c0_98, %c0_99] : memref<1x1xf32, #tpu.memory_space<vmem>>, vector<1x1xf32>
    %155 = arith.addf %153, %154 : vector<1x1xf32>
    %cst_100 = arith.constant 0.000000e+00 : f32
    %156 = vector.broadcast %cst_100 : f32 to vector<1x1xf32>
    %157 = arith.subf %156, %149 : vector<1x1xf32>
    %158 = math.exp %157 : vector<1x1xf32>
    %cst_101 = arith.constant 1.000000e+00 : f32
    %159 = vector.broadcast %cst_101 : f32 to vector<1x1xf32>
    %160 = arith.addf %159, %158 : vector<1x1xf32>
    %cst_102 = arith.constant 1.000000e+00 : f32
    %161 = vector.broadcast %cst_102 : f32 to vector<1x1xf32>
    %162 = arith.divf %161, %160 : vector<1x1xf32>
    %c0_103 = arith.constant 0 : index
    %c0_104 = arith.constant 0 : index
    %c0_105 = arith.constant 0 : index
    %163 = vector.load %arg18[%c0_103, %c0_104, %c0_105] : memref<1x1x1xf32, #tpu.memory_space<vmem>>, vector<1x1x1xf32>
    %164 = vector.shape_cast %163 : vector<1x1x1xf32> to vector<1x1xf32>
    %165 = vector.shape_cast %162 : vector<1x1xf32> to vector<1x1x1xf32>
    tpu.vector_store %arg18[%c0_103, %c0_104, %c0_105], %165 {strides = array<i32>} : memref<1x1x1xf32, #tpu.memory_space<vmem>>, vector<1x1x1xf32>,
    %cst_106 = arith.constant 0.000000e+00 : f32
    %166 = vector.broadcast %cst_106 : f32 to vector<1x1xf32>
    %167 = arith.subf %166, %155 : vector<1x1xf32>
    %168 = math.exp %167 : vector<1x1xf32>
    %cst_107 = arith.constant 1.000000e+00 : f32
    %169 = vector.broadcast %cst_107 : f32 to vector<1x1xf32>
    %170 = arith.addf %169, %168 : vector<1x1xf32>
    %cst_108 = arith.constant 1.000000e+00 : f32
    %171 = vector.broadcast %cst_108 : f32 to vector<1x1xf32>
    %172 = arith.divf %171, %170 : vector<1x1xf32>
    %c0_109 = arith.constant 0 : index
    %c0_110 = arith.constant 0 : index
    %c0_111 = arith.constant 0 : index
    %173 = vector.load %arg19[%c0_109, %c0_110, %c0_111] : memref<1x1x1xf32, #tpu.memory_space<vmem>>, vector<1x1x1xf32>
    %174 = vector.shape_cast %173 : vector<1x1x1xf32> to vector<1x1xf32>
    %175 = vector.shape_cast %172 : vector<1x1xf32> to vector<1x1x1xf32>
    tpu.vector_store %arg19[%c0_109, %c0_110, %c0_111], %175 {strides = array<i32>} : memref<1x1x1xf32, #tpu.memory_space<vmem>>, vector<1x1x1xf32>,
    return
  }
  func.func @transform_0(%arg0: i32) -> (i32, i32, i32) {
    %c0_i32 = arith.constant 0 : i32
    %c0_i32_0 = arith.constant 0 : i32
    %c0_i32_1 = arith.constant 0 : i32
    return %arg0, %c0_i32, %c0_i32_0 : i32, i32, i32
  }
  func.func @transform_1(%arg0: i32) -> (i32, i32) {
    %c0_i32 = arith.constant 0 : i32
    %c0_i32_0 = arith.constant 0 : i32
    %c0_i32_1 = arith.constant 0 : i32
    return %c0_i32, %c0_i32_0 : i32, i32
  }
  func.func @transform_2(%arg0: i32) -> (i32, i32) {
    %c0_i32 = arith.constant 0 : i32
    %c0_i32_0 = arith.constant 0 : i32
    %c0_i32_1 = arith.constant 0 : i32
    return %c0_i32, %c0_i32_0 : i32, i32
  }
  func.func @transform_3(%arg0: i32) -> (i32, i32) {
    %c0_i32 = arith.constant 0 : i32
    %c0_i32_0 = arith.constant 0 : i32
    %c0_i32_1 = arith.constant 0 : i32
    return %c0_i32, %c0_i32_0 : i32, i32
  }
  func.func @transform_4(%arg0: i32) -> (i32, i32) {
    %c0_i32 = arith.constant 0 : i32
    %c0_i32_0 = arith.constant 0 : i32
    %c0_i32_1 = arith.constant 0 : i32
    return %c0_i32, %c0_i32_0 : i32, i32
  }
  func.func @transform_5(%arg0: i32) -> (i32, i32) {
    %c0_i32 = arith.constant 0 : i32
    %c0_i32_0 = arith.constant 0 : i32
    %c0_i32_1 = arith.constant 0 : i32
    return %c0_i32, %c0_i32_0 : i32, i32
  }
  func.func @transform_6(%arg0: i32) -> (i32, i32) {
    %c0_i32 = arith.constant 0 : i32
    %c0_i32_0 = arith.constant 0 : i32
    %c0_i32_1 = arith.constant 0 : i32
    return %c0_i32, %c0_i32_0 : i32, i32
  }
  func.func @transform_7(%arg0: i32) -> (i32, i32) {
    %c0_i32 = arith.constant 0 : i32
    %c0_i32_0 = arith.constant 0 : i32
    %c0_i32_1 = arith.constant 0 : i32
    return %c0_i32, %c0_i32_0 : i32, i32
  }
  func.func @transform_8(%arg0: i32) -> (i32, i32) {
    %c0_i32 = arith.constant 0 : i32
    %c0_i32_0 = arith.constant 0 : i32
    %c0_i32_1 = arith.constant 0 : i32
    return %c0_i32, %c0_i32_0 : i32, i32
  }
  func.func @transform_9(%arg0: i32) -> (i32, i32) {
    %c0_i32 = arith.constant 0 : i32
    %c0_i32_0 = arith.constant 0 : i32
    %c0_i32_1 = arith.constant 0 : i32
    return %c0_i32, %c0_i32_0 : i32, i32
  }
  func.func @transform_10(%arg0: i32) -> (i32, i32) {
    %c0_i32 = arith.constant 0 : i32
    %c0_i32_0 = arith.constant 0 : i32
    %c0_i32_1 = arith.constant 0 : i32
    return %c0_i32, %c0_i32_0 : i32, i32
  }
  func.func @transform_11(%arg0: i32) -> (i32, i32) {
    %c0_i32 = arith.constant 0 : i32
    %c0_i32_0 = arith.constant 0 : i32
    %c0_i32_1 = arith.constant 0 : i32
    return %c0_i32, %c0_i32_0 : i32, i32
  }
  func.func @transform_12(%arg0: i32) -> (i32, i32) {
    %c0_i32 = arith.constant 0 : i32
    %c0_i32_0 = arith.constant 0 : i32
    %c0_i32_1 = arith.constant 0 : i32
    return %c0_i32, %c0_i32_0 : i32, i32
  }
  func.func @transform_13(%arg0: i32) -> (i32, i32) {
    %c0_i32 = arith.constant 0 : i32
    %c0_i32_0 = arith.constant 0 : i32
    %c0_i32_1 = arith.constant 0 : i32
    return %c0_i32, %c0_i32_0 : i32, i32
  }
  func.func @transform_14(%arg0: i32) -> (i32, i32) {
    %c0_i32 = arith.constant 0 : i32
    %c0_i32_0 = arith.constant 0 : i32
    %c0_i32_1 = arith.constant 0 : i32
    return %c0_i32, %c0_i32_0 : i32, i32
  }
  func.func @transform_15(%arg0: i32) -> (i32, i32) {
    %c0_i32 = arith.constant 0 : i32
    %c0_i32_0 = arith.constant 0 : i32
    %c0_i32_1 = arith.constant 0 : i32
    return %c0_i32, %c0_i32_0 : i32, i32
  }
  func.func @transform_16(%arg0: i32) -> (i32, i32) {
    %c0_i32 = arith.constant 0 : i32
    %c0_i32_0 = arith.constant 0 : i32
    %c0_i32_1 = arith.constant 0 : i32
    return %c0_i32, %c0_i32_0 : i32, i32
  }
  func.func @transform_17(%arg0: i32) -> (i32, i32, i32) {
    %c0_i32 = arith.constant 0 : i32
    %c0_i32_0 = arith.constant 0 : i32
    %c0_i32_1 = arith.constant 0 : i32
    return %arg0, %c0_i32, %c0_i32_0 : i32, i32, i32
  }
  func.func @transform_18(%arg0: i32) -> (i32, i32, i32) {
    %c0_i32 = arith.constant 0 : i32
    %c0_i32_0 = arith.constant 0 : i32
    %c0_i32_1 = arith.constant 0 : i32
    return %arg0, %c0_i32, %c0_i32_0 : i32, i32, i32
  }
}

</mosaic_0001>

<bundles_post_ra>
// kernel: dsac_forward.1
= control target key start
LH: loop header
LB: loop body
LE: loop exit
PB: predicated region body
PF: predicated region fallthrough
CT: control target
= control target key end

     0   :  { %s5512_s0 = inlined_call_operand.vmem [shape: f32[2,4,128], index: 0, kind: input, shape index: {}]   ;;  %s5513_s1 = inlined_call_operand.hbm [shape: f32[128,128], index: 1, kind: input, shape index: {}]   ;;  %s5514_s2 = inlined_call_operand.hbm [shape: f32[128,128], index: 2, kind: input, shape index: {}]   ;;  %s5515_s3 = inlined_call_operand.hbm [shape: f32[128,128], index: 3, kind: input, shape index: {}]   ;;  %s5516_s4 = inlined_call_operand.hbm [shape: f32[64,128], index: 4, kind: input, shape index: {}]   ;;  %s5517_s5 = inlined_call_operand.hbm [shape: f32[1,128], index: 5, kind: input, shape index: {}]   ;;  %s5518_s6 = inlined_call_operand.hbm [shape: f32[1,128], index: 6, kind: input, shape index: {}]   ;;  %s5519_s7 = inlined_call_operand.hbm [shape: f32[1,128], index: 7, kind: input, shape index: {}]   ;;  %s5520_s8 = inlined_call_operand.hbm [shape: f32[42,42], index: 8, kind: input, shape index: {}]   ;;  %s5521_s9 = inlined_call_operand.hbm [shape: f32[42,42], index: 9, kind: input, shape index: {}]   ;;  %s5522_s10 = inlined_call_operand.vmem [shape: f32[42,42], index: 10, kind: input, shape index: {}]   ;;  %s5523_s11 = inlined_call_operand.hbm [shape: f32[384,128], index: 11, kind: input, shape index: {}]   ;;  %s5524_s12 = inlined_call_operand.hbm [shape: f32[1,128], index: 12, kind: input, shape index: {}]   ;;  %s5525_s13 = inlined_call_operand.hbm [shape: f32[1,128], index: 13, kind: input, shape index: {}]   ;;  %s5526_s14 = inlined_call_operand.hbm [shape: f32[1,128], index: 14, kind: input, shape index: {}]   ;;  %s5527_s15 = inlined_call_operand.hbm [shape: f32[1,128], index: 15, kind: input, shape index: {}]   ;;  %s5528_s16 = inlined_call_operand.<no memory space> [shape: f32[1,1], index: 16, kind: input, shape index: {}]   ;;  %s5529_s17 = inlined_call_operand.vmem [shape: f32[2,1,1], index: 17, kind: output, shape index: {0}]   ;;  %s5530_s18 = inlined_call_operand.vmem [shape: f32[2,1,1], index: 18, kind: output, shape index: {1}]  }
   0x1   :  { %5535 = sst [smem:[#allocation36_spill]] %s5512_s0  ;;  %v24_v0 = vstv %s5528_s16 }
   0x2   :  { %5536 = sst [smem:[#allocation37_spill]] %s5513_s1  ;;  %25 = vst [vmem:[#allocation5] sm:$0x1] %v24_v0 }
   0x3   :  { %5537 = sst [smem:[#allocation38_spill]] %s5514_s2 }
   0x4   :  { %26 = vsyncpa [#allocation7], 0 }
   0x5   :  { %27 = vsyncpa [#allocation9], 0 }
   0x6   :  { %28 = vsyncpa [#allocation12], 0 }
   0x7   :  { %29 = vsyncpa [#allocation15], 0 }
   0x8   :  { %30 = vsyncpa [#allocation18], 0 }
   0x9   :  { %31 = vsyncpa [#allocation21], 0 }
   0xa   :  { %32 = vsyncpa [#allocation24], 0 }
   0xb   :  { %33 = vsyncpa [#allocation27], 0  ;;  %s4823_s29 = smov 0  }
   0xc LB: > { %s4829_s16 = sadd.s32 4294967295, %s4690_s29   ;;  %p3271_p0 = scmp.ge.s32.totalorder %s4690_s29, 1  ;;  %s4690_s29 = sphi %s4823_s29, %s39_s29  }
   0xd   : > { %p458_p1 = scmp.lt.s32.totalorder %s4690_s29, 3  ;;  %p5533_p2 = scmp.eq.s32.totalorder %s4829_s16, 0 }
   0xe   : > { %s4692_s0 = smov [#allocation8]   ;;  %s4693_s1 = smov [#allocation11]  }
   0xf   : > { %p4834_p3 = pnand %p3271_p0, %p458_p1  ;;  %s483_s19 = sshll.u32 %s4692_s0, 4  ;;  %s484_s19 = int_to_ptr.vmem [resolvable:$true] %s483_s19 }
  0x10   : > { %s509_s20 = sshll.u32 %s4693_s1, 4  ;;  %s4694_s22 = smov [#allocation14]   ;;  %s4840_s20 = int_to_ptr.vmem [resolvable:$true] %s509_s20 }
  0x11   : > { %p4052_p4 = pneg %p4834_p3  ;;  %s534_s2 = sshll.u32 %s4694_s22, 4  ;;  %s4848_s2 = int_to_ptr.vmem [resolvable:$true] %s534_s2 }
  0x12   : > { %s4695_s23 = smov [#allocation17]   ;;  %s4299_s26 = scalar_lea.vmem %s484_s19, 2048 }
  0x13   : > { %p4844_p5 = pnand %p5533_p2, %p4052_p4  ;;  %s4850_s24 = sshll.u32 %s4695_s23, 4  ;;  %s556_s24 = int_to_ptr.vmem [resolvable:$true] %s4850_s24 }
  0x14   : > { %p4300_p7 = scmp.ne.s32.totalorder %s484_s19, %s4299_s26  ;;  %p4307_p10 = scmp.lt.s32.totalorder %s484_s19, %s484_s19 }
  0x15   : > { %p4854_p6 = pneg %p4844_p5  ;;  %p4308_p11 = scmp.lt.s32.totalorder %s4299_s26, %s4299_s26 }
  0x17   : > { %p4302_p8 = pnand %p4300_p7, %p4854_p6  ;;  %p4309_p12 = por %p4308_p11, %p4307_p10 }
  0x19   : > { %p4303_p9 = pneg %p4302_p8 }
  0x1b   : > { %p4310_p13 = pnand %p4309_p12, %p4303_p9 }
  0x1d   : > { %4313 = shalt.err (!%p4310_p13)
}
  0x1e   : > { %s5531_s27 = smov 128   ;;  %s5534_s28 = smov 8  }
  0x1f   : > { %s5541_s22 = sld [smem:[#allocation38_spill]]  ;;  %s4325_s23 = scalar_lea.vmem %s4840_s20, 1024 }
  0x20   : > { %p4326_p0 = scmp.ne.s32.totalorder %s4840_s20, %s4325_s23  ;;  %p4333_p7 = scmp.lt.s32.totalorder %s4840_s20, %s4840_s20 }
  0x21   : > { %p4334_p8 = scmp.lt.s32.totalorder %s4325_s23, %s4325_s23 }
  0x22   : > { %p4328_p1 = pnand %p4326_p0, %p4854_p6 }
  0x23   : > { %p4335_p9 = por %p4334_p8, %p4333_p7 }
  0x24   : > { %p4329_p4 = pneg %p4328_p1 }
  0x25   : > { %4058 = dma.hbm_to_vmem [thread:$0]  (!%p4844_p5), %s5541_s22, 2048, %s484_s19, [#allocation9], %s5531_s27, %s5531_s27, %s5534_s28  }
  0x26   : > { %p4336_p10 = pnand %p4335_p9, %p4329_p4 }
  0x28   : > { %4339 = shalt.err (!%p4336_p10)
}
  0x29   : > { %4064 = dma.hbm_to_vmem [thread:$0]  (!%p4844_p5), %s5516_s4, 1024, %s4840_s20, [#allocation12], %s5531_s27, %s5531_s27, %s5534_s28  }
  0x2a   : > { %s4351_s19 = scalar_lea.vmem %s4848_s2, 16  ;;  %s4358_s1 = scalar_lea.vmem %s4848_s2, 32 }
  0x2b   : > { %p4352_p11 = scmp.ne.s32.totalorder %s4848_s2, %s4351_s19  ;;  %p4359_p0 = scmp.lt.s32.totalorder %s4848_s2, %s4848_s2 }
  0x2c   : > { %p4360_p1 = scmp.lt.s32.totalorder %s4358_s1, %s4351_s19 }
  0x2d   : > { %p4354_p12 = pnand %p4352_p11, %p4854_p6 }
  0x2e   : > { %p4361_p4 = por %p4360_p1, %p4359_p0 }
  0x2f   : > { %p4355_p13 = pneg %p4354_p12 }
  0x31   : > { %p4362_p7 = pnand %p4361_p4, %p4355_p13 }
  0x33   : > { %4365 = shalt.err (!%p4362_p7)
}
  0x34   : > { %4070 = dma.hbm_to_vmem [thread:$0]  (!%p4844_p5), %s5518_s6, 16, %s4848_s2, [#allocation15]  }
  0x35   : > { %s4377_s20 = scalar_lea.vmem %s556_s24, 768  ;;  %p4385_p11 = scmp.lt.s32.totalorder %s556_s24, %s556_s24 }
  0x36   : > { %p4378_p8 = scmp.ne.s32.totalorder %s556_s24, %s4377_s20  ;;  %p4386_p12 = scmp.lt.s32.totalorder %s4377_s20, %s4377_s20 }
  0x38   : > { %p4380_p9 = pnand %p4378_p8, %p4854_p6  ;;  %p4387_p0 = por %p4386_p12, %p4385_p11 }
  0x3a   : > { %p4381_p10 = pneg %p4380_p9 }
  0x3c   : > { %p4388_p13 = pnand %p4387_p0, %p4381_p10 }
  0x3e   : > { %4391 = shalt.err (!%p4388_p13)
}
  0x3f   : > { %4076 = dma.hbm_to_vmem [thread:$0]  (!%p4844_p5), %s5520_s8, 768, %s556_s24, [#allocation18], %s5531_s27, %s5531_s27, %s5534_s28  }
  0x40   : > { %s4698_s2 = smov [#allocation20]   ;;  %s4699_s1 = smov [#allocation23]  }
  0x41   : > { %s584_s19 = sshll.u32 %s4698_s2, 4  ;;  %s609_s22 = sshll.u32 %s4699_s1, 4  ;;  %s585_s19 = int_to_ptr.vmem [resolvable:$true] %s584_s19  ;;  %s610_s22 = int_to_ptr.vmem [resolvable:$true] %s609_s22 }
  0x42   : > { %s4403_s23 = scalar_lea.vmem %s585_s19, 6144  ;;  %p4411_p8 = scmp.lt.s32.totalorder %s585_s19, %s585_s19 }
  0x43   : > { %p4404_p1 = scmp.ne.s32.totalorder %s585_s19, %s4403_s23  ;;  %p4412_p9 = scmp.lt.s32.totalorder %s4403_s23, %s4403_s23 }
  0x45   : > { %p4406_p4 = pnand %p4404_p1, %p4854_p6  ;;  %p4413_p10 = por %p4412_p9, %p4411_p8 }
  0x47   : > { %p4407_p7 = pneg %p4406_p4 }
  0x49   : > { %p4414_p11 = pnand %p4413_p10, %p4407_p7 }
  0x4b   : > { %4417 = shalt.err (!%p4414_p11)
}
  0x4c   : > { %4082 = dma.hbm_to_vmem [thread:$0]  (!%p4844_p5), %s5523_s11, 6144, %s585_s19, [#allocation21], %s5531_s27, %s5531_s27, %s5534_s28  }
  0x4d   : > { %s4429_s26 = scalar_lea.vmem %s610_s22, 16  ;;  %s4436_s0 = scalar_lea.vmem %s610_s22, 32 }
  0x4e   : > { %p4430_p12 = scmp.ne.s32.totalorder %s610_s22, %s4429_s26  ;;  %p4437_p1 = scmp.lt.s32.totalorder %s610_s22, %s610_s22 }
  0x4f   : > { %p4438_p4 = scmp.lt.s32.totalorder %s4436_s0, %s4429_s26 }
  0x50   : > { %p4432_p0 = pnand %p4430_p12, %p4854_p6 }
  0x51   : > { %p4439_p7 = por %p4438_p4, %p4437_p1 }
  0x52   : > { %p4433_p13 = pneg %p4432_p0 }
  0x54   : > { %p4440_p8 = pnand %p4439_p7, %p4433_p13 }
  0x56   : > { %4443 = shalt.err (!%p4440_p8)
}
  0x57   : > { %4088 = dma.hbm_to_vmem [thread:$0]  (!%p4844_p5), %s5525_s13, 16, %s610_s22, [#allocation24]  }
  0x58   : > { %s4700_s19 = smov [#allocation6]   ;;  %s4701_s24 = smov [#allocation10]  }
  0x59   : > { %s470_s23 = sshll.u32 %s4700_s19, 4  ;;  %s496_s20 = sshll.u32 %s4701_s24, 4  ;;  %s471_s23 = int_to_ptr.vmem [resolvable:$true] %s470_s23  ;;  %s497_s20 = int_to_ptr.vmem [resolvable:$true] %s496_s20 }
  0x5a   : > { %s4455_s27 = scalar_lea.vmem %s471_s23, 2048  ;;  %p4463_p12 = scmp.lt.s32.totalorder %s471_s23, %s471_s23 }
  0x5b   : > { %p4456_p9 = scmp.ne.s32.totalorder %s471_s23, %s4455_s27  ;;  %p4464_p0 = scmp.lt.s32.totalorder %s4455_s27, %s4455_s27 }
  0x5d   : > { %p4458_p10 = pnand %p4456_p9, %p4854_p6  ;;  %p4465_p13 = por %p4464_p0, %p4463_p12 }
  0x5f   : > { %p4459_p11 = pneg %p4458_p10 }
  0x61   : > { %p4466_p1 = pnand %p4465_p13, %p4459_p11 }
  0x63   : > { %4469 = shalt.err (!%p4466_p1)
}
  0x64   : > { %s5542_s26 = smov 128   ;;  %s5543_s2 = sld [smem:[#allocation37_spill]] }
  0x65   : > { %s4481_s1 = scalar_lea.vmem %s497_s20, 2048  ;;  %p4489_p9 = scmp.lt.s32.totalorder %s497_s20, %s497_s20 }
  0x66   : > { %p4482_p4 = scmp.ne.s32.totalorder %s497_s20, %s4481_s1  ;;  %p4490_p10 = scmp.lt.s32.totalorder %s4481_s1, %s4481_s1 }
  0x68   : > { %p4484_p7 = pnand %p4482_p4, %p4854_p6  ;;  %p4491_p11 = por %p4490_p10, %p4489_p9 }
  0x6a   : > { %4055 = dma.hbm_to_vmem [thread:$0]  (!%p4844_p5), %s5543_s2, 2048, %s471_s23, [#allocation7], %s5542_s26, %s5542_s26, %s5534_s28  }
  0x6b   : > { %p4485_p8 = pneg %p4484_p7 }
  0x6d   : > { %p4492_p12 = pnand %p4491_p11, %p4485_p8 }
  0x6f   : > { %4495 = shalt.err (!%p4492_p12)
}
  0x70   : > { %4061 = dma.hbm_to_vmem [thread:$0]  (!%p4844_p5), %s5515_s3, 2048, %s497_s20, [#allocation9], %s5542_s26, %s5542_s26, %s5534_s28  }
  0x71   : > { %s4702_s23 = smov [#allocation13]   ;;  %s4703_s22 = smov [#allocation16]  }
  0x72   : > { %s523_s24 = sshll.u32 %s4702_s23, 4  ;;  %s545_s0 = sshll.u32 %s4703_s22, 4  ;;  %s524_s24 = int_to_ptr.vmem [resolvable:$true] %s523_s24  ;;  %s546_s0 = int_to_ptr.vmem [resolvable:$true] %s545_s0 }
  0x73   : > { %s4507_s2 = scalar_lea.vmem %s524_s24, 16  ;;  %s4514_s1 = scalar_lea.vmem %s524_s24, 32 }
  0x74   : > { %p4508_p0 = scmp.ne.s32.totalorder %s524_s24, %s4507_s2  ;;  %p4515_p4 = scmp.lt.s32.totalorder %s524_s24, %s524_s24 }
  0x75   : > { %p4516_p7 = scmp.lt.s32.totalorder %s4514_s1, %s4507_s2 }
  0x76   : > { %p4510_p13 = pnand %p4508_p0, %p4854_p6 }
  0x77   : > { %p4517_p8 = por %p4516_p7, %p4515_p4 }
  0x78   : > { %p4511_p1 = pneg %p4510_p13 }
  0x7a   : > { %p4518_p9 = pnand %p4517_p8, %p4511_p1 }
  0x7c   : > { %4521 = shalt.err (!%p4518_p9)
}
  0x7d   : > { %4067 = dma.hbm_to_vmem [thread:$0]  (!%p4844_p5), %s5517_s5, 16, %s524_s24, [#allocation12]  }
  0x7e   : > { %s4533_s19 = scalar_lea.vmem %s546_s0, 16  ;;  %s4540_s23 = scalar_lea.vmem %s546_s0, 32 }
  0x7f   : > { %p4534_p10 = scmp.ne.s32.totalorder %s546_s0, %s4533_s19  ;;  %p4541_p0 = scmp.lt.s32.totalorder %s546_s0, %s546_s0 }
  0x80   : > { %p4542_p13 = scmp.lt.s32.totalorder %s4540_s23, %s4533_s19 }
  0x81   : > { %p4536_p11 = pnand %p4534_p10, %p4854_p6 }
  0x82   : > { %p4543_p2 = por %p4542_p13, %p4541_p0 }
  0x83   : > { %p4537_p12 = pneg %p4536_p11 }
  0x85   : > { %p4544_p4 = pnand %p4543_p2, %p4537_p12 }
  0x87   : > { %4547 = shalt.err (!%p4544_p4)
}
  0x88   : > { %4073 = dma.hbm_to_vmem [thread:$0]  (!%p4844_p5), %s5519_s7, 16, %s546_s0, [#allocation15]  }
  0x89   : > { %s4704_s24 = smov [#allocation19]   ;;  %s4705_s27 = smov [#allocation22]  }
  0x8a   : > { %s568_s1 = sshll.u32 %s4704_s24, 4  ;;  %s598_s20 = sshll.u32 %s4705_s27, 4  ;;  %s569_s1 = int_to_ptr.vmem [resolvable:$true] %s568_s1  ;;  %s599_s20 = int_to_ptr.vmem [resolvable:$true] %s598_s20 }
  0x8b   : > { %s4559_s28 = scalar_lea.vmem %s569_s1, 768  ;;  %p4567_p9 = scmp.lt.s32.totalorder %s569_s1, %s569_s1 }
  0x8c   : > { %p4560_p1 = scmp.ne.s32.totalorder %s569_s1, %s4559_s28  ;;  %p4568_p2 = scmp.lt.s32.totalorder %s4559_s28, %s4559_s28 }
  0x8e   : > { %p4562_p7 = pnand %p4560_p1, %p4854_p6  ;;  %p4569_p10 = por %p4568_p2, %p4567_p9 }
  0x90   : > { %p4563_p8 = pneg %p4562_p7 }
  0x92   : > { %p4570_p11 = pnand %p4569_p10, %p4563_p8 }
  0x94   : > { %4573 = shalt.err (!%p4570_p11)
}
  0x95   : > { %s5544_s19 = smov 8   ;;  %s4585_s22 = scalar_lea.vmem %s599_s20, 16 }
  0x96   : > { %4079 = dma.hbm_to_vmem [thread:$0]  (!%p4844_p5), %s5521_s9, 768, %s569_s1, [#allocation18], %s5542_s26, %s5542_s26, %s5544_s19  }
  0x97   : > { %p4586_p12 = scmp.ne.s32.totalorder %s599_s20, %s4585_s22  ;;  %s4592_s28 = scalar_lea.vmem %s599_s20, 32 }
  0x98   : > { %p4593_p4 = scmp.lt.s32.totalorder %s599_s20, %s599_s20  ;;  %p4594_p1 = scmp.lt.s32.totalorder %s4592_s28, %s4585_s22 }
  0x99   : > { %p4588_p0 = pnand %p4586_p12, %p4854_p6 }
  0x9a   : > { %p4595_p7 = por %p4594_p1, %p4593_p4 }
  0x9b   : > { %p4589_p13 = pneg %p4588_p0 }
  0x9d   : > { %p4596_p8 = pnand %p4595_p7, %p4589_p13 }
  0x9f   : > { %4599 = shalt.err (!%p4596_p8)
}
  0xa0   : > { %4085 = dma.hbm_to_vmem [thread:$0]  (!%p4844_p5), %s5524_s12, 16, %s599_s20, [#allocation21]  }
  0xa1   : > { %s4706_s26 = smov [#allocation25]   ;;  %s4707_s27 = smov [#allocation26]  }
  0xa2   : > { %s620_s1 = sshll.u32 %s4706_s26, 4  ;;  %s631_s19 = sshll.u32 %s4707_s27, 4  ;;  %s621_s1 = int_to_ptr.vmem [resolvable:$true] %s620_s1  ;;  %s632_s19 = int_to_ptr.vmem [resolvable:$true] %s631_s19 }
  0xa3   : > { %s4611_s0 = scalar_lea.vmem %s621_s1, 16  ;;  %s4618_s23 = scalar_lea.vmem %s621_s1, 32 }
  0xa4   : > { %p4612_p9 = scmp.ne.s32.totalorder %s621_s1, %s4611_s0  ;;  %p4619_p11 = scmp.lt.s32.totalorder %s621_s1, %s621_s1 }
  0xa5   : > { %p4620_p12 = scmp.lt.s32.totalorder %s4618_s23, %s4611_s0 }
  0xa6   : > { %p4614_p2 = pnand %p4612_p9, %p4854_p6 }
  0xa7   : > { %p4621_p0 = por %p4620_p12, %p4619_p11 }
  0xa8   : > { %p4615_p10 = pneg %p4614_p2 }
  0xaa   : > { %p4622_p13 = pnand %p4621_p0, %p4615_p10 }
  0xac   : > { %4625 = shalt.err (!%p4622_p13)
}
  0xad   : > { %4091 = dma.hbm_to_vmem [thread:$0]  (!%p4844_p5), %s5526_s14, 16, %s621_s1, [#allocation24]  }
  0xae   : > { %s4637_s28 = scalar_lea.vmem %s632_s19, 16  ;;  %s4644_s2 = scalar_lea.vmem %s632_s19, 32 }
  0xaf   : > { %p4638_p4 = scmp.ne.s32.totalorder %s632_s19, %s4637_s28  ;;  %p4645_p8 = scmp.lt.s32.totalorder %s632_s19, %s632_s19 }
  0xb0   : > { %p4646_p9 = scmp.lt.s32.totalorder %s4644_s2, %s4637_s28 }
  0xb1   : > { %p4640_p1 = pnand %p4638_p4, %p4854_p6 }
  0xb2   : > { %p4647_p2 = por %p4646_p9, %p4645_p8 }
  0xb3   : > { %p4641_p7 = pneg %p4640_p1 }
  0xb5   : > { %p4648_p11 = pnand %p4647_p2, %p4641_p7 }
  0xb7   : > { %4651 = shalt.err (!%p4648_p11)
}
  0xb8   : > { %4094 = dma.hbm_to_vmem [thread:$0]  (!%p4844_p5), %s5527_s15, 16, %s632_s19, [#allocation27]  }
  0xb9   : > { %654 = sbr.rel (%p4834_p3) target bundleno = 3379 (0xd33), region = 88  ;;  %p5545_p10 = scmp.eq.s32.totalorder (!%p4834_p3), %s4829_s16, 0 }
  0xbe   : > { %4657 = dma.done.wait (%p5545_p10), [#allocation7], 2048   ;;  %p5546_p6 = pmov %p5545_p10 }
  0xc0   : > { %4659 = vsyncadd (%p5546_p6), [#allocation7], 4294965248  ;;  %p5547_p12 = pmov %p5546_p6 }
  0xc1   : > { %p5548_p0 = pmov %p5546_p6 }
  0xc2   : > { %4661 = dma.done.wait (%p5547_p12), [#allocation9], 4096  }
  0xc3   : > { %4663 = vsyncadd (%p5548_p0), [#allocation9], 4294963200  ;;  %p5549_p13 = pmov %p5548_p0 }
  0xc4   : > { %p5550_p5 = pmov %p5548_p0 }
  0xc5   : > { %4665 = dma.done.wait (%p5549_p13), [#allocation12], 1040  }
  0xc6   : > { %4667 = vsyncadd (%p5550_p5), [#allocation12], 4294966256  ;;  %p5551_p3 = pmov %p5548_p0 }
  0xc7   : > { %p5552_p4 = pmov %p5548_p0 }
  0xc8   : > { %4669 = dma.done.wait (%p5551_p3), [#allocation15], 32  }
  0xc9   : > { %4671 = vsyncadd (%p5552_p4), [#allocation15], 4294967264  ;;  %p5553_p1 = pmov %p5548_p0 }
  0xca   : > { %p5554_p7 = pmov %p5548_p0 }
  0xcb   : > { %4673 = dma.done.wait (%p5553_p1), [#allocation18], 1536  }
  0xcc   : > { %4675 = vsyncadd (%p5554_p7), [#allocation18], 4294965760  ;;  %p5555_p8 = pmov %p5548_p0 }
  0xcd   : > { %p5556_p9 = pmov %p5548_p0 }
  0xce   : > { %4677 = dma.done.wait (%p5555_p8), [#allocation21], 6160  }
  0xcf   : > { %4679 = vsyncadd (%p5556_p9), [#allocation21], 4294961136  ;;  %p5557_p2 = pmov %p5548_p0 }
  0xd0   : > { %p5558_p11 = pmov %p5548_p0 }
  0xd1   : > { %4681 = dma.done.wait (%p5557_p2), [#allocation24], 32  }
  0xd2   : > { %4683 = vsyncadd (%p5558_p11), [#allocation24], 4294967264  ;;  %p5559_p10 = pmov %p5548_p0 }
  0xd3   : > { %p5560_p6 = pmov %p5548_p0 }
  0xd4   : > { %4685 = dma.done.wait (%p5559_p10), [#allocation27], 16  }
  0xd5   : > { %4687 = vsyncadd (%p5560_p6), [#allocation27], 4294967280  ;;  %v4708_v1 = vmov 0.0   ;;  %vm4709_vm0 = vmmov 0   ;;  %v786_v2 = vld [vmem:[#allocation6 + $0x78] sm:$0xff]  ;;  %v785_v3 = vld [vmem:[#allocation6 + $0x70] sm:$0xff] }
  0xd6   : > { %3639 = vmatprep.subr.mxu0 %v4708_v1  ;;  %3671 = vmatprep.mubr.msk.f32.mxu0 %vm4709_vm0, %v4708_v1  ;;  %v784_v4 = vld [vmem:[#allocation6 + $0x68] sm:$0xff]  ;;  %v783_v5 = vld [vmem:[#allocation6 + $0x60] sm:$0xff]  ;;  %v782_v6 = vld [vmem:[#allocation6 + $0x58] sm:$0xff]  ;;  %p760_p12 = scmp.lt.s32.totalorder %s4829_s16, 1  ;;  %s5561_s1 = sld [smem:[#allocation36_spill]]  ;;  %vm1099_vm1 = vcmask 27648  }
  0xd7   : > { %3744 = vmatprep.subr.mxu1 %v4708_v1  ;;  %3746 = vmatprep.mubr.msk.f32.mxu1 %vm4709_vm0, %v4708_v1  ;;  %v781_v7 = vld [vmem:[#allocation6 + $0x50] sm:$0xff]  ;;  %v780_v8 = vld [vmem:[#allocation6 + $0x48] sm:$0xff]  ;;  %v779_v9 = vld [vmem:[#allocation6 + $0x40] sm:$0xff]  ;;  %vm1115_vm2 = vcmask 1043456   ;;  %vm1111_vm3 = vcmask 31744   ;;  %vm1189_vm4 = vcmask 912384  }
  0xd8   : > { %3640 = vmatpush3.msra.mxu0 %v786_v2  ;;  %v778_v10 = vld [vmem:[#allocation6 + $0x38] sm:$0xff]  ;;  %v777_v11 = vld [vmem:[#allocation6 + $0x30] sm:$0xff]  ;;  %v776_v12 = vld [vmem:[#allocation6 + $0x28] sm:$0xff]  ;;  %s5563_s16 = smov (!%p760_p12, %s4829_s16), 1  ;;  %s4710_s19 = smov 125   ;;  %vm1307_vm5 = vcmask 523264  }
  0xd9   : > { %3641 = vmatprep.subr.mxu0 %v4708_v1  ;;  %v775_v13 = vld [vmem:[#allocation6 + $0x20] sm:$0xff]  ;;  %v774_v14 = vld [vmem:[#allocation6 + $0x18] sm:$0xff]  ;;  %s3302_s30 = sshll.u32 %s5563_s16, 2  ;;  %v773_v15 = vld [vmem:[#allocation6 + $0x10] sm:$0xff]  ;;  %s4711_s0 = smov 127   ;;  %vm1722_vm6 = vcmask 343040  }
  0xda   : > { %3642 = vmatpush3.msra.mxu0 %v785_v3  ;;  %v772_v16 = vld [vmem:[#allocation6 + $0x8] sm:$0xff]  ;;  %v771_v17 = vld [vmem:[#allocation6] sm:$0xff]  ;;  %v872_v19 = vld [vmem:[#allocation8 + $0x78] sm:$0xff]  ;;  %s4712_s23 = smov 118   ;;  %s4713_s22 = smov 126   ;;  %vm1595_vm10 = vcmask 1046528  }
  0xdb   : > { %3643 = vmatprep.subr.mxu0 %v4708_v1  ;;  %v871_v20 = vld [vmem:[#allocation8 + $0x70] sm:$0xff]  ;;  %v870_v21 = vld [vmem:[#allocation8 + $0x68] sm:$0xff]  ;;  %v869_v22 = vld [vmem:[#allocation8 + $0x60] sm:$0xff]  ;;  %s4714_s20 = smov 116   ;;  %s4715_s28 = smov 124   ;;  %vm1650_vm14 = vcmask 1045504  }
  0xdc   : > { %3644 = vmatpush3.msra.mxu0 %v784_v4  ;;  %s763_s27 = scalar_lea.vmem %s5561_s1, %s3302_s30  ;;  %v868_v23 = vld [vmem:[#allocation8 + $0x58] sm:$0xff]  ;;  %v867_v24 = vld [vmem:[#allocation8 + $0x50] sm:$0xff]  ;;  %v866_v25 = vld [vmem:[#allocation8 + $0x48] sm:$0xff]  ;;  %s4716_s2 = smov 114  }
  0xdd   : > { %3645 = vmatprep.subr.mxu0 %v4708_v1  ;;  %v5051_v18 = vld [vmem:[%s763_s27] sm:$0xf]  ;;  %v865_v26 = vld [vmem:[#allocation8 + $0x40] sm:$0xff]  ;;  %v864_v27 = vld [vmem:[#allocation8 + $0x38] sm:$0xff]  ;;  %s4717_s24 = smov 123   ;;  %s4718_s26 = smov 122  }
  0xde   : > { %3646 = vmatpush3.msra.mxu0 %v783_v5  ;;  %v863_v28 = vld [vmem:[#allocation8 + $0x30] sm:$0xff]  ;;  %v862_v29 = vld [vmem:[#allocation8 + $0x28] sm:$0xff]  ;;  %v861_v30 = vld [vmem:[#allocation8 + $0x20] sm:$0xff]  ;;  %s4719_s30 = smov 121   ;;  %s4720_s21 = smov 120  }
  0xdf   : > { %3647 = vmatprep.subr.mxu0 %v4708_v1  ;;  %v860_v31 = vld [vmem:[#allocation8 + $0x18] sm:$0xff]  ;;  %v859_v32 = vld [vmem:[#allocation8 + $0x10] sm:$0xff]  ;;  %v858_v33 = vld [vmem:[#allocation8 + $0x8] sm:$0xff]  ;;  %s4721_s25 = smov 119   ;;  %s4722_s1 = smov 117  }
  0xe0   : > { %3648 = vmatpush3.msra.mxu0 %v782_v6  ;;  %v857_v34 = vld [vmem:[#allocation8] sm:$0xff]  ;;  %v958_v39 = vld [vmem:[#allocation10 + $0x78] sm:$0xff]  ;;  %v957_v40 = vld [vmem:[#allocation10 + $0x70] sm:$0xff]  ;;  %s4723_s27 = smov 115  }
  0xe1   : > { %3649 = vmatprep.subr.mxu0 %v4708_v1  ;;  %v956_v41 = vld [vmem:[#allocation10 + $0x68] sm:$0xff]  ;;  %v955_v42 = vld [vmem:[#allocation10 + $0x60] sm:$0xff]  ;;  %v954_v43 = vld [vmem:[#allocation10 + $0x58] sm:$0xff] }
  0xe2   : > { %3650 = vmatpush3.msra.mxu0 %v781_v7  ;;  %v953_v44 = vld [vmem:[#allocation10 + $0x50] sm:$0xff]  ;;  %v952_v45 = vld [vmem:[#allocation10 + $0x48] sm:$0xff]  ;;  %v951_v46 = vld [vmem:[#allocation10 + $0x40] sm:$0xff] }
  0xe3   : > { %3651 = vmatprep.subr.mxu0 %v4708_v1  ;;  %v950_v47 = vld [vmem:[#allocation10 + $0x38] sm:$0xff]  ;;  %v949_v48 = vld [vmem:[#allocation10 + $0x30] sm:$0xff]  ;;  %v948_v49 = vld [vmem:[#allocation10 + $0x28] sm:$0xff] }
  0xe4   : > { %3652 = vmatpush3.msra.mxu0 %v780_v8  ;;  %v947_v50 = vld [vmem:[#allocation10 + $0x20] sm:$0xff]  ;;  %v946_v51 = vld [vmem:[#allocation10 + $0x18] sm:$0xff]  ;;  %v945_v52 = vld [vmem:[#allocation10 + $0x10] sm:$0xff] }
  0xe5   : > { %3653 = vmatprep.subr.mxu0 %v4708_v1  ;;  %v944_v53 = vld [vmem:[#allocation10 + $0x8] sm:$0xff]  ;;  %v943_v54 = vld [vmem:[#allocation10] sm:$0xff]  ;;  %v1267_v7 = vld [vmem:[#allocation11 + $0x38] sm:$0xff] }
  0xe6   : > { %3654 = vmatpush3.msra.mxu0 %v779_v9  ;;  %v1266_v8 = vld [vmem:[#allocation11 + $0x30] sm:$0xff]  ;;  %v1265_v9 = vld [vmem:[#allocation11 + $0x28] sm:$0xff] }
  0xe7   : > { %3655 = vmatprep.subr.mxu0 %v4708_v1 }
  0xe8   : > { %3656 = vmatpush3.msra.mxu0 %v778_v10  ;;  %v1264_v10 = vld [vmem:[#allocation11 + $0x20] sm:$0xff] }
  0xe9   : > { %3657 = vmatprep.subr.mxu0 %v4708_v1 }
  0xea   : > { %3658 = vmatpush3.msra.mxu0 %v777_v11  ;;  %v1263_v11 = vld [vmem:[#allocation11 + $0x18] sm:$0xff] }
  0xeb   : > { %3659 = vmatprep.subr.mxu0 %v4708_v1 }
  0xec   : > { %3660 = vmatpush3.msra.mxu0 %v776_v12  ;;  %v1262_v12 = vld [vmem:[#allocation11 + $0x10] sm:$0xff] }
  0xed   : > { %3661 = vmatprep.subr.mxu0 %v4708_v1 }
  0xee   : > { %3662 = vmatpush3.msra.mxu0 %v775_v13 }
  0xef   : > { %3663 = vmatprep.subr.mxu0 %v4708_v1 }
  0xf0   : > { %3664 = vmatpush3.msra.mxu0 %v774_v14 }
  0xf1   : > { %3665 = vmatprep.subr.mxu0 %v4708_v1 }
  0xf2   : > { %3666 = vmatpush3.msra.mxu0 %v773_v15 }
  0xf3   : > { %3667 = vmatprep.subr.mxu0 %v4708_v1 }
  0xf4   : > { %3668 = vmatpush3.msra.mxu0 %v772_v16 }
  0xf5   : > { %3669 = vmatprep.subr.mxu0 %v4708_v1 }
  0xf6   : > { %3670 = vmatpush3.msra.mxu0 %v771_v17 }
  0xf7   : > { %3672 = vmatmul.mubr.f32.vlgmr.msra.gmra.mxu0 %v5051_v18  ;;  %3674 = vmatprep.subr.mxu0 %v4708_v1 }
  0xf8   : > { %3675 = vmatpush3.msra.mxu0 %v872_v19  ;;  %3706 = vmatprep.mubr.msk.f32.mxu0 %vm4709_vm0, %v4708_v1 }
  0xf9   : > { %3676 = vmatprep.subr.mxu0 %v4708_v1 }
  0xfa   : > { %3677 = vmatpush3.msra.mxu0 %v871_v20 }
  0xfb   : > { %3678 = vmatprep.subr.mxu0 %v4708_v1 }
  0xfc   : > { %3679 = vmatpush3.msra.mxu0 %v870_v21 }
  0xfd   : > { %3680 = vmatprep.subr.mxu0 %v4708_v1 }
  0xfe   : > { %3681 = vmatpush3.msra.mxu0 %v869_v22 }
  0xff   : > { %3682 = vmatprep.subr.mxu0 %v4708_v1 }
 0x100   : > { %3683 = vmatpush3.msra.mxu0 %v868_v23 }
 0x101   : > { %3684 = vmatprep.subr.mxu0 %v4708_v1 }
 0x102   : > { %3685 = vmatpush3.msra.mxu0 %v867_v24  ;;  %v1261_v24 = vld [vmem:[#allocation11 + $0x8] sm:$0xff] }
 0x103   : > { %3686 = vmatprep.subr.mxu0 %v4708_v1 }
 0x104   : > { %3687 = vmatpush3.msra.mxu0 %v866_v25  ;;  %v1260_v25 = vld [vmem:[#allocation11] sm:$0xff] }
 0x105   : > { %3688 = vmatprep.subr.mxu0 %v4708_v1 }
 0x106   : > { %3689 = vmatpush3.msra.mxu0 %v865_v26 }
 0x107   : > { %3690 = vmatprep.subr.mxu0 %v4708_v1 }
 0x108   : > { %3691 = vmatpush3.msra.mxu0 %v864_v27 }
 0x109   : > { %3692 = vmatprep.subr.mxu0 %v4708_v1 }
 0x10a   : > { %3693 = vmatpush3.msra.mxu0 %v863_v28 }
 0x10b   : > { %3694 = vmatprep.subr.mxu0 %v4708_v1 }
 0x10c   : > { %3695 = vmatpush3.msra.mxu0 %v862_v29 }
 0x10d   : > { %3696 = vmatprep.subr.mxu0 %v4708_v1 }
 0x10e   : > { %3697 = vmatpush3.msra.mxu0 %v861_v30 }
 0x10f   : > { %3698 = vmatprep.subr.mxu0 %v4708_v1 }
 0x110   : > { %3699 = vmatpush3.msra.mxu0 %v860_v31 }
 0x111   : > { %3700 = vmatprep.subr.mxu0 %v4708_v1 }
 0x112   : > { %3701 = vmatpush3.msra.mxu0 %v859_v32 }
 0x113   : > { %3702 = vmatprep.subr.mxu0 %v4708_v1 }
 0x114   : > { %3703 = vmatpush3.msra.mxu0 %v858_v33 }
 0x115   : > { %3704 = vmatprep.subr.mxu0 %v4708_v1 }
 0x116   : > { %3705 = vmatpush3.msra.mxu0 %v857_v34 }
 0x117   : > { %3707 = vmatmul.mubr.f32.vlgmr.msra.gmra.mxu0 %v5051_v18  ;;  %3709 = vmatprep.subr.mxu0 %v4708_v1 }
 0x118   : > { %3741 = vmatprep.mubr.msk.f32.mxu0 %vm4709_vm0, %v4708_v1  ;;  %3710 = vmatpush3.msra.mxu0 %v958_v39 }
 0x119   : > { %3711 = vmatprep.subr.mxu0 %v4708_v1 }
 0x11a   : > { %3712 = vmatpush3.msra.mxu0 %v957_v40 }
 0x11b   : > { %3713 = vmatprep.subr.mxu0 %v4708_v1 }
 0x11c   : > { %3714 = vmatpush3.msra.mxu0 %v956_v41 }
 0x11d   : > { %3715 = vmatprep.subr.mxu0 %v4708_v1 }
 0x11e   : > { %3716 = vmatpush3.msra.mxu0 %v955_v42 }
 0x11f   : > { %3717 = vmatprep.subr.mxu0 %v4708_v1 }
 0x120   : > { %3718 = vmatpush3.msra.mxu0 %v954_v43 }
 0x121   : > { %3719 = vmatprep.subr.mxu0 %v4708_v1 }
 0x122   : > { %3720 = vmatpush3.msra.mxu0 %v953_v44 }
 0x123   : > { %3721 = vmatprep.subr.mxu0 %v4708_v1 }
 0x124   : > { %3722 = vmatpush3.msra.mxu0 %v952_v45 }
 0x125   : > { %3723 = vmatprep.subr.mxu0 %v4708_v1 }
 0x126   : > { %3724 = vmatpush3.msra.mxu0 %v951_v46 }
 0x127   : > { %3725 = vmatprep.subr.mxu0 %v4708_v1 }
 0x128   : > { %3726 = vmatpush3.msra.mxu0 %v950_v47 }
 0x129   : > { %3727 = vmatprep.subr.mxu0 %v4708_v1 }
 0x12a   : > { %3728 = vmatpush3.msra.mxu0 %v949_v48 }
 0x12b   : > { %3729 = vmatprep.subr.mxu0 %v4708_v1 }
 0x12c   : > { %3730 = vmatpush3.msra.mxu0 %v948_v49 }
 0x12d   : > { %3731 = vmatprep.subr.mxu0 %v4708_v1 }
 0x12e   : > { %3732 = vmatpush3.msra.mxu0 %v947_v50  ;;  %v1716_v50 = vld [vmem:[#allocation17] sm:$0xff] }
 0x12f   : > { %3733 = vmatprep.subr.mxu0 %v4708_v1 }
 0x130   : > { %3734 = vmatpush3.msra.mxu0 %v946_v51 }
 0x131   : > { %3735 = vmatprep.subr.mxu0 %v4708_v1 }
 0x132   : > { %3736 = vmatpush3.msra.mxu0 %v945_v52  ;;  %v1840_v52 = vld [vmem:[#allocation19] sm:$0xff] }
 0x133   : > { %3737 = vmatprep.subr.mxu0 %v4708_v1 }
 0x134   : > { %3738 = vmatpush3.msra.mxu0 %v944_v53 }
 0x135   : > { %3739 = vmatprep.subr.mxu0 %v4708_v1 }
 0x136   : > { %3740 = vmatpush3.msra.mxu0 %v943_v54  ;;  %v5128_v54 = vld [vmem:[#allocation13] ss:$0 sm:$0xff] }
 0x137   : > { %3742 = vmatmul.mubr.f32.vlgmr.msra.gmra.mxu0 %v5051_v18 }
 0x138   : > { %3803 = vmatprep.mubr.msk.f32.mxu0 %vm1722_vm6, %v1716_v50 }
 0x1b7   : > { %v853_v35 = vpop.f32.mrf.mxu0 }
 0x1b9   : > { %v3673_v36 = vpop.f32.mrf.mxu0 }
 0x1d7   : > { %v939_v37 = vpop.f32.mrf.mxu0 }
 0x1d8   : > { %3745 = vmatpush3.xpose.msra.mxu1 %v939_v37 }
 0x1d9   : > { %v3708_v38 = vpop.f32.mrf.mxu0  ;;  %3749 = vmatprep.subr.mxu1 %v4708_v1 }
 0x1db   : > { %3747 = vmatmul.mubr.f32.vlgmr.msra.gmra.mxu1 %v853_v35 }
 0x1dc   : > { %3751 = vmatprep.mubr.msk.f32.mxu1 %vm4709_vm0, %v4708_v1 }
 0x1f7   : > { %v1025_v63 = vpop.f32.mrf.mxu0 }
 0x1f8   : > { %3750 = vmatpush3.msk.msra.mxu1 %vm1115_vm2, %v1025_v63 }
 0x1f9   : > { %v3743_v0 = vpop.f32.mrf.mxu0  ;;  %3754 = vmatprep.subr.mxu1 %v1267_v7 }
 0x29b   : > { %v1095_v55 = vpop.f32.mrf.mxu1 }
 0x29c   : > { %v1100_v56 = vsel %vm1099_vm1, %v1095_v55, -inf }
 0x29d   : > { %1101 = vmax.xlane.f32.xlu0 %v1100_v56  ;;  %v3748_v57 = vpop.f32.mrf.mxu1 }
 0x326   : > { %v1102_v58 = vpop.xlane.xlu0 %1101 }
 0x327   : > { %v1103_v59 = vsub.f32 %v1095_v55, %v1102_v58 }
 0x329   : > { %v1104_v60 = vmul.f32 1.442695, %v1103_v59 }
 0x32b   : > { %4164 = vpow2.f32 %v1104_v60 }
 0x338   : > { %v4165_v61 = vpop.eup %4164 }
 0x339   : > { %v1106_v62 = vsel %vm1099_vm1, %v4165_v61, 0.0 }
 0x33a   : > { %1107 = vadd.xlane.f32.xlu0 %v1106_v62 }
 0x3c3   : > { %v1108_v2 = vpop.xlane.xlu0 %1107 }
 0x3c4   : > { %4166 = vrcp.f32 %v1108_v2 }
 0x3d1   : > { %v4167_v3 = vpop.eup %4166 }
 0x3d2   : > { %v1110_v4 = vmul.f32 %v4167_v3, %v4165_v61 }
 0x3d4   : > { %3752 = vmatmul.mubr.msk.f32.vlgmr.msra.gmra.mxu1 %vm1111_vm3, %v1110_v4 }
 0x3d5   : > { %3755 = vmatpush3.msra.mxu1 %v1267_v7 }
 0x3d6   : > { %3756 = vmatprep.subr.mxu1 %v1266_v8 }
 0x3d7   : > { %3757 = vmatpush3.msra.mxu1 %v1266_v8 }
 0x3d8   : > { %3758 = vmatprep.subr.mxu1 %v1265_v9 }
 0x3d9   : > { %3759 = vmatpush3.msra.mxu1 %v1265_v9 }
 0x3da   : > { %3760 = vmatprep.subr.mxu1 %v1264_v10 }
 0x3db   : > { %3761 = vmatpush3.msra.mxu1 %v1264_v10 }
 0x3dc   : > { %3762 = vmatprep.subr.mxu1 %v1263_v11 }
 0x3dd   : > { %3763 = vmatpush3.msra.mxu1 %v1263_v11 }
 0x3de   : > { %3764 = vmatprep.subr.mxu1 %v1262_v12 }
 0x3df   : > { %3765 = vmatpush3.msra.mxu1 %v1262_v12 }
 0x3e0   : > { %3766 = vmatprep.subr.mxu1 %v1261_v24 }
 0x3e1   : > { %3767 = vmatpush3.msra.mxu1 %v1261_v24 }
 0x3e2   : > { %3768 = vmatprep.subr.mxu1 %v1260_v25 }
 0x3e3   : > { %3769 = vmatpush3.msra.mxu1 %v1260_v25 }
 0x494   : > { %v1185_v5 = vpop.f32.mrf.mxu1 }
 0x495   : > { %1200 = vrot.lane.b32.xlu0 %v1185_v5, %s4710_s19  ;;  %1192 = vrot.lane.b32.xlu1 %v1185_v5, %s4711_s0  ;;  %1190 = vst.msk [vmem:[#allocation2] sm:$0xf] %vm1189_vm4, %v1185_v5  ;;  %s4724_s19 = smov 113   ;;  %s766_s0 = scalar_lea.vmem %s5529_s17, %s5563_s16 }
 0x496   : > { %v3753_v6 = vpop.f32.mrf.mxu1 }
 0x499   : > { %1228 = vrot.lane.b32.xlu0 %v1185_v5, %s4712_s23  ;;  %1196 = vrot.lane.b32.xlu1 %v1185_v5, %s4713_s22 }
 0x49d   : > { %1236 = vrot.lane.b32.xlu0 %v1185_v5, %s4714_s20  ;;  %1204 = vrot.lane.b32.xlu1 %v1185_v5, %s4715_s28  ;;  %s769_s20 = scalar_lea.vmem %s5530_s18, %s5563_s16 }
 0x4a1   : > { %1244 = vrot.lane.b32.xlu0 %v1185_v5, %s4716_s2  ;;  %1208 = vrot.lane.b32.xlu1 %v1185_v5, %s4717_s24 }
 0x4a5   : > { %1212 = vrot.lane.b32.xlu1 %v1185_v5, %s4718_s26 }
 0x4a9   : > { %1216 = vrot.lane.b32.xlu1 %v1185_v5, %s4719_s30 }
 0x4ad   : > { %1220 = vrot.lane.b32.xlu1 %v1185_v5, %s4720_s21 }
 0x4b1   : > { %1224 = vrot.lane.b32.xlu1 %v1185_v5, %s4721_s25 }
 0x4b5   : > { %1232 = vrot.lane.b32.xlu1 %v1185_v5, %s4722_s1 }
 0x4b9   : > { %1240 = vrot.lane.b32.xlu1 %v1185_v5, %s4723_s27 }
 0x4bd   : > { %1248 = vrot.lane.b32.xlu1 %v1185_v5, %s4724_s19 }
 0x507   : > { %v1201_v13 = vpop.permute.xlu0 %1200  ;;  %v1193_v14 = vpop.permute.xlu1 %1192 }
 0x508   : > { %1203 = vst.msk [vmem:[#allocation2 + $0xc] sm:$0xf] %vm1189_vm4, %v1201_v13  ;;  %1195 = vst.msk [vmem:[#allocation2 + $0x4] sm:$0xf] %vm1189_vm4, %v1193_v14 }
 0x50b   : > { %v1229_v15 = vpop.permute.xlu0 %1228  ;;  %v1197_v16 = vpop.permute.xlu1 %1196 }
 0x50c   : > { %1231 = vst.msk [vmem:[#allocation2 + $0x28] sm:$0xf] %vm1189_vm4, %v1229_v15  ;;  %1199 = vst.msk [vmem:[#allocation2 + $0x8] sm:$0xf] %vm1189_vm4, %v1197_v16 }
 0x50f   : > { %v1237_v17 = vpop.permute.xlu0 %1236  ;;  %v1205_v18 = vpop.permute.xlu1 %1204  ;;  %v1252_v19 = vld [vmem:[#allocation2] sm:$0xff] }
 0x510   : > { %1239 = vst.msk [vmem:[#allocation2 + $0x30] sm:$0xf] %vm1189_vm4, %v1237_v17  ;;  %1207 = vst.msk [vmem:[#allocation2 + $0x10] sm:$0xf] %vm1189_vm4, %v1205_v18  ;;  %1275 = vxpose.xlu0.b32.start [1/8] (short) (narrow) %v1252_v19, 112 }
 0x511   : > { %v5142_v18 = vld [vmem:[#allocation14] ss:$0 sm:$0xff] }
 0x513   : > { %v1245_v20 = vpop.permute.xlu0 %1244  ;;  %v1209_v21 = vpop.permute.xlu1 %1208  ;;  %v1253_v22 = vld [vmem:[#allocation2 + $0x8] sm:$0xff] }
 0x514   : > { %1247 = vst.msk [vmem:[#allocation2 + $0x38] sm:$0xf] %vm1189_vm4, %v1245_v20  ;;  %1211 = vst.msk [vmem:[#allocation2 + $0x14] sm:$0xf] %vm1189_vm4, %v1209_v21  ;;  %1276 = vxpose.xlu0.b32.cont [2/8] (short) (narrow) %v1253_v22, 112 }
 0x517   : > { %v1213_v23 = vpop.permute.xlu1 %1212 }
 0x518   : > { %1215 = vst.msk [vmem:[#allocation2 + $0x18] sm:$0xf] %vm1189_vm4, %v1213_v23 }
 0x51b   : > { %v1217_v26 = vpop.permute.xlu1 %1216  ;;  %v1254_v27 = vld [vmem:[#allocation2 + $0x10] sm:$0xff] }
 0x51c   : > { %1219 = vst.msk [vmem:[#allocation2 + $0x1c] sm:$0xf] %vm1189_vm4, %v1217_v26  ;;  %1277 = vxpose.xlu0.b32.cont [3/8] (short) (narrow) %v1254_v27, 112  ;;  %v5148_v26 = vld [vmem:[#allocation16] ss:$0 sm:$0xff] }
 0x51f   : > { %v1221_v28 = vpop.permute.xlu1 %1220 }
 0x520   : > { %1223 = vst.msk [vmem:[#allocation2 + $0x20] sm:$0xf] %vm1189_vm4, %v1221_v28 }
 0x523   : > { %v1225_v29 = vpop.permute.xlu1 %1224  ;;  %v1255_v30 = vld [vmem:[#allocation2 + $0x18] sm:$0xff] }
 0x524   : > { %1227 = vst.msk [vmem:[#allocation2 + $0x24] sm:$0xf] %vm1189_vm4, %v1225_v29  ;;  %1278 = vxpose.xlu0.b32.cont [4/8] (short) (narrow) %v1255_v30, 112 }
 0x527   : > { %v1233_v31 = vpop.permute.xlu1 %1232 }
 0x528   : > { %1235 = vst.msk [vmem:[#allocation2 + $0x2c] sm:$0xf] %vm1189_vm4, %v1233_v31 }
 0x52b   : > { %v1241_v32 = vpop.permute.xlu1 %1240  ;;  %v1256_v33 = vld [vmem:[#allocation2 + $0x20] sm:$0xff] }
 0x52c   : > { %1243 = vst.msk [vmem:[#allocation2 + $0x34] sm:$0xf] %vm1189_vm4, %v1241_v32  ;;  %1279 = vxpose.xlu0.b32.cont [5/8] (short) (narrow) %v1256_v33, 112 }
 0x52f   : > { %v1249_v34 = vpop.permute.xlu1 %1248  ;;  %v1257_v35 = vld [vmem:[#allocation2 + $0x28] sm:$0xff] }
 0x530   : > { %1251 = vst.msk [vmem:[#allocation2 + $0x3c] sm:$0xf] %vm1189_vm4, %v1249_v34  ;;  %1280 = vxpose.xlu0.b32.cont [6/8] (short) (narrow) %v1257_v35, 112 }
 0x533   : > { %v1258_v36 = vld [vmem:[#allocation2 + $0x30] sm:$0xff] }
 0x534   : > { %1281 = vxpose.xlu0.b32.cont [7/8] (short) (narrow) %v1258_v36, 112 }
 0x537   : > { %v1259_v37 = vld [vmem:[#allocation2 + $0x38] sm:$0xff] }
 0x538   : > { %1282 = vxpose.xlu0.b32.end [8/8] (short) (narrow) %v1259_v37, 112 }
 0x598   : > { %v1291_v38 = vpop.trf.xlu0 }
 0x599   : > { %3770 = vmatprep.mubr.msk.f32.mxu1 %vm1307_vm5, %v1291_v38 }
 0x59c   : > { %v1292_v39 = vpop.trf.xlu0 }
 0x59d   : > { %3771 = vmatmul.mubr.msk.f32.vlgmr.msra.gmra.mxu1 %vm1307_vm5, %v1292_v39 }
 0x5a0   : > { %v1293_v40 = vpop.trf.xlu0 }
 0x5a1   : > { %3773 = vmatprep.mubr.msk.f32.mxu1 %vm1307_vm5, %v1293_v40 }
 0x5a4   : > { %v1294_v41 = vpop.trf.xlu0 }
 0x5a5   : > { %3774 = vmatmul.mubr.msk.f32.gmra.mxu1 %vm1307_vm5, %v1294_v41 }
 0x5a8   : > { %v1295_v42 = vpop.trf.xlu0 }
 0x5a9   : > { %3776 = vmatprep.mubr.msk.f32.mxu1 %vm1307_vm5, %v1295_v42 }
 0x5ac   : > { %v1296_v43 = vpop.trf.xlu0 }
 0x5ad   : > { %3777 = vmatmul.mubr.msk.f32.gmra.mxu1 %vm1307_vm5, %v1296_v43 }
 0x5b0   : > { %v1297_v44 = vpop.trf.xlu0 }
 0x5b1   : > { %3779 = vmatprep.mubr.msk.f32.mxu1 %vm1307_vm5, %v1297_v44 }
 0x5b4   : > { %v1298_v45 = vpop.trf.xlu0 }
 0x5b5   : > { %3780 = vmatmul.mubr.msk.f32.gmra.mxu1 %vm1307_vm5, %v1298_v45 }
 0x5b8   : > { %v1299_v46 = vpop.trf.xlu0 }
 0x5b9   : > { %3782 = vmatprep.mubr.msk.f32.mxu1 %vm1307_vm5, %v1299_v46 }
 0x5bc   : > { %v1300_v47 = vpop.trf.xlu0 }
 0x5bd   : > { %3783 = vmatmul.mubr.msk.f32.gmra.mxu1 %vm1307_vm5, %v1300_v47 }
 0x5c0   : > { %v1301_v48 = vpop.trf.xlu0 }
 0x5c1   : > { %3785 = vmatprep.mubr.msk.f32.mxu1 %vm1307_vm5, %v1301_v48 }
 0x5c4   : > { %v1302_v49 = vpop.trf.xlu0 }
 0x5c5   : > { %3786 = vmatmul.mubr.msk.f32.gmra.mxu1 %vm1307_vm5, %v1302_v49 }
 0x5c8   : > { %v1303_v51 = vpop.trf.xlu0 }
 0x5c9   : > { %3788 = vmatprep.mubr.msk.f32.mxu1 %vm1307_vm5, %v1303_v51 }
 0x5cc   : > { %v1304_v53 = vpop.trf.xlu0 }
 0x5cd   : > { %3789 = vmatmul.mubr.msk.f32.gmra.mxu1 %vm1307_vm5, %v1304_v53 }
 0x5ce   : > { %3824 = vmatprep.mubr.msk.f32.mxu1 %vm1722_vm6, %v1840_v52 }
 0x65d   : > { %v3772_v55 = vpop.f32.mrf.mxu1 }
 0x65e   : > { %v1422_v56 = vadd.f32 %v3772_v55, %v5128_v54 }
 0x65f   : > { %v1416_v57 = vpop.f32.mrf.mxu1 }
 0x660   : > { %v1494_v58 = vmin.f32 %v1422_v56, 0.0  ;;  %v1417_v59 = vadd.f32 %v5128_v54, %v1416_v57  ;;  %vm1483_vm7 = vcmp.gt.f32.partialorder %v1422_v56, 0.0 }
 0x662   : > { %v1506_v60 = vmul.f32 1.442695, %v1494_v58  ;;  %v1493_v61 = vmin.f32 %v1417_v59, 0.0  ;;  %vm1482_vm8 = vcmp.gt.f32.partialorder %v1417_v59, 0.0 }
 0x664   : > { %4168 = vpow2.f32 %v1506_v60  ;;  %v1504_v62 = vmul.f32 1.442695, %v1493_v61 }
 0x665   : > { %v3775_v63 = vpop.f32.mrf.mxu1 }
 0x666   : > { %4170 = vpow2.f32 %v1504_v62  ;;  %v1432_v0 = vadd.f32 %v3775_v63, %v5128_v54 }
 0x667   : > { %v1426_v2 = vpop.f32.mrf.mxu1 }
 0x668   : > { %v1496_v3 = vmin.f32 %v1432_v0, 0.0  ;;  %v1427_v4 = vadd.f32 %v5128_v54, %v1426_v2  ;;  %vm1485_vm9 = vcmp.gt.f32.partialorder %v1432_v0, 0.0 }
 0x66a   : > { %v1510_v5 = vmul.f32 1.442695, %v1496_v3  ;;  %v1495_v6 = vmin.f32 %v1427_v4, 0.0  ;;  %vm1484_vm11 = vcmp.gt.f32.partialorder %v1427_v4, 0.0 }
 0x66c   : > { %4172 = vpow2.f32 %v1510_v5  ;;  %v1508_v7 = vmul.f32 1.442695, %v1495_v6 }
 0x66d   : > { %v3778_v8 = vpop.f32.mrf.mxu1 }
 0x66e   : > { %4174 = vpow2.f32 %v1508_v7  ;;  %v5135_v9 = vadd.f32 %v3778_v8, %v5128_v54 }
 0x66f   : > { %v1436_v10 = vpop.f32.mrf.mxu1 }
 0x670   : > { %v1498_v11 = vmin.f32 %v5135_v9, 0.0  ;;  %v5139_v12 = vadd.f32 %v5128_v54, %v1436_v10  ;;  %vm1487_vm12 = vcmp.gt.f32.partialorder %v5135_v9, 0.0 }
 0x671   : > { %v4169_v13 = vpop.eup %4168 }
 0x672   : > { %v3321_v14 = vadd.f32 -1.0, %v4169_v13  ;;  %v1514_v15 = vmul.f32 1.442695, %v1498_v11  ;;  %v1497_v16 = vmin.f32 %v5139_v12, 0.0  ;;  %vm1486_vm13 = vcmp.gt.f32.partialorder %v5139_v12, 0.0 }
 0x673   : > { %v4171_v17 = vpop.eup %4170 }
 0x674   : > { %v1538_v19 = vsel %vm1483_vm7, %v1422_v56, %v3321_v14  ;;  %v3320_v20 = vadd.f32 -1.0, %v4171_v17  ;;  %4176 = vpow2.f32 %v1514_v15  ;;  %v1512_v21 = vmul.f32 1.442695, %v1497_v16 }
 0x675   : > { %v3781_v22 = vpop.f32.mrf.mxu1  ;;  %v1556_v23 = vmul.f32 %v5142_v18, %v1538_v19  ;;  %vm1741_vm7 = vcmask 1041408  }
 0x676   : > { %v1537_v24 = vsel %vm1482_vm8, %v1417_v59, %v3320_v20  ;;  %4178 = vpow2.f32 %v1512_v21  ;;  %v5146_v25 = vadd.f32 %v3781_v22, %v5128_v54 }
 0x677   : > { %v1555_v27 = vmul.f32 %v5142_v18, %v1537_v24  ;;  %v1446_v28 = vpop.f32.mrf.mxu1  ;;  %v1574_v33 = vadd.f32 %v5148_v26, %v1556_v23 }
 0x678   : > { %v1500_v29 = vmin.f32 %v5146_v25, 0.0  ;;  %v5153_v30 = vadd.f32 %v5128_v54, %v1446_v28  ;;  %vm1489_vm15 = vcmp.gt.f32.partialorder %v5146_v25, 0.0 }
 0x679   : > { %v4173_v31 = vpop.eup %4172  ;;  %v1573_v32 = vadd.f32 %v5148_v26, %v1555_v27  ;;  %v1597_v44 = vrot.slane %v1574_v33, 1 }
 0x67a   : > { %v3323_v34 = vadd.f32 -1.0, %v4173_v31  ;;  %v1518_v35 = vmul.f32 1.442695, %v1500_v29  ;;  %v1499_v36 = vmin.f32 %v5153_v30, 0.0  ;;  %vm1488_vm1 = vcmp.gt.f32.partialorder %v5153_v30, 0.0 }
 0x67b   : > { %v4175_v37 = vpop.eup %4174  ;;  %v1596_v38 = vrot.slane %v1573_v32, 1 }
 0x67c   : > { %v1540_v39 = vsel %vm1485_vm9, %v1432_v0, %v3323_v34  ;;  %v3322_v40 = vadd.f32 -1.0, %v4175_v37  ;;  %4180 = vpow2.f32 %v1518_v35  ;;  %v1516_v41 = vmul.f32 1.442695, %v1499_v36 }
 0x67d   : > { %v1558_v42 = vmul.f32 %v5142_v18, %v1540_v39  ;;  %v3784_v43 = vpop.f32.mrf.mxu1  ;;  %v1598_v50 = vsel %vm1595_vm10, %v1596_v38, %v1597_v44 }
 0x67e   : > { %v1539_v45 = vsel %vm1484_vm11, %v1427_v4, %v3322_v40  ;;  %4182 = vpow2.f32 %v1516_v41  ;;  %v5160_v46 = vadd.f32 %v3784_v43, %v5128_v54  ;;  %v1628_v60 = vmax.f32 %v1573_v32, %v1598_v50 }
 0x67f   : > { %v1576_v47 = vadd.f32 %v5148_v26, %v1558_v42  ;;  %v1557_v48 = vmul.f32 %v5142_v18, %v1539_v45  ;;  %v1456_v49 = vpop.f32.mrf.mxu1 }
 0x680   : > { %v1502_v51 = vmin.f32 %v5160_v46, 0.0  ;;  %v5167_v52 = vadd.f32 %v5128_v54, %v1456_v49  ;;  %v1651_v14 = vrot.slane %v1628_v60, 2  ;;  %vm1491_vm2 = vcmp.gt.f32.partialorder %v5160_v46, 0.0  ;;  %v5200_v49 = vld [vmem:[#allocation23] ss:$0 sm:$0xff] }
 0x681   : > { %v4177_v53 = vpop.eup %4176  ;;  %v1575_v55 = vadd.f32 %v5148_v26, %v1557_v48  ;;  %v1601_v61 = vrot.slane %v1576_v47, 1 }
 0x682   : > { %v3325_v56 = vadd.f32 -1.0, %v4177_v53  ;;  %v1522_v57 = vmul.f32 1.442695, %v1502_v51  ;;  %v1501_v58 = vmin.f32 %v5167_v52, 0.0  ;;  %vm1490_vm3 = vcmp.gt.f32.partialorder %v5167_v52, 0.0 }
 0x683   : > { %v4179_v59 = vpop.eup %4178  ;;  %v1599_v62 = vrot.slane %v1575_v55, 1 }
 0x684   : > { %v1542_v63 = vsel %vm1487_vm12, %v5135_v9, %v3325_v56  ;;  %v3324_v0 = vadd.f32 -1.0, %v4179_v59  ;;  %4184 = vpow2.f32 %v1522_v57  ;;  %v1520_v2 = vmul.f32 1.442695, %v1501_v58  ;;  %v5204_v58 = vld [vmem:[#allocation25] ss:$0 sm:$0xff] }
 0x685   : > { %v1600_v3 = vsel %vm1595_vm10, %v1597_v44, %v1599_v62  ;;  %v1602_v4 = vsel %vm1595_vm10, %v1599_v62, %v1601_v61  ;;  %v1560_v5 = vmul.f32 %v5142_v18, %v1542_v63  ;;  %v3787_v6 = vpop.f32.mrf.mxu1 }
 0x686   : > { %v1629_v7 = vmax.f32 %v1574_v33, %v1600_v3  ;;  %v1630_v8 = vmax.f32 %v1575_v55, %v1602_v4  ;;  %v1541_v10 = vsel %vm1486_vm13, %v5139_v12, %v3324_v0  ;;  %4186 = vpow2.f32 %v1520_v2 }
 0x687   : > { %v1578_v9 = vadd.f32 %v5148_v26, %v1560_v5  ;;  %v1559_v11 = vmul.f32 %v5142_v18, %v1541_v10  ;;  %v1466_v13 = vpop.f32.mrf.mxu1 }
 0x688   : > { %v1652_v15 = vrot.slane %v1629_v7, 2  ;;  %v1654_v16 = vrot.slane %v1630_v8, 2  ;;  %v5181_v17 = vadd.f32 %v5128_v54, %v1466_v13 }
 0x689   : > { %v4181_v19 = vpop.eup %4180  ;;  %v1577_v20 = vadd.f32 %v5148_v26, %v1559_v11  ;;  %v1605_v22 = vrot.slane %v1578_v9, 1 }
 0x68a   : > { %v1653_v12 = vsel %vm1650_vm14, %v1651_v14, %v1652_v15  ;;  %v1655_v21 = vsel %vm1650_vm14, %v1652_v15, %v1654_v16  ;;  %v3327_v23 = vadd.f32 -1.0, %v4181_v19  ;;  %v1503_v31 = vmin.f32 %v5181_v17, 0.0 }
 0x68b   : > { %v4183_v24 = vpop.eup %4182  ;;  %v1683_v27 = vmax.f32 %v1628_v60, %v1653_v12  ;;  %v1684_v28 = vmax.f32 %v1629_v7, %v1655_v21  ;;  %v1603_v29 = vrot.slane %v1577_v20, 1  ;;  %vm1492_vm4 = vcmp.gt.f32.partialorder %v5181_v17, 0.0 }
 0x68c   : > { %v1544_v54 = vsel %vm1489_vm15, %v5146_v25, %v3327_v23  ;;  %v3326_v32 = vadd.f32 -1.0, %v4183_v24  ;;  %v1524_v36 = vmul.f32 1.442695, %v1503_v31 }
 0x68d   : > { %1694 = vst [vmem:[#allocation3] sm:$0xff] %v1683_v27  ;;  %1695 = vst [vmem:[#allocation3 + $0x8] sm:$0xff] %v1684_v28  ;;  %v1604_v33 = vsel %vm1595_vm10, %v1601_v61, %v1603_v29  ;;  %v1606_v34 = vsel %vm1595_vm10, %v1603_v29, %v1605_v22  ;;  %v1562_v35 = vmul.f32 %v5142_v18, %v1544_v54 }
 0x68e   : > { %v1631_v37 = vmax.f32 %v1576_v47, %v1604_v33  ;;  %v1632_v38 = vmax.f32 %v1577_v20, %v1606_v34  ;;  %v1543_v39 = vsel %vm1488_vm1, %v5153_v30, %v3326_v32  ;;  %4188 = vpow2.f32 %v1524_v36 }
 0x68f   : > { %v1580_v40 = vadd.f32 %v5148_v26, %v1562_v35  ;;  %v1561_v25 = vmul.f32 %v5142_v18, %v1543_v39 }
 0x690   : > { %v1656_v41 = vrot.slane %v1631_v37, 2  ;;  %v1658_v42 = vrot.slane %v1632_v38, 2 }
 0x691   : > { %v4185_v43 = vpop.eup %4184  ;;  %v1579_v44 = vadd.f32 %v5148_v26, %v1561_v25  ;;  %v1609_v53 = vrot.slane %v1580_v40, 1 }
 0x692   : > { %v1657_v45 = vsel %vm1650_vm14, %v1654_v16, %v1656_v41  ;;  %v1659_v48 = vsel %vm1650_vm14, %v1656_v41, %v1658_v42  ;;  %v3329_v47 = vadd.f32 -1.0, %v4185_v43 }
 0x693   : > { %v4187_v30 = vpop.eup %4186  ;;  %v1685_v50 = vmax.f32 %v1630_v8, %v1657_v45  ;;  %v1686_v51 = vmax.f32 %v1631_v37, %v1659_v48  ;;  %v1607_v55 = vrot.slane %v1579_v44, 1 }
 0x694   : > { %v1546_v56 = vsel %vm1491_vm2, %v5160_v46, %v3329_v47  ;;  %v3328_v57 = vadd.f32 -1.0, %v4187_v30  ;;  %v5206_v59 = vld [vmem:[#allocation3] ss:$2 sm:$0xff] }
 0x695   : > { %1696 = vst [vmem:[#allocation3 + $0x10] sm:$0xff] %v1685_v50  ;;  %1697 = vst [vmem:[#allocation3 + $0x18] sm:$0xff] %v1686_v51  ;;  %v1608_v60 = vsel %vm1595_vm10, %v1605_v22, %v1607_v55  ;;  %v1610_v61 = vsel %vm1595_vm10, %v1607_v55, %v1609_v53  ;;  %v1564_v62 = vmul.f32 %v5142_v18, %v1546_v56 }
 0x696   : > { %v2620_v63 = vmul.f32 %v5200_v49, %v5206_v59  ;;  %v1633_v0 = vmax.f32 %v1578_v9, %v1608_v60  ;;  %v1634_v46 = vmax.f32 %v1579_v44, %v1610_v61  ;;  %v1545_v2 = vsel %vm1490_vm3, %v5167_v52, %v3328_v57 }
 0x697   : > { %v1582_v3 = vadd.f32 %v5148_v26, %v1564_v62  ;;  %v1563_v4 = vmul.f32 %v5142_v18, %v1545_v2  ;;  %vm3019_vm3 = vcmask 1047554  }
 0x698   : > { %v5217_v5 = vadd.f32 %v5204_v58, %v2620_v63  ;;  %v1660_v6 = vrot.slane %v1633_v0, 2  ;;  %v1662_v7 = vrot.slane %v1634_v46, 2 }
 0x699   : > { %v1581_v8 = vadd.f32 %v5148_v26, %v1563_v4  ;;  %v1613_v13 = vrot.slane %v1582_v3, 1 }
 0x69a   : > { %v2645_v10 = vmin.f32 %v5217_v5, 0.0  ;;  %v1661_v11 = vsel %vm1650_vm14, %v1658_v42, %v1660_v6  ;;  %v1663_v9 = vsel %vm1650_vm14, %v1660_v6, %v1662_v7  ;;  %vm2639_vm5 = vcmp.gt.f32.partialorder %v5217_v5, 0.0 }
 0x69b   : > { %v1687_v14 = vmax.f32 %v1632_v38, %v1661_v11  ;;  %v1688_v52 = vmax.f32 %v1633_v0, %v1663_v9  ;;  %v1611_v15 = vrot.slane %v1581_v8, 1  ;;  %v4189_v19 = vpop.eup %4188 }
 0x69c   : > { %v2651_v16 = vmul.f32 1.442695, %v2645_v10  ;;  %v5223_v20 = vld [vmem:[#allocation3 + $0x10] ss:$2 sm:$0xff]  ;;  %v3330_v22 = vadd.f32 -1.0, %v4189_v19 }
 0x69d   : > { %1698 = vst [vmem:[#allocation3 + $0x20] sm:$0xff] %v1687_v14  ;;  %1699 = vst [vmem:[#allocation3 + $0x28] sm:$0xff] %v1688_v52  ;;  %v1612_v12 = vsel %vm1595_vm10, %v1609_v53, %v1611_v15  ;;  %v1614_v21 = vsel %vm1595_vm10, %v1611_v15, %v1613_v13  ;;  %v2621_v23 = vmul.f32 %v5200_v49, %v5223_v20  ;;  %v1717_v15 = vld [vmem:[#allocation17 + $0x8] sm:$0xff]  ;;  %v1841_v19 = vld [vmem:[#allocation19 + $0x8] sm:$0xff] }
 0x69e   : > { %v1635_v24 = vmax.f32 %v1580_v40, %v1612_v12  ;;  %v1636_v27 = vmax.f32 %v1581_v8, %v1614_v21  ;;  %4190 = vpow2.f32 %v2651_v16  ;;  %v1547_v28 = vsel %vm1492_vm4, %v5181_v17, %v3330_v22  ;;  %v1718_v16 = vld [vmem:[#allocation17 + $0x10] sm:$0xff]  ;;  %v1842_v12 = vld [vmem:[#allocation19 + $0x10] sm:$0xff]  ;;  %v1719_v21 = vld [vmem:[#allocation17 + $0x18] sm:$0xff] }
 0x69f   : > { %v2634_v29 = vadd.f32 %v5204_v58, %v2621_v23  ;;  %v1565_v32 = vmul.f32 %v5142_v18, %v1547_v28  ;;  %v1720_v23 = vld [vmem:[#allocation17 + $0x20] sm:$0xff]  ;;  %v1844_v28 = vld [vmem:[#allocation19 + $0x20] sm:$0xff]  ;;  %vm3052_vm4 = vcmask 0  }
 0x6a0   : > { %v1664_v31 = vrot.slane %v1635_v24, 2  ;;  %v1666_v54 = vrot.slane %v1636_v27, 2 }
 0x6a1   : > { %v2646_v33 = vmin.f32 %v2634_v29, 0.0  ;;  %v1583_v36 = vadd.f32 %v5148_v26, %v1565_v32  ;;  %vm2640_vm8 = vcmp.gt.f32.partialorder %v2634_v29, 0.0 }
 0x6a2   : > { %v1665_v34 = vsel %vm1650_vm14, %v1662_v7, %v1664_v31  ;;  %v1667_v35 = vsel %vm1650_vm14, %v1664_v31, %v1666_v54  ;;  %v1721_v31 = vld [vmem:[#allocation17 + $0x28] sm:$0x3] }
 0x6a3   : > { %v1689_v37 = vmax.f32 %v1634_v46, %v1665_v34  ;;  %v1690_v38 = vmax.f32 %v1635_v24, %v1667_v35  ;;  %v2653_v39 = vmul.f32 1.442695, %v2646_v33  ;;  %v1615_v40 = vrot.slane %v1583_v36, 1 }
 0x6a4   : > { %v5236_v25 = vld [vmem:[#allocation3 + $0x20] ss:$2 sm:$0xff] }
 0x6a5   : > { %1700 = vst [vmem:[#allocation3 + $0x30] sm:$0xff] %v1689_v37  ;;  %1701 = vst [vmem:[#allocation3 + $0x38] sm:$0xff] %v1690_v38  ;;  %v2622_v17 = vmul.f32 %v5200_v49, %v5236_v25  ;;  %4192 = vpow2.f32 %v2653_v39  ;;  %v1616_v18 = vsel %vm1595_vm10, %v1613_v13, %v1615_v40  ;;  %v1638_v41 = vmax.f32 %v1583_v36, %v1615_v40 }
 0x6a6   : > { %v1637_v42 = vmax.f32 %v1582_v3, %v1616_v18 }
 0x6a7   : > { %v5242_v43 = vadd.f32 %v5204_v58, %v2622_v17  ;;  %v1670_v26 = vrot.slane %v1638_v41, 2 }
 0x6a8   : > { %v1668_v44 = vrot.slane %v1637_v42, 2 }
 0x6a9   : > { %v2647_v45 = vmin.f32 %v5242_v43, 0.0  ;;  %v1693_v48 = vmax.f32 %v1638_v41, %v1670_v26  ;;  %vm2641_vm9 = vcmp.gt.f32.partialorder %v5242_v43, 0.0 }
 0x6aa   : > { %v1669_v30 = vsel %vm1650_vm14, %v1666_v54, %v1668_v44  ;;  %v1671_v50 = vsel %vm1650_vm14, %v1668_v44, %v1670_v26  ;;  %v1845_v54 = vld [vmem:[#allocation19 + $0x28] sm:$0x3] }
 0x6ab   : > { %v4191_v47 = vpop.eup %4190  ;;  %v2655_v51 = vmul.f32 1.442695, %v2647_v45  ;;  %v1691_v53 = vmax.f32 %v1636_v27, %v1669_v30  ;;  %v1692_v55 = vmax.f32 %v1637_v42, %v1671_v50  ;;  %1704 = vst [vmem:[#allocation3 + $0x50] sm:$0x7] %v1693_v48  ;;  %v1843_v27 = vld [vmem:[#allocation19 + $0x18] sm:$0xff] }
 0x6ac   : > { %v5247_v56 = vld [vmem:[#allocation3 + $0x30] ss:$2 sm:$0xff]  ;;  %v3381_v57 = vadd.f32 -1.0, %v4191_v47 }
 0x6ad   : > { %v2623_v60 = vmul.f32 %v5200_v49, %v5247_v56  ;;  %4194 = vpow2.f32 %v2655_v51  ;;  %1702 = vst [vmem:[#allocation3 + $0x40] sm:$0xff] %v1691_v53  ;;  %1703 = vst [vmem:[#allocation3 + $0x48] sm:$0xff] %v1692_v55 }
 0x6ae   : > { %v2669_v61 = vsel %vm2639_vm5, %v5217_v5, %v3381_v57 }
 0x6af   : > { %v5254_v62 = vadd.f32 %v5204_v58, %v2623_v60  ;;  %2675 = vst [vmem:[#allocation4 + $0x2a] sm:$0xff] %v2669_v61 }
 0x6b1   : > { %v2648_v63 = vmin.f32 %v5254_v62, 0.0  ;;  %vm2642_vm10 = vcmp.gt.f32.partialorder %v5254_v62, 0.0 }
 0x6b2   : > { %v4193_v0 = vpop.eup %4192  ;;  %v1715_v46 = vld [vmem:[#allocation3 + $0x50] ss:$2 sm:$0x3] }
 0x6b3   : > { %v2657_v2 = vmul.f32 1.442695, %v2648_v63  ;;  %v3382_v3 = vadd.f32 -1.0, %v4193_v0  ;;  %3791 = vmatprep.subr.msk.mxu0 %vm1741_vm7, %v1715_v46  ;;  %v2625_v4 = vmul.f32 %v5200_v49, %v1715_v46  ;;  %3812 = vmatprep.subr.msk.mxu1 %vm1741_vm7, %v1715_v46 }
 0x6b4   : > { %3792 = vmatpush3.msk.msra.mxu0 %vm1741_vm7, %v1715_v46  ;;  %3813 = vmatpush3.msk.msra.mxu1 %vm1741_vm7, %v1715_v46  ;;  %v1713_v5 = vld [vmem:[#allocation3 + $0x40] ss:$2 sm:$0xff] }
 0x6b5   : > { %4196 = vpow2.f32 %v2657_v2  ;;  %v2670_v6 = vsel %vm2640_vm8, %v2634_v29, %v3382_v3  ;;  %v5263_v7 = vadd.f32 %v5204_v58, %v2625_v4  ;;  %3793 = vmatprep.subr.mxu0 %v1713_v5  ;;  %v2624_v8 = vmul.f32 %v5200_v49, %v1713_v5  ;;  %3814 = vmatprep.subr.mxu1 %v1713_v5 }
 0x6b6   : > { %2676 = vst [vmem:[#allocation4 + $0x32] sm:$0xff] %v2670_v6  ;;  %3794 = vmatpush3.msra.mxu0 %v1713_v5  ;;  %3815 = vmatpush3.msra.mxu1 %v1713_v5 }
 0x6b7   : > { %v2650_v10 = vmin.f32 %v5263_v7, 0.0  ;;  %v5268_v11 = vadd.f32 %v5204_v58, %v2624_v8  ;;  %3795 = vmatprep.subr.mxu0 %v5247_v56  ;;  %3816 = vmatprep.subr.mxu1 %v5247_v56  ;;  %vm2644_vm11 = vcmp.gt.f32.partialorder %v5263_v7, 0.0 }
 0x6b8   : > { %3796 = vmatpush3.msra.mxu0 %v5247_v56  ;;  %3817 = vmatpush3.msra.mxu1 %v5247_v56 }
 0x6b9   : > { %v2661_v13 = vmul.f32 1.442695, %v2650_v10  ;;  %v2649_v49 = vmin.f32 %v5268_v11, 0.0  ;;  %3797 = vmatprep.subr.mxu0 %v5236_v25  ;;  %3818 = vmatprep.subr.mxu1 %v5236_v25  ;;  %vm2643_vm12 = vcmp.gt.f32.partialorder %v5268_v11, 0.0 }
 0x6ba   : > { %v4195_v9 = vpop.eup %4194  ;;  %3798 = vmatpush3.msra.mxu0 %v5236_v25  ;;  %3819 = vmatpush3.msra.mxu1 %v5236_v25 }
 0x6bb   : > { %v3383_v14 = vadd.f32 -1.0, %v4195_v9  ;;  %4198 = vpow2.f32 %v2661_v13  ;;  %v2659_v58 = vmul.f32 1.442695, %v2649_v49  ;;  %3799 = vmatprep.subr.mxu0 %v5223_v20  ;;  %3820 = vmatprep.subr.mxu1 %v5223_v20 }
 0x6bc   : > { %3800 = vmatpush3.msra.mxu0 %v5223_v20  ;;  %3821 = vmatpush3.msra.mxu1 %v5223_v20 }
 0x6bd   : > { %v2671_v52 = vsel %vm2641_vm9, %v5242_v43, %v3383_v14  ;;  %4200 = vpow2.f32 %v2659_v58  ;;  %3801 = vmatprep.subr.mxu0 %v5206_v59  ;;  %3822 = vmatprep.subr.mxu1 %v5206_v59 }
 0x6be   : > { %2677 = vst [vmem:[#allocation4 + $0x3a] sm:$0xff] %v2671_v52  ;;  %3802 = vmatpush3.msra.mxu0 %v5206_v59  ;;  %3823 = vmatpush3.msra.mxu1 %v5206_v59 }
 0x6bf   : > { %3804 = vmatmul.mubr.msk.f32.vlgmr.msra.gmra.mxu0 %vm1722_vm6, %v1717_v15  ;;  %3833 = vmatprep.subr.msk.mxu0 %vm1741_vm7, %v1715_v46 }
 0x6c0   : > { %3834 = vmatpush3.msk.msra.mxu0 %vm1741_vm7, %v1715_v46  ;;  %3806 = vmatprep.mubr.msk.f32.mxu0 %vm1722_vm6, %v1718_v16 }
 0x6c1   : > { %3835 = vmatprep.subr.mxu0 %v1713_v5  ;;  %3825 = vmatmul.mubr.msk.f32.vlgmr.msra.gmra.mxu1 %vm1722_vm6, %v1841_v19  ;;  %v1959_v19 = vld [vmem:[%s5522_s10] sm:$0xff] }
 0x6c2   : > { %v4197_v22 = vpop.eup %4196  ;;  %3836 = vmatpush3.msra.mxu0 %v1713_v5  ;;  %3827 = vmatprep.mubr.msk.f32.mxu1 %vm1722_vm6, %v1842_v12  ;;  %v1960_v12 = vld [vmem:[%s5522_s10 + $0x8] sm:$0xff] }
 0x6c3   : > { %v3384_v24 = vadd.f32 -1.0, %v4197_v22  ;;  %3837 = vmatprep.subr.mxu0 %v5247_v56  ;;  %3807 = vmatmul.mubr.msk.f32.gmra.mxu0 %vm1722_vm6, %v1719_v21  ;;  %v1961_v21 = vld [vmem:[%s5522_s10 + $0x10] sm:$0xff]  ;;  %v1962_v22 = vld [vmem:[%s5522_s10 + $0x18] sm:$0xff] }
 0x6c4   : > { %3838 = vmatpush3.msra.mxu0 %v5247_v56  ;;  %3809 = vmatprep.mubr.msk.f32.mxu0 %vm1722_vm6, %v1720_v23  ;;  %v1963_v23 = vld [vmem:[%s5522_s10 + $0x20] sm:$0xff] }
 0x6c5   : > { %v2672_v29 = vsel %vm2642_vm10, %v5254_v62, %v3384_v24  ;;  %3839 = vmatprep.subr.mxu0 %v5236_v25  ;;  %3828 = vmatmul.mubr.msk.f32.gmra.mxu1 %vm1722_vm6, %v1843_v27  ;;  %v1964_v24 = vld [vmem:[%s5522_s10 + $0x28] sm:$0x3] }
 0x6c6   : > { %2678 = vst [vmem:[#allocation4 + $0x42] sm:$0xff] %v2672_v29  ;;  %3840 = vmatpush3.msra.mxu0 %v5236_v25  ;;  %3830 = vmatprep.mubr.msk.f32.mxu1 %vm1722_vm6, %v1844_v28 }
 0x6c7   : > { %3841 = vmatprep.subr.mxu0 %v5223_v20  ;;  %3810 = vmatmul.mubr.msk.f32.gmra.mxu0 %vm1722_vm6, %v1721_v31 }
 0x6c8   : > { %v4199_v32 = vpop.eup %4198  ;;  %3842 = vmatpush3.msra.mxu0 %v5223_v20  ;;  %v3790_v20 = vpop.f32.mrf.mxu1  ;;  %3845 = vmatprep.mubr.msk.f32.mxu0 %vm1722_vm6, %v1959_v19 }
 0x6c9   : > { %v3386_v33 = vadd.f32 -1.0, %v4199_v32  ;;  %3843 = vmatprep.subr.mxu0 %v5206_v59  ;;  %3831 = vmatmul.mubr.msk.f32.gmra.mxu1 %vm1722_vm6, %v1845_v54 }
 0x6ca   : > { %v4201_v34 = vpop.eup %4200  ;;  %3844 = vmatpush3.msra.mxu0 %v5206_v59  ;;  %v1475_v38 = vpop.f32.mrf.mxu1 }
 0x6cb   : > { %v2674_v35 = vsel %vm2644_vm11, %v5263_v7, %v3386_v33  ;;  %v3385_v36 = vadd.f32 -1.0, %v4201_v34  ;;  %3846 = vmatmul.mubr.msk.f32.vlgmr.msra.gmra.mxu0 %vm1722_vm6, %v1960_v12 }
 0x6cc   : > { %2680 = vst [vmem:[#allocation4 + $0x52] sm:$0x3] %v2674_v35  ;;  %3848 = vmatprep.mubr.msk.f32.mxu0 %vm1722_vm6, %v1961_v21 }
 0x6cd   : > { %v2673_v37 = vsel %vm2643_vm12, %v5268_v11, %v3385_v36 }
 0x6ce   : > { %2679 = vst [vmem:[#allocation4 + $0x4a] sm:$0xff] %v2673_v37 }
 0x6cf   : > { %3849 = vmatmul.mubr.msk.f32.gmra.mxu0 %vm1722_vm6, %v1962_v22 }
 0x6d0   : > { %3851 = vmatprep.mubr.msk.f32.mxu0 %vm1722_vm6, %v1963_v23 }
 0x6d3   : > { %3852 = vmatmul.mubr.msk.f32.gmra.mxu0 %vm1722_vm6, %v1964_v24 }
 0x77f   : > { %v3805_v39 = vpop.f32.mrf.mxu0 }
 0x781   : > { %v1811_v40 = vpop.f32.mrf.mxu0  ;;  %v3826_v25 = vpop.f32.mrf.mxu1 }
 0x782   : > { %2078 = vxpose.xlu1.b32.start [1/6] (short) %v1811_v40, 128 }
 0x783   : > { %v1930_v17 = vpop.f32.mrf.mxu1  ;;  %v3808_v18 = vpop.f32.mrf.mxu0 }
 0x785   : > { %v3829_v41 = vpop.f32.mrf.mxu1  ;;  %v1821_v42 = vpop.f32.mrf.mxu0 }
 0x786   : > { %2079 = vxpose.xlu1.b32.cont [2/6] (short) %v3805_v39, 128 }
 0x787   : > { %v1940_v59 = vpop.f32.mrf.mxu1  ;;  %v3811_v44 = vpop.f32.mrf.mxu0 }
 0x789   : > { %v3832_v43 = vpop.f32.mrf.mxu1  ;;  %v1831_v45 = vpop.f32.mrf.mxu0 }
 0x78a   : > { %2080 = vxpose.xlu1.b32.cont [3/6] (short) %v1821_v42, 128  ;;  %3854 = vmatprep.subr.msk.mxu1 %vm1741_vm7, %v3832_v43 }
 0x78b   : > { %v1950_v26 = vpop.f32.mrf.mxu1  ;;  %3855 = vmatpush3.msk.msra.mxu1 %vm1741_vm7, %v3832_v43 }
 0x78c   : > { %3856 = vmatprep.subr.mxu1 %v1950_v26 }
 0x78d   : > { %3857 = vmatpush3.msra.mxu1 %v1950_v26 }
 0x78e   : > { %2081 = vxpose.xlu1.b32.cont [4/6] (short) %v3808_v18, 128  ;;  %3858 = vmatprep.subr.mxu1 %v3829_v41 }
 0x78f   : > { %3859 = vmatpush3.msra.mxu1 %v3829_v41 }
 0x790   : > { %3860 = vmatprep.subr.mxu1 %v1940_v59 }
 0x791   : > { %3861 = vmatpush3.msra.mxu1 %v1940_v59 }
 0x792   : > { %2082 = vxpose.xlu1.b32.cont [5/6] (short) %v1831_v45, 128  ;;  %3862 = vmatprep.subr.mxu1 %v3826_v25 }
 0x793   : > { %3863 = vmatpush3.msra.mxu1 %v3826_v25 }
 0x794   : > { %3864 = vmatprep.subr.mxu1 %v1930_v17 }
 0x795   : > { %3865 = vmatpush3.msra.mxu1 %v1930_v17 }
 0x796   : > { %2083 = vxpose.xlu1.b32.end [6/6] (short) %v3811_v44, 128 }
 0x7fe   : > { %v2094_v48 = vpop.trf.xlu1 }
 0x7ff   : > { %3866 = vmatprep.mubr.msk.f32.mxu1 %vm1722_vm6, %v2094_v48 }
 0x802   : > { %v2095_v47 = vpop.trf.xlu1 }
 0x803   : > { %3867 = vmatmul.mubr.msk.f32.vlgmr.msra.gmra.mxu1 %vm1722_vm6, %v2095_v47 }
 0x806   : > { %v2096_v30 = vpop.trf.xlu1 }
 0x807   : > { %3869 = vmatprep.mubr.msk.f32.mxu1 %vm1722_vm6, %v2096_v30 }
 0x80a   : > { %v2097_v50 = vpop.trf.xlu1 }
 0x80b   : > { %3870 = vmatmul.mubr.msk.f32.gmra.mxu1 %vm1722_vm6, %v2097_v50 }
 0x80e   : > { %v2098_v51 = vpop.trf.xlu1 }
 0x80f   : > { %3872 = vmatprep.mubr.msk.f32.mxu1 %vm1722_vm6, %v2098_v51 }
 0x812   : > { %v2099_v53 = vpop.trf.xlu1 }
 0x813   : > { %3873 = vmatmul.mubr.msk.f32.gmra.mxu1 %vm1722_vm6, %v2099_v53 }
 0x816   : > { %v2100_v55 = vpop.trf.xlu1 }
 0x817   : > { %3875 = vmatprep.mubr.msk.f32.mxu1 %vm1722_vm6, %v2100_v55 }
 0x81a   : > { %v2101_v56 = vpop.trf.xlu1 }
 0x81b   : > { %3876 = vmatmul.mubr.msk.f32.gmra.mxu1 %vm1722_vm6, %v2101_v56 }
 0x81e   : > { %v2102_v57 = vpop.trf.xlu1 }
 0x81f   : > { %3878 = vmatprep.mubr.msk.f32.mxu1 %vm1722_vm6, %v2102_v57 }
 0x822   : > { %v2103_v60 = vpop.trf.xlu1 }
 0x823   : > { %3879 = vmatmul.mubr.msk.f32.gmra.mxu1 %vm1722_vm6, %v2103_v60 }
 0x826   : > { %v2104_v61 = vpop.trf.xlu1 }
 0x827   : > { %3881 = vmatprep.mubr.msk.f32.mxu1 %vm1722_vm6, %v2104_v61 }
 0x82a   : > { %v2105_v62 = vpop.trf.xlu1 }
 0x82b   : > { %3882 = vmatmul.mubr.msk.f32.gmra.mxu1 %vm1722_vm6, %v2105_v62 }
 0x82e   : > { %v2106_v63 = vpop.trf.xlu1 }
 0x82f   : > { %3884 = vmatprep.mubr.msk.f32.mxu1 %vm1722_vm6, %v2106_v63 }
 0x832   : > { %v2107_v0 = vpop.trf.xlu1 }
 0x833   : > { %3885 = vmatmul.mubr.msk.f32.gmra.mxu1 %vm1722_vm6, %v2107_v0 }
 0x836   : > { %v2108_v46 = vpop.trf.xlu1 }
 0x837   : > { %3887 = vmatprep.mubr.msk.f32.mxu1 %vm1722_vm6, %v2108_v46 }
 0x83a   : > { %v2109_v2 = vpop.trf.xlu1 }
 0x83b   : > { %3888 = vmatmul.mubr.msk.f32.gmra.mxu1 %vm1722_vm6, %v2109_v2 }
 0x8c3   : > { %v5333_v3 = vpop.f32.mrf.mxu1 }
 0x8c5   : > { %v5335_v4 = vpop.f32.mrf.mxu1 }
 0x8cb   : > { %v5337_v5 = vpop.f32.mrf.mxu1 }
 0x8cd   : > { %v5339_v6 = vpop.f32.mrf.mxu1 }
 0x8d3   : > { %v5341_v7 = vpop.f32.mrf.mxu1 }
 0x8d5   : > { %v5343_v8 = vpop.f32.mrf.mxu1 }
 0x8db   : > { %v5345_v10 = vpop.f32.mrf.mxu1 }
 0x8dd   : > { %v5347_v11 = vpop.f32.mrf.mxu1 }
 0x8e3   : > { %v3880_v9 = vpop.f32.mrf.mxu1 }
 0x8e5   : > { %v5349_v13 = vpop.f32.mrf.mxu1 }
 0x8eb   : > { %v3883_v49 = vpop.f32.mrf.mxu1 }
 0x8ed   : > { %v2277_v14 = vpop.f32.mrf.mxu1 }
 0x8f3   : > { %v3886_v58 = vpop.f32.mrf.mxu1 }
 0x8f5   : > { %v2287_v52 = vpop.f32.mrf.mxu1 }
 0x8fb   : > { %v3889_v15 = vpop.f32.mrf.mxu1 }
 0x8fc   : > { %2336 = vmax.xlane.f32.xlu0 %v3889_v15 }
 0x8fd   : > { %v2297_v16 = vpop.f32.mrf.mxu1 }
 0x8fe   : > { %2334 = vmax.xlane.f32.xlu1 %v2297_v16 }
 0x900   : > { %2332 = vmax.xlane.f32.xlu0 %v3886_v58 }
 0x902   : > { %2324 = vmax.xlane.f32.xlu1 %v3880_v9 }
 0x904   : > { %2330 = vmax.xlane.f32.xlu0 %v2287_v52 }
 0x906   : > { %2320 = vmax.xlane.f32.xlu1 %v5345_v10 }
 0x908   : > { %2328 = vmax.xlane.f32.xlu0 %v3883_v49 }
 0x90a   : > { %2316 = vmax.xlane.f32.xlu1 %v5341_v7 }
 0x90c   : > { %2326 = vmax.xlane.f32.xlu0 %v2277_v14 }
 0x90e   : > { %2312 = vmax.xlane.f32.xlu1 %v5337_v5 }
 0x910   : > { %2322 = vmax.xlane.f32.xlu0 %v5349_v13 }
 0x912   : > { %2308 = vmax.xlane.f32.xlu1 %v5333_v3 }
 0x914   : > { %2318 = vmax.xlane.f32.xlu0 %v5347_v11 }
 0x918   : > { %2314 = vmax.xlane.f32.xlu0 %v5343_v8 }
 0x91c   : > { %2310 = vmax.xlane.f32.xlu0 %v5339_v6 }
 0x920   : > { %2306 = vmax.xlane.f32.xlu0 %v5335_v4 }
 0x985   : > { %v2337_v27 = vpop.xlane.xlu0 %2336 }
 0x986   : > { %v2353_v28 = vsub.f32 %v3889_v15, %v2337_v27 }
 0x987   : > { %v2335_v29 = vpop.xlane.xlu1 %2334 }
 0x988   : > { %v2384_v31 = vmul.f32 1.442695, %v2353_v28  ;;  %v2352_v54 = vsub.f32 %v2297_v16, %v2335_v29  ;;  %v5441_v28 = vpop.f32.mrf.mxu0 }
 0x989   : > { %v2333_v32 = vpop.xlane.xlu0 %2332 }
 0x98a   : > { %4202 = vpow2.f32 %v2384_v31  ;;  %v2382_v33 = vmul.f32 1.442695, %v2352_v54  ;;  %v2351_v34 = vsub.f32 %v3886_v58, %v2333_v32  ;;  %v2049_v29 = vpop.f32.mrf.mxu0 }
 0x98b   : > { %v2325_v35 = vpop.xlane.xlu1 %2324  ;;  %3922 = vmatprep.mubr.f32.mxu0 %v2049_v29  ;;  %v2740_v29 = vld [vmem:[#allocation20 + $0xd0] sm:$0xff] }
 0x98c   : > { %4204 = vpow2.f32 %v2382_v33  ;;  %v2380_v36 = vmul.f32 1.442695, %v2351_v34  ;;  %v2347_v40 = vsub.f32 %v3880_v9, %v2325_v35 }
 0x98d   : > { %v2331_v37 = vpop.xlane.xlu0 %2330 }
 0x98e   : > { %4206 = vpow2.f32 %v2380_v36  ;;  %v2350_v20 = vsub.f32 %v2287_v52, %v2331_v37  ;;  %v2372_v59 = vmul.f32 1.442695, %v2347_v40 }
 0x98f   : > { %v2321_v38 = vpop.xlane.xlu1 %2320 }
 0x990   : > { %v2378_v39 = vmul.f32 1.442695, %v2350_v20  ;;  %v2345_v42 = vsub.f32 %v5345_v10, %v2321_v38 }
 0x991   : > { %v2329_v25 = vpop.xlane.xlu0 %2328 }
 0x992   : > { %4208 = vpow2.f32 %v2378_v39  ;;  %v2349_v17 = vsub.f32 %v3883_v49, %v2329_v25  ;;  %v2368_v30 = vmul.f32 1.442695, %v2345_v42 }
 0x993   : > { %v2317_v18 = vpop.xlane.xlu1 %2316 }
 0x994   : > { %v2376_v41 = vmul.f32 1.442695, %v2349_v17  ;;  %v2343_v50 = vsub.f32 %v5341_v7, %v2317_v18 }
 0x995   : > { %v2327_v43 = vpop.xlane.xlu0 %2326 }
 0x996   : > { %4210 = vpow2.f32 %v2376_v41  ;;  %v2348_v26 = vsub.f32 %v2277_v14, %v2327_v43  ;;  %v2364_v57 = vmul.f32 1.442695, %v2343_v50 }
 0x997   : > { %v5385_v44 = vpop.eup %4202  ;;  %v2313_v48 = vpop.xlane.xlu1 %2312  ;;  %4212 = vpow2.f32 %v2372_v59 }
 0x998   : > { %v2374_v45 = vmul.f32 1.442695, %v2348_v26  ;;  %2416 = vadd.xlane.f32.xlu1 %v5385_v44  ;;  %v2341_v60 = vsub.f32 %v5337_v5, %v2313_v48 }
 0x999   : > { %v5388_v47 = vpop.eup %4204  ;;  %v2323_v51 = vpop.xlane.xlu0 %2322 }
 0x99a   : > { %4214 = vpow2.f32 %v2374_v45  ;;  %v2346_v53 = vsub.f32 %v5349_v13, %v2323_v51  ;;  %2414 = vadd.xlane.f32.xlu0 %v5388_v47  ;;  %v2360_v2 = vmul.f32 1.442695, %v2341_v60 }
 0x99b   : > { %v5393_v55 = vpop.eup %4206  ;;  %4216 = vpow2.f32 %v2368_v30  ;;  %v2309_v62 = vpop.xlane.xlu1 %2308 }
 0x99c   : > { %v2370_v56 = vmul.f32 1.442695, %v2346_v53  ;;  %2412 = vadd.xlane.f32.xlu1 %v5393_v55  ;;  %v2339_v7 = vsub.f32 %v5333_v3, %v2309_v62 }
 0x99d   : > { %v2319_v61 = vpop.xlane.xlu0 %2318 }
 0x99e   : > { %4218 = vpow2.f32 %v2370_v56  ;;  %v2344_v63 = vsub.f32 %v5347_v11, %v2319_v61  ;;  %v2356_v11 = vmul.f32 1.442695, %v2339_v7 }
 0x99f   : > { %v5398_v0 = vpop.eup %4208  ;;  %4220 = vpow2.f32 %v2364_v57 }
 0x9a0   : > { %v2366_v46 = vmul.f32 1.442695, %v2344_v63  ;;  %2410 = vadd.xlane.f32.xlu0 %v5398_v0 }
 0x9a1   : > { %v2315_v10 = vpop.xlane.xlu0 %2314 }
 0x9a2   : > { %4222 = vpow2.f32 %v2366_v46  ;;  %v2342_v9 = vsub.f32 %v5343_v8, %v2315_v10 }
 0x9a3   : > { %v5403_v13 = vpop.eup %4210  ;;  %4224 = vpow2.f32 %v2360_v2 }
 0x9a4   : > { %v2362_v5 = vmul.f32 1.442695, %v2342_v9  ;;  %2408 = vadd.xlane.f32.xlu1 %v5403_v13  ;;  %v5406_v14 = vpop.eup %4212 }
 0x9a5   : > { %v2311_v49 = vpop.xlane.xlu0 %2310 }
 0x9a6   : > { %4226 = vpow2.f32 %v2362_v5  ;;  %v2340_v58 = vsub.f32 %v5339_v6, %v2311_v49 }
 0x9a7   : > { %v5409_v52 = vpop.eup %4214  ;;  %4228 = vpow2.f32 %v2356_v11 }
 0x9a8   : > { %v2358_v3 = vmul.f32 1.442695, %v2340_v58  ;;  %2406 = vadd.xlane.f32.xlu0 %v5409_v52  ;;  %2404 = vadd.xlane.f32.xlu1 %v5406_v14  ;;  %v5413_v15 = vpop.eup %4216 }
 0x9a9   : > { %v2307_v8 = vpop.xlane.xlu0 %2306 }
 0x9aa   : > { %4230 = vpow2.f32 %v2358_v3  ;;  %v2338_v16 = vsub.f32 %v5335_v4, %v2307_v8  ;;  %v3850_v3 = vpop.f32.mrf.mxu0 }
 0x9ab   : > { %v5416_v19 = vpop.eup %4218 }
 0x9ac   : > { %v2354_v12 = vmul.f32 1.442695, %v2338_v16  ;;  %2402 = vadd.xlane.f32.xlu0 %v5416_v19  ;;  %2400 = vadd.xlane.f32.xlu1 %v5413_v15  ;;  %v5420_v6 = vpop.eup %4220  ;;  %v2059_v8 = vpop.f32.mrf.mxu0 }
 0x9ae   : > { %4232 = vpow2.f32 %v2354_v12  ;;  %v2729_v12 = vld [vmem:[#allocation20 + $0x78] sm:$0xff] }
 0x9af   : > { %v5422_v21 = vpop.eup %4222 }
 0x9b0   : > { %2398 = vadd.xlane.f32.xlu0 %v5422_v21  ;;  %2396 = vadd.xlane.f32.xlu1 %v5420_v6  ;;  %v5426_v22 = vpop.eup %4224 }
 0x9b3   : > { %v5428_v23 = vpop.eup %4226 }
 0x9b4   : > { %2394 = vadd.xlane.f32.xlu0 %v5428_v23  ;;  %2392 = vadd.xlane.f32.xlu1 %v5426_v22  ;;  %v5432_v4 = vpop.eup %4228 }
 0x9b7   : > { %v5434_v24 = vpop.eup %4230 }
 0x9b8   : > { %2390 = vadd.xlane.f32.xlu0 %v5434_v24  ;;  %2388 = vadd.xlane.f32.xlu1 %v5432_v4 }
 0x9bb   : > { %v5438_v27 = vpop.eup %4232 }
 0x9bc   : > { %2386 = vadd.xlane.f32.xlu0 %v5438_v27 }
 0xa21   : > { %v2417_v31 = vpop.xlane.xlu1 %2416 }
 0xa22   : > { %4234 = vrcp.f32 %v2417_v31  ;;  %v2724_v31 = vld [vmem:[#allocation20 + $0x50] sm:$0xff] }
 0xa23   : > { %v2415_v54 = vpop.xlane.xlu0 %2414 }
 0xa24   : > { %4236 = vrcp.f32 %v2415_v54  ;;  %v2739_v54 = vld [vmem:[#allocation20 + $0xc8] sm:$0xff] }
 0xa25   : > { %v2413_v32 = vpop.xlane.xlu1 %2412 }
 0xa26   : > { %4238 = vrcp.f32 %v2413_v32  ;;  %v2723_v32 = vld [vmem:[#allocation20 + $0x48] sm:$0xff] }
 0xa29   : > { %v2411_v33 = vpop.xlane.xlu0 %2410 }
 0xa2a   : > { %4240 = vrcp.f32 %v2411_v33  ;;  %v2738_v33 = vld [vmem:[#allocation20 + $0xc0] sm:$0xff] }
 0xa2d   : > { %v2409_v34 = vpop.xlane.xlu1 %2408 }
 0xa2e   : > { %4242 = vrcp.f32 %v2409_v34  ;;  %v2722_v34 = vld [vmem:[#allocation20 + $0x40] sm:$0xff] }
 0xa2f   : > { %v4235_v35 = vpop.eup %4234 }
 0xa30   : > { %v2449_v36 = vmul.f32 %v4235_v35, %v5385_v44  ;;  %v2737_v35 = vld [vmem:[#allocation20 + $0xb8] sm:$0xff] }
 0xa31   : > { %v4237_v37 = vpop.eup %4236  ;;  %v2407_v20 = vpop.xlane.xlu0 %2406 }
 0xa32   : > { %4244 = vrcp.f32 %v2407_v20  ;;  %3890 = vmatprep.subr.mxu0 %v2449_v36  ;;  %v2448_v38 = vmul.f32 %v4237_v37, %v5388_v47  ;;  %v2405_v40 = vpop.xlane.xlu1 %2404  ;;  %v2736_v37 = vld [vmem:[#allocation20 + $0xb0] sm:$0xff] }
 0xa33   : > { %v4239_v39 = vpop.eup %4238  ;;  %3891 = vmatpush3.xpose.msra.mxu0 %v2449_v36  ;;  %4246 = vrcp.f32 %v2405_v40  ;;  %v2721_v36 = vld [vmem:[#allocation20 + $0x38] sm:$0xff]  ;;  %v2720_v20 = vld [vmem:[#allocation20 + $0x30] sm:$0xff]  ;;  %v2734_v40 = vld [vmem:[#allocation20 + $0xa0] sm:$0xff] }
 0xa34   : > { %3892 = vmatprep.subr.mxu0 %v2448_v38  ;;  %v2447_v25 = vmul.f32 %v4239_v39, %v5393_v55  ;;  %v2719_v39 = vld [vmem:[#allocation20 + $0x28] sm:$0xff] }
 0xa35   : > { %v2403_v18 = vpop.xlane.xlu0 %2402 }
 0xa36   : > { %4248 = vrcp.f32 %v2403_v18  ;;  %v2401_v42 = vpop.xlane.xlu1 %2400  ;;  %v2717_v18 = vld [vmem:[#allocation20 + $0x18] sm:$0xff] }
 0xa37   : > { %v4241_v17 = vpop.eup %4240  ;;  %3893 = vmatpush3.xpose.msra.mxu0 %v2448_v38  ;;  %4250 = vrcp.f32 %v2401_v42  ;;  %v2735_v38 = vld [vmem:[#allocation20 + $0xa8] sm:$0xff] }
 0xa38   : > { %3894 = vmatprep.subr.mxu0 %v2447_v25  ;;  %v2446_v41 = vmul.f32 %v4241_v17, %v5398_v0  ;;  %v2733_v17 = vld [vmem:[#allocation20 + $0x98] sm:$0xff]  ;;  %v2731_v42 = vld [vmem:[#allocation20 + $0x88] sm:$0xff] }
 0xa39   : > { %v2399_v44 = vpop.xlane.xlu0 %2398 }
 0xa3a   : > { %4252 = vrcp.f32 %v2399_v44  ;;  %v2397_v47 = vpop.xlane.xlu1 %2396  ;;  %v2714_v44 = vld [vmem:[#allocation20] sm:$0xff] }
 0xa3b   : > { %v4243_v59 = vpop.eup %4242  ;;  %3895 = vmatpush3.xpose.msra.mxu0 %v2447_v25  ;;  %4254 = vrcp.f32 %v2397_v47  ;;  %v2718_v25 = vld [vmem:[#allocation20 + $0x20] sm:$0xff] }
 0xa3c   : > { %3896 = vmatprep.subr.mxu0 %v2446_v41  ;;  %v2445_v43 = vmul.f32 %v4243_v59, %v5403_v13  ;;  %v2716_v59 = vld [vmem:[#allocation20 + $0x10] sm:$0xff] }
 0xa3d   : > { %v2395_v51 = vpop.xlane.xlu0 %2394 }
 0xa3e   : > { %4256 = vrcp.f32 %v2395_v51  ;;  %v2393_v56 = vpop.xlane.xlu1 %2392 }
 0xa3f   : > { %v4245_v26 = vpop.eup %4244  ;;  %3897 = vmatpush3.xpose.msra.mxu0 %v2446_v41  ;;  %4258 = vrcp.f32 %v2393_v56  ;;  %v2732_v41 = vld [vmem:[#allocation20 + $0x90] sm:$0xff] }
 0xa40   : > { %3898 = vmatprep.subr.mxu0 %v2445_v43  ;;  %v2444_v45 = vmul.f32 %v4245_v26, %v5409_v52  ;;  %v4247_v48 = vpop.eup %4246  ;;  %v2730_v26 = vld [vmem:[#allocation20 + $0x80] sm:$0xff] }
 0xa41   : > { %v2443_v30 = vmul.f32 %v4247_v48, %v5406_v14  ;;  %v2391_v61 = vpop.xlane.xlu0 %2390  ;;  %v4286_v48 = vld [vmem:[#allocation23] ss:$0 sm:$0xff] }
 0xa42   : > { %4260 = vrcp.f32 %v2391_v61  ;;  %v2389_v0 = vpop.xlane.xlu1 %2388 }
 0xa43   : > { %3899 = vmatpush3.xpose.msra.mxu0 %v2445_v43  ;;  %v4249_v50 = vpop.eup %4248  ;;  %4262 = vrcp.f32 %v2389_v0  ;;  %v2715_v43 = vld [vmem:[#allocation20 + $0x8] sm:$0xff] }
 0xa44   : > { %3900 = vmatprep.subr.mxu0 %v2444_v45  ;;  %v2442_v53 = vmul.f32 %v4249_v50, %v5416_v19  ;;  %v4251_v55 = vpop.eup %4250  ;;  %v2745_v19 = vld [vmem:[#allocation20 + $0xf8] sm:$0xff]  ;;  %v4287_v50 = vld [vmem:[#allocation25] ss:$0 sm:$0xff] }
 0xa45   : > { %v2441_v57 = vmul.f32 %v4251_v55, %v5413_v15  ;;  %v2387_v7 = vpop.xlane.xlu0 %2386  ;;  %v3853_v15 = vpop.f32.mrf.mxu0  ;;  %3547 = vmatprep.subr.mxu1 %v2745_v19 }
 0xa46   : > { %4264 = vrcp.f32 %v2387_v7  ;;  %3548 = vmatpush3.msra.mxu1 %v2729_v12 }
 0xa47   : > { %3901 = vmatpush3.xpose.msra.mxu0 %v2444_v45  ;;  %v4253_v60 = vpop.eup %4252  ;;  %v2069_v16 = vpop.f32.mrf.mxu0 }
 0xa48   : > { %3902 = vmatprep.subr.mxu0 %v2443_v30  ;;  %v2440_v62 = vmul.f32 %v4253_v60, %v5422_v21  ;;  %v4255_v63 = vpop.eup %4254  ;;  %v2728_v21 = vld [vmem:[#allocation20 + $0x70] sm:$0xff] }
 0xa49   : > { %v2439_v46 = vmul.f32 %v4255_v63, %v5420_v6  ;;  %v2744_v6 = vld [vmem:[#allocation20 + $0xf0] sm:$0xff] }
 0xa4a   : > { %3549 = vmatprep.subr.mxu1 %v2744_v6 }
 0xa4b   : > { %3903 = vmatpush3.xpose.msra.mxu0 %v2443_v30  ;;  %v4257_v2 = vpop.eup %4256  ;;  %3550 = vmatpush3.msra.mxu1 %v2728_v21 }
 0xa4c   : > { %3904 = vmatprep.subr.mxu0 %v2442_v53  ;;  %v2438_v10 = vmul.f32 %v4257_v2, %v5428_v23  ;;  %v4259_v9 = vpop.eup %4258  ;;  %v2727_v23 = vld [vmem:[#allocation20 + $0x68] sm:$0xff] }
 0xa4d   : > { %v2437_v13 = vmul.f32 %v4259_v9, %v5426_v22  ;;  %v2743_v22 = vld [vmem:[#allocation20 + $0xe8] sm:$0xff] }
 0xa4e   : > { %3551 = vmatprep.subr.mxu1 %v2743_v22 }
 0xa4f   : > { %3905 = vmatpush3.xpose.msra.mxu0 %v2442_v53  ;;  %v4261_v5 = vpop.eup %4260  ;;  %3552 = vmatpush3.msra.mxu1 %v2727_v23 }
 0xa50   : > { %3906 = vmatprep.subr.mxu0 %v2441_v57  ;;  %v2436_v11 = vmul.f32 %v4261_v5, %v5434_v24  ;;  %v4263_v49 = vpop.eup %4262  ;;  %v2726_v24 = vld [vmem:[#allocation20 + $0x60] sm:$0xff] }
 0xa51   : > { %v2435_v14 = vmul.f32 %v4263_v49, %v5432_v4  ;;  %v2742_v4 = vld [vmem:[#allocation20 + $0xe0] sm:$0xff] }
 0xa52   : > { %3553 = vmatprep.subr.mxu1 %v2742_v4 }
 0xa53   : > { %3907 = vmatpush3.xpose.msra.mxu0 %v2441_v57  ;;  %v4265_v58 = vpop.eup %4264  ;;  %3554 = vmatpush3.msra.mxu1 %v2726_v24 }
 0xa54   : > { %3908 = vmatprep.subr.mxu0 %v2440_v62  ;;  %v2434_v52 = vmul.f32 %v4265_v58, %v5438_v27  ;;  %v2741_v27 = vld [vmem:[#allocation20 + $0xd8] sm:$0xff] }
 0xa55   : > { %3555 = vmatprep.subr.mxu1 %v2741_v27 }
 0xa57   : > { %3909 = vmatpush3.xpose.msra.mxu0 %v2440_v62 }
 0xa58   : > { %3910 = vmatprep.subr.mxu0 %v2439_v46 }
 0xa5b   : > { %3911 = vmatpush3.xpose.msra.mxu0 %v2439_v46 }
 0xa5c   : > { %3912 = vmatprep.subr.mxu0 %v2438_v10 }
 0xa5f   : > { %3913 = vmatpush3.xpose.msra.mxu0 %v2438_v10 }
 0xa60   : > { %3914 = vmatprep.subr.mxu0 %v2437_v13 }
 0xa63   : > { %3915 = vmatpush3.xpose.msra.mxu0 %v2437_v13 }
 0xa64   : > { %3916 = vmatprep.subr.mxu0 %v2436_v11 }
 0xa67   : > { %3917 = vmatpush3.xpose.msra.mxu0 %v2436_v11 }
 0xa68   : > { %3918 = vmatprep.subr.mxu0 %v2435_v14 }
 0xa6b   : > { %3919 = vmatpush3.xpose.msra.mxu0 %v2435_v14 }
 0xa6c   : > { %3920 = vmatprep.subr.mxu0 %v2434_v52 }
 0xa6f   : > { %3921 = vmatpush3.xpose.msra.mxu0 %v2434_v52 }
 0xa72   : > { %3923 = vmatmul.mubr.f32.vlgmr.msra.gmra.mxu0 %v5441_v28  ;;  %v2725_v28 = vld [vmem:[#allocation20 + $0x58] sm:$0xff] }
 0xa73   : > { %3925 = vmatprep.mubr.f32.mxu0 %v2059_v8  ;;  %3556 = vmatpush3.msra.mxu1 %v2725_v28 }
 0xa74   : > { %3557 = vmatprep.subr.mxu1 %v2740_v29 }
 0xa75   : > { %3558 = vmatpush3.msra.mxu1 %v2724_v31 }
 0xa76   : > { %3926 = vmatmul.mubr.f32.gmra.mxu0 %v3850_v3  ;;  %3559 = vmatprep.subr.mxu1 %v2739_v54 }
 0xa77   : > { %3928 = vmatprep.mubr.f32.mxu0 %v2069_v16  ;;  %3560 = vmatpush3.msra.mxu1 %v2723_v32 }
 0xa78   : > { %3561 = vmatprep.subr.mxu1 %v2738_v33 }
 0xa79   : > { %3562 = vmatpush3.msra.mxu1 %v2722_v34 }
 0xa7a   : > { %3929 = vmatmul.mubr.f32.gmra.mxu0 %v3853_v15  ;;  %3563 = vmatprep.subr.mxu1 %v2737_v35 }
 0xa7b   : > { %3564 = vmatpush3.msra.mxu1 %v2721_v36 }
 0xa7c   : > { %3565 = vmatprep.subr.mxu1 %v2736_v37 }
 0xa7d   : > { %3566 = vmatpush3.msra.mxu1 %v2720_v20 }
 0xa7e   : > { %3567 = vmatprep.subr.mxu1 %v2735_v38  ;;  %v2761_v38 = vld [vmem:[#allocation20 + $0x178] sm:$0xff] }
 0xa7f   : > { %3568 = vmatpush3.msra.mxu1 %v2719_v39  ;;  %v2760_v39 = vld [vmem:[#allocation20 + $0x170] sm:$0xff] }
 0xa80   : > { %3569 = vmatprep.subr.mxu1 %v2734_v40 }
 0xa81   : > { %3570 = vmatpush3.msra.mxu1 %v2718_v25  ;;  %v2759_v25 = vld [vmem:[#allocation20 + $0x168] sm:$0xff] }
 0xa82   : > { %3571 = vmatprep.subr.mxu1 %v2733_v17 }
 0xa83   : > { %3572 = vmatpush3.msra.mxu1 %v2717_v18  ;;  %v2758_v18 = vld [vmem:[#allocation20 + $0x160] sm:$0xff] }
 0xa84   : > { %3573 = vmatprep.subr.mxu1 %v2732_v41  ;;  %v2757_v41 = vld [vmem:[#allocation20 + $0x158] sm:$0xff] }
 0xa85   : > { %3574 = vmatpush3.msra.mxu1 %v2716_v59 }
 0xa86   : > { %3575 = vmatprep.subr.mxu1 %v2731_v42  ;;  %v2756_v42 = vld [vmem:[#allocation20 + $0x150] sm:$0xff] }
 0xa87   : > { %3576 = vmatpush3.msra.mxu1 %v2715_v43  ;;  %v2755_v43 = vld [vmem:[#allocation20 + $0x148] sm:$0xff] }
 0xa88   : > { %3577 = vmatprep.subr.mxu1 %v2730_v26 }
 0xa89   : > { %3578 = vmatpush3.msra.mxu1 %v2714_v44  ;;  %v2754_v44 = vld [vmem:[#allocation20 + $0x140] sm:$0xff] }
 0xa8a   : > { %3931 = vmatprep.subr.mxu1 %v4708_v1 }
 0xb32   : > { %v3924_v45 = vpop.f32.mrf.mxu0 }
 0xb33   : > { %v2553_v47 = vmul.f32 %v4286_v48, %v3924_v45  ;;  %v2753_v45 = vld [vmem:[#allocation20 + $0x138] sm:$0xff] }
 0xb34   : > { %v2516_v30 = vpop.f32.mrf.mxu0 }
 0xb35   : > { %v2566_v51 = vadd.f32 %v4287_v50, %v2553_v47  ;;  %v2552_v53 = vmul.f32 %v4286_v48, %v2516_v30  ;;  %v2752_v47 = vld [vmem:[#allocation20 + $0x130] sm:$0xff]  ;;  %v2751_v30 = vld [vmem:[#allocation20 + $0x128] sm:$0xff] }
 0xb36   : > { %v3927_v55 = vpop.f32.mrf.mxu0 }
 0xb37   : > { %v2578_v56 = vmin.f32 %v2566_v51, 0.0  ;;  %v2565_v57 = vadd.f32 %v4287_v50, %v2552_v53  ;;  %v2555_v60 = vmul.f32 %v4286_v48, %v3927_v55  ;;  %vm2572_vm6 = vcmp.gt.f32.partialorder %v2566_v51, 0.0  ;;  %v2750_v53 = vld [vmem:[#allocation20 + $0x120] sm:$0xff]  ;;  %v2749_v55 = vld [vmem:[#allocation20 + $0x118] sm:$0xff] }
 0xb38   : > { %v2526_v61 = vpop.f32.mrf.mxu0 }
 0xb39   : > { %v2585_v62 = vmul.f32 1.442695, %v2578_v56  ;;  %v2577_v63 = vmin.f32 %v2565_v57, 0.0  ;;  %v2568_v0 = vadd.f32 %v4287_v50, %v2555_v60  ;;  %v2554_v46 = vmul.f32 %v4286_v48, %v2526_v61  ;;  %v2687_v56 = vld [vmem:[#allocation4 + $0x30] sm:$0xff]  ;;  %v2747_v61 = vld [vmem:[#allocation20 + $0x108] sm:$0xff] }
 0xb3a   : > { %v3930_v2 = vpop.f32.mrf.mxu0  ;;  %vm2571_vm13 = vcmp.gt.f32.partialorder %v2565_v57, 0.0  ;;  %v2748_v60 = vld [vmem:[#allocation20 + $0x110] sm:$0xff] }
 0xb3b   : > { %4266 = vpow2.f32 %v2585_v62  ;;  %v2583_v7 = vmul.f32 1.442695, %v2577_v63  ;;  %v2580_v10 = vmin.f32 %v2568_v0, 0.0  ;;  %v2567_v9 = vadd.f32 %v4287_v50, %v2554_v46  ;;  %v2688_v62 = vld [vmem:[#allocation4 + $0x38] sm:$0xff]  ;;  %v2700_v63 = vld [vmem:[#allocation4 + $0x41] sm:$0xff] }
 0xb3c   : > { %v2557_v13 = vmul.f32 %v4286_v48, %v3930_v2  ;;  %v2536_v5 = vpop.f32.mrf.mxu0  ;;  %vm2574_vm14 = vcmp.gt.f32.partialorder %v2568_v0, 0.0  ;;  %v2689_v46 = vld [vmem:[#allocation4 + $0x40] sm:$0xff]  ;;  %v2701_v2 = vld [vmem:[#allocation4 + $0x49] sm:$0xff] }
 0xb3d   : > { %4268 = vpow2.f32 %v2583_v7  ;;  %v2589_v11 = vmul.f32 1.442695, %v2580_v10  ;;  %v2556_v49 = vmul.f32 %v4286_v48, %v2536_v5  ;;  %v2579_v14 = vmin.f32 %v2567_v9, 0.0  ;;  %v2690_v7 = vld [vmem:[#allocation4 + $0x48] sm:$0xff]  ;;  %v2702_v10 = vld [vmem:[#allocation4 + $0x51] sm:$0x3] }
 0xb3e   : > { %v2570_v58 = vadd.f32 %v4287_v50, %v2557_v13  ;;  %vm2573_vm15 = vcmp.gt.f32.partialorder %v2567_v9, 0.0 }
 0xb3f   : > { %4270 = vpow2.f32 %v2589_v11  ;;  %v2569_v52 = vadd.f32 %v4287_v50, %v2556_v49  ;;  %v2587_v3 = vmul.f32 1.442695, %v2579_v14 }
 0xb40   : > { %v2582_v8 = vmin.f32 %v2570_v58, 0.0  ;;  %vm2576_vm1 = vcmp.gt.f32.partialorder %v2570_v58, 0.0 }
 0xb41   : > { %v2581_v15 = vmin.f32 %v2569_v52, 0.0  ;;  %4272 = vpow2.f32 %v2587_v3  ;;  %vm2575_vm2 = vcmp.gt.f32.partialorder %v2569_v52, 0.0  ;;  %v2710_v3 = vld [vmem:[#allocation4 + $0x3a] sm:$0xff] }
 0xb42   : > { %v2593_v16 = vmul.f32 1.442695, %v2582_v8  ;;  %v2711_v8 = vld [vmem:[#allocation4 + $0x42] sm:$0xff] }
 0xb43   : > { %v2591_v19 = vmul.f32 1.442695, %v2581_v15  ;;  %v2712_v15 = vld [vmem:[#allocation4 + $0x4a] sm:$0xff] }
 0xb44   : > { %4274 = vpow2.f32 %v2593_v16  ;;  %v2713_v16 = vld [vmem:[#allocation4 + $0x52] sm:$0x3] }
 0xb45   : > { %4276 = vpow2.f32 %v2591_v19 }
 0xb48   : > { %v4267_v12 = vpop.eup %4266 }
 0xb49   : > { %v3374_v6 = vadd.f32 -1.0, %v4267_v12 }
 0xb4a   : > { %v4269_v21 = vpop.eup %4268 }
 0xb4b   : > { %v2602_v22 = vsel %vm2572_vm6, %v2566_v51, %v3374_v6  ;;  %v3373_v23 = vadd.f32 -1.0, %v4269_v21  ;;  %v2698_v51 = vld [vmem:[#allocation4 + $0x31] sm:$0xff] }
 0xb4c   : > { %v4271_v4 = vpop.eup %4270  ;;  %2608 = vst [vmem:[#allocation4 + $0x8] sm:$0xff] %v2602_v22 }
 0xb4d   : > { %v2601_v24 = vsel %vm2571_vm13, %v2565_v57, %v3373_v23  ;;  %v3376_v27 = vadd.f32 -1.0, %v4271_v4  ;;  %v2699_v57 = vld [vmem:[#allocation4 + $0x39] sm:$0xff] }
 0xb4e   : > { %2607 = vst [vmem:[#allocation4] sm:$0xff] %v2601_v24  ;;  %v4273_v28 = vpop.eup %4272 }
 0xb4f   : > { %v2604_v29 = vsel %vm2574_vm14, %v2568_v0, %v3376_v27  ;;  %v3375_v31 = vadd.f32 -1.0, %v4273_v28  ;;  %v2746_v0 = vld [vmem:[#allocation20 + $0x100] sm:$0xff] }
 0xb50   : > { %2610 = vst [vmem:[#allocation4 + $0x18] sm:$0xff] %v2604_v29 }
 0xb51   : > { %v4275_v54 = vpop.eup %4274  ;;  %v2603_v33 = vsel %vm2573_vm15, %v2567_v9, %v3375_v31  ;;  %v2691_v9 = vld [vmem:[#allocation4 + $0x50] sm:$0x3] }
 0xb52   : > { %v4277_v32 = vpop.eup %4276  ;;  %v3378_v34 = vadd.f32 -1.0, %v4275_v54  ;;  %2609 = vst [vmem:[#allocation4 + $0x10] sm:$0xff] %v2603_v33 }
 0xb53   : > { %v3377_v35 = vadd.f32 -1.0, %v4277_v32 }
 0xb54   : > { %v2606_v36 = vsel %vm2576_vm1, %v2570_v58, %v3378_v34  ;;  %v2708_v58 = vld [vmem:[#allocation4 + $0x2a] sm:$0xff] }
 0xb55   : > { %2612 = vst [vmem:[#allocation4 + $0x28] sm:$0x3] %v2606_v36  ;;  %v2605_v37 = vsel %vm2575_vm2, %v2569_v52, %v3377_v35  ;;  %v2692_v20 = vld [vmem:[#allocation4 + $0x1] sm:$0xff]  ;;  %v2709_v52 = vld [vmem:[#allocation4 + $0x32] sm:$0xff] }
 0xb56   : > { %2611 = vst [vmem:[#allocation4 + $0x20] sm:$0xff] %v2605_v37  ;;  %2833 = vmatprep.mubr.f32.mxu1 %v2692_v20  ;;  %v2703_v13 = vld [vmem:[#allocation4 + $0x2] sm:$0xff] }
 0xb57   : > { %2834 = vmatmul.mubr.f32.vlgmr.msra.gmra.mxu1 %v2601_v24 }
 0xb58   : > { %3932 = vmatpush3.msra.mxu1 %v2761_v38 }
 0xb59   : > { %3933 = vmatprep.subr.mxu1 %v4708_v1  ;;  %v2693_v40 = vld [vmem:[#allocation4 + $0x9] sm:$0xff]  ;;  %v2694_v17 = vld [vmem:[#allocation4 + $0x11] sm:$0xff] }
 0xb5a   : > { %3934 = vmatpush3.msra.mxu1 %v2760_v39  ;;  %2838 = vmatprep.mubr.f32.mxu1 %v2693_v40  ;;  %v2704_v5 = vld [vmem:[#allocation4 + $0xa] sm:$0xff]  ;;  %v2705_v11 = vld [vmem:[#allocation4 + $0x12] sm:$0xff] }
 0xb5b   : > { %3935 = vmatprep.subr.mxu1 %v4708_v1  ;;  %2839 = vmatmul.mubr.f32.gmra.mxu1 %v2602_v22 }
 0xb5c   : > { %2843 = vmatprep.mubr.f32.mxu1 %v2694_v17  ;;  %3936 = vmatpush3.msra.mxu1 %v2759_v25  ;;  %v2697_v48 = vld [vmem:[#allocation4 + $0x29] sm:$0xff] }
 0xb5d   : > { %3937 = vmatprep.subr.mxu1 %v4708_v1  ;;  %v2695_v59 = vld [vmem:[#allocation4 + $0x19] sm:$0xff]  ;;  %v2696_v26 = vld [vmem:[#allocation4 + $0x21] sm:$0xff] }
 0xb5e   : > { %3938 = vmatpush3.msra.mxu1 %v2758_v18  ;;  %v2686_v50 = vld [vmem:[#allocation4 + $0x28] sm:$0xff]  ;;  %v2706_v49 = vld [vmem:[#allocation4 + $0x1a] sm:$0xff] }
 0xb5f   : > { %2844 = vmatmul.mubr.f32.gmra.mxu1 %v2603_v33  ;;  %3939 = vmatprep.subr.mxu1 %v4708_v1  ;;  %v2707_v14 = vld [vmem:[#allocation4 + $0x22] sm:$0xff] }
 0xb60   : > { %2848 = vmatprep.mubr.f32.mxu1 %v2695_v59  ;;  %3940 = vmatpush3.msra.mxu1 %v2757_v41 }
 0xb61   : > { %3941 = vmatprep.subr.mxu1 %v4708_v1 }
 0xb62   : > { %3942 = vmatpush3.msra.mxu1 %v2756_v42 }
 0xb63   : > { %2849 = vmatmul.mubr.f32.gmra.mxu1 %v2604_v29  ;;  %3943 = vmatprep.subr.mxu1 %v4708_v1 }
 0xb64   : > { %2853 = vmatprep.mubr.f32.mxu1 %v2696_v26  ;;  %3944 = vmatpush3.msra.mxu1 %v2755_v43 }
 0xb65   : > { %3945 = vmatprep.subr.mxu1 %v4708_v1 }
 0xb66   : > { %3946 = vmatpush3.msra.mxu1 %v2754_v44  ;;  %v3387_v44 = vld [vmem:[#allocation22] ss:$0 sm:$0xff] }
 0xb67   : > { %2854 = vmatmul.mubr.f32.gmra.mxu1 %v2605_v37  ;;  %3947 = vmatprep.subr.mxu1 %v4708_v1 }
 0xb68   : > { %2858 = vmatprep.mubr.f32.mxu1 %v2697_v48  ;;  %3948 = vmatpush3.msra.mxu1 %v2753_v45 }
 0xb69   : > { %3949 = vmatprep.subr.mxu1 %v4708_v1 }
 0xb6a   : > { %3950 = vmatpush3.msra.mxu1 %v2752_v47 }
 0xb6b   : > { %2859 = vmatmul.mubr.f32.gmra.mxu1 %v2686_v50  ;;  %3951 = vmatprep.subr.mxu1 %v4708_v1 }
 0xb6c   : > { %2863 = vmatprep.mubr.f32.mxu1 %v2698_v51  ;;  %3952 = vmatpush3.msra.mxu1 %v2751_v30 }
 0xb6d   : > { %3953 = vmatprep.subr.mxu1 %v4708_v1 }
 0xb6e   : > { %3954 = vmatpush3.msra.mxu1 %v2750_v53 }
 0xb6f   : > { %2864 = vmatmul.mubr.f32.gmra.mxu1 %v2687_v56  ;;  %3955 = vmatprep.subr.mxu1 %v4708_v1 }
 0xb70   : > { %2868 = vmatprep.mubr.f32.mxu1 %v2699_v57  ;;  %3956 = vmatpush3.msra.mxu1 %v2749_v55 }
 0xb71   : > { %3957 = vmatprep.subr.mxu1 %v4708_v1 }
 0xb72   : > { %3958 = vmatpush3.msra.mxu1 %v2748_v60 }
 0xb73   : > { %2869 = vmatmul.mubr.f32.gmra.mxu1 %v2688_v62  ;;  %3959 = vmatprep.subr.mxu1 %v4708_v1 }
 0xb74   : > { %2873 = vmatprep.mubr.f32.mxu1 %v2700_v63  ;;  %3960 = vmatpush3.msra.mxu1 %v2747_v61 }
 0xb75   : > { %3961 = vmatprep.subr.mxu1 %v4708_v1 }
 0xb76   : > { %3962 = vmatpush3.msra.mxu1 %v2746_v0 }
 0xb77   : > { %2874 = vmatmul.mubr.f32.gmra.mxu1 %v2689_v46 }
 0xb78   : > { %2878 = vmatprep.mubr.f32.mxu1 %v2701_v2 }
 0xb7b   : > { %2879 = vmatmul.mubr.f32.gmra.mxu1 %v2690_v7 }
 0xb7c   : > { %2883 = vmatprep.mubr.f32.mxu1 %v2702_v10 }
 0xb7f   : > { %2884 = vmatmul.mubr.f32.gmra.mxu1 %v2691_v9 }
 0xb80   : > { %3963 = vmatprep.mubr.msk.f32.mxu1 %vm4709_vm0, %v4708_v1 }
 0xb83   : > { %3964 = vmatmul.mubr.f32.vlgmr.msra.gmra.mxu1 %v2703_v13 }
 0xb84   : > { %3966 = vmatprep.mubr.msk.f32.mxu1 %vm4709_vm0, %v4708_v1 }
 0xb87   : > { %3967 = vmatmul.mubr.f32.gmra.mxu1 %v2704_v5 }
 0xb88   : > { %3969 = vmatprep.mubr.msk.f32.mxu1 %vm4709_vm0, %v4708_v1 }
 0xb8b   : > { %3970 = vmatmul.mubr.f32.gmra.mxu1 %v2705_v11 }
 0xb8c   : > { %3972 = vmatprep.mubr.msk.f32.mxu1 %vm4709_vm0, %v4708_v1 }
 0xb8f   : > { %3973 = vmatmul.mubr.f32.gmra.mxu1 %v2706_v49 }
 0xb90   : > { %3975 = vmatprep.mubr.msk.f32.mxu1 %vm4709_vm0, %v4708_v1 }
 0xb93   : > { %3976 = vmatmul.mubr.f32.gmra.mxu1 %v2707_v14 }
 0xb94   : > { %3978 = vmatprep.mubr.msk.f32.mxu1 %vm4709_vm0, %v4708_v1 }
 0xb97   : > { %3979 = vmatmul.mubr.f32.gmra.mxu1 %v2708_v58 }
 0xb98   : > { %3981 = vmatprep.mubr.msk.f32.mxu1 %vm4709_vm0, %v4708_v1 }
 0xb9b   : > { %3982 = vmatmul.mubr.f32.gmra.mxu1 %v2709_v52 }
 0xb9c   : > { %3984 = vmatprep.mubr.msk.f32.mxu1 %vm4709_vm0, %v4708_v1 }
 0xb9f   : > { %3985 = vmatmul.mubr.f32.gmra.mxu1 %v2710_v3 }
 0xba0   : > { %3987 = vmatprep.mubr.msk.f32.mxu1 %vm4709_vm0, %v4708_v1 }
 0xba3   : > { %3988 = vmatmul.mubr.f32.gmra.mxu1 %v2711_v8 }
 0xba4   : > { %3990 = vmatprep.mubr.msk.f32.mxu1 %vm4709_vm0, %v4708_v1 }
 0xba7   : > { %3991 = vmatmul.mubr.f32.gmra.mxu1 %v2712_v15 }
 0xba8   : > { %3993 = vmatprep.mubr.msk.f32.mxu1 %vm4709_vm0, %v4708_v1  ;;  %vm3035_vm0 = vcmask 1040384  }
 0xbab   : > { %3994 = vmatmul.mubr.f32.gmra.mxu1 %v2713_v16 }
 0xc17   : > { %v3579_v19 = vpop.f32.mrf.mxu1 }
 0xc19   : > { %v3580_v12 = vpop.f32.mrf.mxu1 }
 0xc1a   : > { %v3581_v59 = vadd.f32 %v3580_v12, %v3579_v19 }
 0xc1b   : > { %v3582_v6 = vpop.f32.mrf.mxu1 }
 0xc1c   : > { %v2836_v30 = vadd.f32 %v3581_v59, %v3387_v44 }
 0xc1d   : > { %v3583_v21 = vpop.f32.mrf.mxu1 }
 0xc1e   : > { %v3584_v26 = vadd.f32 %v3583_v21, %v3582_v6  ;;  %v3033_v21 = vld [vmem:[#allocation26] sm:$0x1] }
 0xc1f   : > { %v3585_v22 = vpop.f32.mrf.mxu1 }
 0xc20   : > { %v2841_v53 = vadd.f32 %v3584_v26, %v3387_v44 }
 0xc21   : > { %v3586_v23 = vpop.f32.mrf.mxu1 }
 0xc22   : > { %v3587_v48 = vadd.f32 %v3586_v23, %v3585_v22 }
 0xc23   : > { %v3588_v4 = vpop.f32.mrf.mxu1 }
 0xc24   : > { %v2846_v57 = vadd.f32 %v3587_v48, %v3387_v44 }
 0xc25   : > { %v3589_v24 = vpop.f32.mrf.mxu1 }
 0xc26   : > { %v3590_v42 = vadd.f32 %v3589_v24, %v3588_v4 }
 0xc27   : > { %v3591_v27 = vpop.f32.mrf.mxu1 }
 0xc28   : > { %v2851_v50 = vadd.f32 %v3590_v42, %v3387_v44 }
 0xc29   : > { %v3592_v28 = vpop.f32.mrf.mxu1 }
 0xc2a   : > { %v3593_v43 = vadd.f32 %v3592_v28, %v3591_v27 }
 0xc2b   : > { %v3594_v29 = vpop.f32.mrf.mxu1 }
 0xc2c   : > { %v2856_v51 = vadd.f32 %v3593_v43, %v3387_v44 }
 0xc2d   : > { %v3595_v31 = vpop.f32.mrf.mxu1 }
 0xc2e   : > { %v3596_v16 = vadd.f32 %v3595_v31, %v3594_v29 }
 0xc2f   : > { %v3597_v54 = vpop.f32.mrf.mxu1 }
 0xc30   : > { %v2861_v28 = vadd.f32 %v3596_v16, %v3387_v44 }
 0xc31   : > { %v3598_v32 = vpop.f32.mrf.mxu1 }
 0xc32   : > { %v3599_v4 = vadd.f32 %v3598_v32, %v3597_v54 }
 0xc33   : > { %v3600_v33 = vpop.f32.mrf.mxu1 }
 0xc34   : > { %v2866_v29 = vadd.f32 %v3599_v4, %v3387_v44 }
 0xc35   : > { %v3601_v34 = vpop.f32.mrf.mxu1 }
 0xc37   : > { %v3603_v35 = vpop.f32.mrf.mxu1 }
 0xc39   : > { %v3604_v1 = vpop.f32.mrf.mxu1 }
 0xc3a   : > { %v3605_v24 = vadd.f32 %v3604_v1, %v3603_v35 }
 0xc3b   : > { %v3606_v36 = vpop.f32.mrf.mxu1 }
 0xc3c   : > { %v2876_v31 = vadd.f32 %v3605_v24, %v3387_v44 }
 0xc3d   : > { %v3607_v37 = vpop.f32.mrf.mxu1 }
 0xc3e   : > { %v3608_v12 = vadd.f32 %v3607_v37, %v3606_v36 }
 0xc3f   : > { %v3609_v20 = vpop.f32.mrf.mxu1 }
 0xc41   : > { %v3610_v38 = vpop.f32.mrf.mxu1 }
 0xc42   : > { %v3611_v22 = vadd.f32 %v3610_v38, %v3609_v20 }
 0xc43   : > { %v2955_v39 = vpop.f32.mrf.mxu1 }
 0xc44   : > { %v2956_v56 = vadd.f32 %v2955_v39, %v2836_v30 }
 0xc45   : > { %v3965_v40 = vpop.f32.mrf.mxu1 }
 0xc46   : > { %v3602_v40 = vadd.f32 %v3601_v34, %v3600_v33 }
 0xc47   : > { %v2960_v25 = vpop.f32.mrf.mxu1 }
 0xc48   : > { %v2961_v63 = vadd.f32 %v2960_v25, %v2841_v53  ;;  %v2881_v25 = vadd.f32 %v3608_v12, %v3387_v44  ;;  %v2871_v32 = vadd.f32 %v3602_v40, %v3387_v44 }
 0xc49   : > { %v3968_v17 = vpop.f32.mrf.mxu1 }
 0xc4b   : > { %v2965_v18 = vpop.f32.mrf.mxu1 }
 0xc4c   : > { %v2966_v0 = vadd.f32 %v2965_v18, %v2846_v57  ;;  %v3039_v57 = vld [vmem:[#allocation5] sm:$0x1] }
 0xc4d   : > { %v3971_v41 = vpop.f32.mrf.mxu1 }
 0xc4e   : > { %v2886_v41 = vadd.f32 %v3611_v22, %v3387_v44 }
 0xc4f   : > { %v2970_v45 = vpop.f32.mrf.mxu1 }
 0xc50   : > { %v2971_v60 = vadd.f32 %v2970_v45, %v2851_v50 }
 0xc51   : > { %v3974_v47 = vpop.f32.mrf.mxu1 }
 0xc52   : > { %v3011_v7 = vmax.f32 %v2966_v0, %v2971_v60 }
 0xc53   : > { %v2975_v55 = vpop.f32.mrf.mxu1 }
 0xc54   : > { %v2976_v61 = vadd.f32 %v2975_v55, %v2856_v51 }
 0xc55   : > { %v3977_v62 = vpop.f32.mrf.mxu1 }
 0xc56   : > { %v3009_v46 = vmax.f32 %v2956_v56, %v2976_v61 }
 0xc57   : > { %v2980_v2 = vpop.f32.mrf.mxu1 }
 0xc58   : > { %v3010_v10 = vmax.f32 %v3009_v46, %v2961_v63  ;;  %v2981_v18 = vadd.f32 %v2980_v2, %v2861_v28 }
 0xc59   : > { %v3980_v9 = vpop.f32.mrf.mxu1 }
 0xc5a   : > { %v3012_v13 = vmax.f32 %v3010_v10, %v3011_v7  ;;  %v3020_v38 = vsel %vm3019_vm3, %v2981_v18, -inf }
 0xc5b   : > { %v2985_v5 = vpop.f32.mrf.mxu1 }
 0xc5c   : > { %v3013_v11 = vrot.slane %v3012_v13, 4  ;;  %v2986_v54 = vadd.f32 %v2985_v5, %v2866_v29 }
 0xc5d   : > { %v3983_v49 = vpop.f32.mrf.mxu1 }
 0xc5e   : > { %v3014_v14 = vmax.f32 %v3012_v13, %v3013_v11 }
 0xc5f   : > { %v2990_v58 = vpop.f32.mrf.mxu1 }
 0xc60   : > { %v3015_v52 = vrot.slane %v3014_v14, 2  ;;  %v2991_v34 = vadd.f32 %v2990_v58, %v2871_v32 }
 0xc61   : > { %v3986_v3 = vpop.f32.mrf.mxu1 }
 0xc62   : > { %v3016_v8 = vmax.f32 %v3014_v14, %v3015_v52 }
 0xc63   : > { %v2995_v15 = vpop.f32.mrf.mxu1 }
 0xc64   : > { %v3017_v19 = vrot.slane %v3016_v8, 1  ;;  %v2996_v35 = vadd.f32 %v2995_v15, %v2876_v31 }
 0xc65   : > { %v3989_v6 = vpop.f32.mrf.mxu1 }
 0xc66   : > { %v3018_v23 = vmax.f32 %v3016_v8, %v3017_v19  ;;  %v3025_v26 = vmax.f32 %v2991_v34, %v2996_v35 }
 0xc67   : > { %v3000_v27 = vpop.f32.mrf.mxu1 }
 0xc68   : > { %v3034_v39 = vmul.f32 %v3033_v21, %v3018_v23  ;;  %v3001_v36 = vadd.f32 %v3000_v27, %v2881_v25 }
 0xc69   : > { %v3992_v17 = vpop.f32.mrf.mxu1 }
 0xc6a   : > { %v3036_v59 = vsel %vm3035_vm0, %v3034_v39, 0.0  ;;  %v3021_v42 = vmax.f32 %v3020_v38, %v3001_v36 }
 0xc6b   : > { %v3005_v37 = vpop.f32.mrf.mxu1  ;;  %3037 = vadd.xlane.f32.xlu1 %v3036_v59 }
 0xc6c   : > { %v3006_v20 = vadd.f32 %v3005_v37, %v2886_v41 }
 0xc6d   : > { %v3995_v1 = vpop.f32.mrf.mxu1 }
 0xc6e   : > { %v3022_v33 = vsel %vm1741_vm7, %v3006_v20, -inf }
 0xc6f   : > { %v3023_v43 = vmax.f32 %v2986_v54, %v3022_v33 }
 0xc71   : > { %v3024_v45 = vmax.f32 %v3021_v42, %v3023_v43 }
 0xc73   : > { %v3026_v48 = vmax.f32 %v3024_v45, %v3025_v26 }
 0xc75   : > { %v3027_v47 = vrot.slane %v3026_v48, 4 }
 0xc77   : > { %v3028_v30 = vmax.f32 %v3026_v48, %v3027_v47 }
 0xc79   : > { %v3029_v50 = vrot.slane %v3028_v30, 2 }
 0xc7b   : > { %v3030_v51 = vmax.f32 %v3028_v30, %v3029_v50 }
 0xc7d   : > { %v3031_v53 = vrot.slane %v3030_v51, 1 }
 0xc7f   : > { %v3032_v55 = vmax.f32 %v3030_v51, %v3031_v53 }
 0xc81   : > { %v3041_v56 = vmul.f32 %v3033_v21, %v3032_v55 }
 0xc83   : > { %v3042_v44 = vsel %vm3035_vm0, %v3041_v56, 0.0 }
 0xc84   : > { %3043 = vadd.xlane.f32.xlu0 %v3042_v44 }
 0xcf4   : > { %v3038_v60 = vpop.xlane.xlu1 %3037 }
 0xcf5   : > { %v3040_v61 = vadd.f32 %v3039_v57, %v3038_v60 }
 0xcf7   : > { %v3046_v62 = vsub.f32 0.0, %v3040_v61 }
 0xcf9   : > { %v3047_v63 = vmul.f32 1.442695, %v3046_v62 }
 0xcfb   : > { %4278 = vpow2.f32 %v3047_v63 }
 0xd08   : > { %v4279_v0 = vpop.eup %4278 }
 0xd09   : > { %v3049_v46 = vadd.f32 1.0, %v4279_v0 }
 0xd0b   : > { %4280 = vrcp.f32 %v3049_v46 }
 0xd0d   : > { %v3044_v2 = vpop.xlane.xlu0 %3043 }
 0xd0e   : > { %v3045_v7 = vadd.f32 %v3044_v2, %v3039_v57 }
 0xd10   : > { %v3054_v10 = vsub.f32 0.0, %v3045_v7 }
 0xd12   : > { %v3055_v9 = vmul.f32 1.442695, %v3054_v10 }
 0xd14   : > { %4282 = vpow2.f32 %v3055_v9 }
 0xd18   : > { %v4281_v13 = vpop.eup %4280 }
 0xd19   : > { %3053 = vst.msk [vmem:[%s766_s0] sm:$0x1] %vm3052_vm4, %v4281_v13 }
 0xd21   : > { %v4283_v5 = vpop.eup %4282 }
 0xd22   : > { %v3057_v11 = vadd.f32 1.0, %v4283_v5 }
 0xd24   : > { %4284 = vrcp.f32 %v3057_v11 }
 0xd31   : > { %v4285_v49 = vpop.eup %4284 }
 0xd32   : > { %3060 = vst.msk [vmem:[%s769_s20] sm:$0x1] %vm3052_vm4, %v4285_v49 }
 0xd33 PF: > { %s39_s29 = sadd.s32 1, %s4690_s29  }
 0xd34   : > { %p36_p0 = scmp.ge.s32.totalorder %s39_s29, 4  }
 0xd36   :  { %38 = sbr.rel (!%p36_p0) target bundleno = 12 (0xc), region = 192 }
 0xd3b   :  { %3090 = vsyncpa [#allocation7], 1 }
 0xd3c   :  { %3092 = vsyncpa [#allocation7 + $0x1], 1 }
 0xd3d   :  { %3093 = vsyncpa [#allocation9], 1 }
 0xd3e   :  { %3094 = vsyncpa [#allocation12], 1 }
 0xd3f   :  { %3095 = vsyncpa [#allocation15], 1 }
 0xd40   :  { %3096 = vsyncpa [#allocation18], 1 }
 0xd41   :  { %3097 = vsyncpa [#allocation21], 1 }
 0xd42   :  { %3098 = vsyncpa [#allocation24], 1 }
 0xd43   :  { %3099 = vsyncpa [#allocation27], 1 }

</bundles_post_ra>
